<compile_context>
chip_gen: v7x
topology: tpu7x:2x2x1
jax: 0.10.0
libtpu: 0.0.40
codegen_flags: <defaults>
</compile_context>

<pallas_src>
import functools
import jax
import jax.numpy as jnp
from jax import lax
from jax.experimental import pallas as pl
from jax.experimental.pallas import tpu as pltpu


# --------------------------------------------------------------------------------------
# Shared compiler parameters / tiling helpers
# --------------------------------------------------------------------------------------

def _physical_vmem_bytes():
    try:
        info = pltpu.get_tpu_info()
        return int(getattr(info, "vmem_capacity_bytes", 64 * 1024 * 1024))
    except Exception:
        return 64 * 1024 * 1024


_PHYS_VMEM = _physical_vmem_bytes()
# ~70% of physical VMEM, capped at 96 MiB (v5e/v6e: ~90 MiB, v7x: ~45 MiB).
_VMEM_LIMIT = int(min(_PHYS_VMEM * 7 // 10, 96 * 1024 * 1024))
# FFN row tile: 1024 on 128 MiB-VMEM generations (v5e/v6e), 512 on v7x (64 MiB).
_FFN_TILE_M = 1024 if _PHYS_VMEM >= 128 * 1024 * 1024 else 512


def _cparams():
    # Row grid axis is embarrassingly parallel -> shards across both TensorCores on v7x,
    # harmless no-op on v5e/v6e.
    return pltpu.CompilerParams(dimension_semantics=("parallel",),
                                vmem_limit_bytes=_VMEM_LIMIT)


def _row_tile(m, target):
    """Row-tile size: multiple of 8, <= target, and (when m allows) small enough that the
    row grid has >= 2 steps so dimension_semantics=('parallel',) can use both TCs on v7x."""
    if m <= 8:
        return m
    half = ((-(-m // 2)) + 7) // 8 * 8        # round_up(cdiv(m, 2), 8)
    return max(8, min(target, half, m))


# --------------------------------------------------------------------------------------
# Fused projection kernel:
#   value = (src @ Wv + bv) * keep            (masked_fill fused, emitted in bf16)
#   y     = (src + pos) @ [samp_w | attn_w]   (with_pos_embed fused)
#   offs  = y[:, :d_off]
#   attw  = grouped softmax over trailing L*P logits per head (lane-dense, one wide store)
# --------------------------------------------------------------------------------------

def _fused_proj_kernel(s_ref, p_ref, keep_ref, wv_ref, bv_ref, wq_ref, bq_ref, gsum_ref,
                       val_ref, off_ref, attn_ref, *, d_off):
    s = s_ref[...]
    # value projection + padding-mask keep-multiply; value only feeds the bf16 gather.
    v = jnp.dot(s.astype(jnp.bfloat16), wv_ref[...], preferred_element_type=jnp.float32)
    v = (v + bv_ref[...]) * keep_ref[...]
    val_ref[...] = v.astype(val_ref.dtype)

    # query-side combined projection (offsets | attention logits)
    q = (s + p_ref[...]).astype(jnp.bfloat16)
    y = jnp.dot(q, wq_ref[...], preferred_element_type=jnp.float32) + bq_ref[...]
    off_ref[...] = y[:, :d_off].astype(off_ref.dtype)

    # Lane-dense grouped softmax: a single row-max shift is mathematically identical to the
    # per-head shift (softmax is shift-invariant); per-head denominators are broadcast via
    # one matmul with a block-diagonal 0/1 matrix (denom = e @ gsum) -> no per-head loop,
    # no narrow XLU reductions, one full-width store.
    a = y[:, d_off:]
    a = a - jnp.max(a, axis=-1, keepdims=True)
    e = jnp.exp(a)
    denom = jnp.dot(e, gsum_ref[...], preferred_element_type=jnp.float32)
    # approx reciprocal (EUP slot): attention weights sum to 1 within ~1e-3.
    attn_ref[...] = (e * pl.reciprocal(denom, approx=True)).astype(attn_ref.dtype)


def pallas_fused_proj(src, pos, keep_rows, value_w, value_b, qproj_w, qproj_b,
                      *, n_heads, n_levels, n_points, tile_m=512):
    B, N, D = src.shape
    m = B * N
    group = n_levels * n_points
    d_attn = n_heads * group
    d_off = d_attn * 2
    dout = qproj_w.shape[1]
    tm = _row_tile(m, tile_m)

    # block-diagonal group-sum matrix: gsum[i, j] = 1 iff i and j belong to the same head.
    head_of = jnp.arange(d_attn) // group
    gsum = (head_of[:, None] == head_of[None, :]).astype(jnp.float32)

    kern = functools.partial(_fused_proj_kernel, d_off=d_off)
    value, offs, attw = pl.pallas_call(
        kern,
        out_shape=(jax.ShapeDtypeStruct((m, D), jnp.bfloat16),
                   jax.ShapeDtypeStruct((m, d_off), jnp.float32),
                   jax.ShapeDtypeStruct((m, d_attn), jnp.float32)),
        grid=(pl.cdiv(m, tm),),
        in_specs=[pl.BlockSpec((tm, D), lambda i: (i, 0)),        # src
                  pl.BlockSpec((tm, D), lambda i: (i, 0)),        # pos
                  pl.BlockSpec((tm, 1), lambda i: (i, 0)),        # keep (1 - padding_mask)
                  pl.BlockSpec((D, D), lambda i: (0, 0)),         # value_w (resident)
                  pl.BlockSpec((1, D), lambda i: (0, 0)),
                  pl.BlockSpec((D, dout), lambda i: (0, 0)),      # qproj_w (resident)
                  pl.BlockSpec((1, dout), lambda i: (0, 0)),
                  pl.BlockSpec((d_attn, d_attn), lambda i: (0, 0))],
        out_specs=(pl.BlockSpec((tm, D), lambda i: (i, 0)),
                   pl.BlockSpec((tm, d_off), lambda i: (i, 0)),
                   pl.BlockSpec((tm, d_attn), lambda i: (i, 0))),
        compiler_params=_cparams(),
    )(src.reshape(m, D), pos.reshape(m, D), keep_rows,
      value_w, value_b.reshape(1, D), qproj_w, qproj_b.reshape(1, dout), gsum)
    # TODO(synk): on v7x mark the constant-index weight blocks pipeline_mode=pl.Buffered(1)
    # to free the redundant second buffer (only matters near the VMEM limit).
    return (value.reshape(B, N, D), offs.reshape(B, N, d_off), attw.reshape(B, N, d_attn))


# ---- output projection + residual + LayerNorm1 (fused) --------------------------------

def _outproj_ln_kernel(a_ref, r_ref, w_ref, b_ref, g_ref, be_ref, o_ref, *, eps):
    a = a_ref[...].astype(jnp.bfloat16)
    y = jnp.dot(a, w_ref[...], preferred_element_type=jnp.float32) + b_ref[...]
    z = r_ref[...].astype(jnp.float32) + y                   # residual (dropout1 = identity)
    mean = jnp.mean(z, axis=-1, keepdims=True)
    var = jnp.mean(jnp.square(z - mean), axis=-1, keepdims=True)
    zn = (z - mean) * lax.rsqrt(var + eps)
    o_ref[...] = (zn * g_ref[...] + be_ref[...]).astype(o_ref.dtype)


def pallas_outproj_add_ln(a, resid, w_bf16, b, gamma, beta, *, eps=1e-5, tile_m=512):
    B, N, D = resid.shape
    din = a.shape[-1]
    dout = w_bf16.shape[1]
    m = B * N
    tm = _row_tile(m, tile_m)
    out = pl.pallas_call(
        functools.partial(_outproj_ln_kernel, eps=eps),
        out_shape=jax.ShapeDtypeStruct((m, dout), jnp.float32),
        grid=(pl.cdiv(m, tm),),
        in_specs=[pl.BlockSpec((tm, din), lambda i: (i, 0)),
                  pl.BlockSpec((tm, D), lambda i: (i, 0)),
                  pl.BlockSpec((din, dout), lambda i: (0, 0)),
                  pl.BlockSpec((1, dout), lambda i: (0, 0)),
                  pl.BlockSpec((1, dout), lambda i: (0, 0)),
                  pl.BlockSpec((1, dout), lambda i: (0, 0))],
        out_specs=pl.BlockSpec((tm, dout), lambda i: (i, 0)),
        compiler_params=_cparams(),
    )(a.reshape(m, din), resid.reshape(m, D), w_bf16, b.reshape(1, dout),
      gamma.reshape(1, dout), beta.reshape(1, dout))
    return out.reshape(B, N, dout)


# ---- FFN: linear1 + ReLU + linear2 + residual + LayerNorm2 (fused) ---------------------

def _ffn_kernel(x_ref, w1_ref, b1_ref, w2_ref, b2_ref, g_ref, be_ref, o_ref, *, eps):
    x = x_ref[...].astype(jnp.float32)
    h = jnp.dot(x.astype(jnp.bfloat16), w1_ref[...],
                preferred_element_type=jnp.float32) + b1_ref[...]
    h = jnp.maximum(h, 0.0)                                   # ReLU
    y = jnp.dot(h.astype(jnp.bfloat16), w2_ref[...],
                preferred_element_type=jnp.float32) + b2_ref[...]
    z = x + y                                                 # residual (dropout = identity)
    mean = jnp.mean(z, axis=-1, keepdims=True)
    var = jnp.mean(jnp.square(z - mean), axis=-1, keepdims=True)
    zn = (z - mean) * lax.rsqrt(var + eps)
    o_ref[...] = (zn * g_ref[...] + be_ref[...]).astype(o_ref.dtype)


def pallas_ffn(x, w1_bf16, b1, w2_bf16, b2, gamma, beta, *, eps=1e-5, tile_m=None):
    B, N, D = x.shape
    f = w1_bf16.shape[1]
    m = B * N
    tm = _row_tile(m, _FFN_TILE_M if tile_m is None else tile_m)
    out = pl.pallas_call(
        functools.partial(_ffn_kernel, eps=eps),
        out_shape=jax.ShapeDtypeStruct((m, D), jnp.float32),
        grid=(pl.cdiv(m, tm),),
        in_specs=[pl.BlockSpec((tm, D), lambda i: (i, 0)),
                  pl.BlockSpec((D, f), lambda i: (0, 0)),
                  pl.BlockSpec((1, f), lambda i: (0, 0)),
                  pl.BlockSpec((f, D), lambda i: (0, 0)),
                  pl.BlockSpec((1, D), lambda i: (0, 0)),
                  pl.BlockSpec((1, D), lambda i: (0, 0)),
                  pl.BlockSpec((1, D), lambda i: (0, 0))],
        out_specs=pl.BlockSpec((tm, D), lambda i: (i, 0)),
        compiler_params=_cparams(),
    )(x.reshape(m, D), w1_bf16, b1.reshape(1, f), w2_bf16, b2.reshape(1, D),
      gamma.reshape(1, D), beta.reshape(1, D))
    return out.reshape(B, N, D)


# --------------------------------------------------------------------------------------
# MSDeformAttn core (bilinear sampling) -- plain-JAX glue (data-dependent gather)
# --------------------------------------------------------------------------------------
# TODO(synk): move this gather into a Pallas kernel (PrefetchScalarGridSpec level offsets +
# per-query-tile manual copies) and fuse out_proj+residual+LN1 so attn_out never hits HBM.
# Until then: value is transposed/cast to bf16 ONCE, level_start_index is folded into the
# flat indices so a SINGLE take_along_axis fetches all levels and all 4 bilinear corners,
# attention weights are folded into the corner weights, and the einsum accumulates in f32.

def ms_deform_attn_core(value, spatial_shapes, level_start_index,
                        sampling_locations, attention_weights):
    # value: [B, Nv, H, Dh] (bf16); sampling_locations: [B, Nq, H, L, P, 2] (normalized x,y)
    # attention_weights: [B, Nq, H, L, P]
    B, Nv, H, Dh = value.shape
    _, Nq, _, L, P, _ = sampling_locations.shape
    vt = value.transpose(0, 2, 1, 3).astype(jnp.bfloat16)          # [B, H, Nv, Dh], once

    Wf = jnp.array([w for (_, w) in spatial_shapes], jnp.float32)  # [L]
    Hf = jnp.array([h for (h, _) in spatial_shapes], jnp.float32)
    Wi = jnp.array([w for (_, w) in spatial_shapes], jnp.int32)
    starts = jnp.array(level_start_index, jnp.int32)               # [L]

    # align_corners=False convention of F.grid_sample with grid = 2*loc - 1
    x = sampling_locations[..., 0] * Wf[None, None, None, :, None] - 0.5   # [B,Nq,H,L,P]
    y = sampling_locations[..., 1] * Hf[None, None, None, :, None] - 0.5
    x0 = jnp.floor(x)
    y0 = jnp.floor(y)
    xs = jnp.stack([x0, x0 + 1.0, x0, x0 + 1.0], 0)                # [4,B,Nq,H,L,P]
    ys = jnp.stack([y0, y0, y0 + 1.0, y0 + 1.0], 0)
    wx1 = x - x0
    wx0 = 1.0 - wx1
    wy1 = y - y0
    wy0 = 1.0 - wy1
    w = jnp.stack([wx0 * wy0, wx1 * wy0, wx0 * wy1, wx1 * wy1], 0)  # [4,B,Nq,H,L,P]

    Wb = Wf[None, None, None, None, :, None]
    Hb = Hf[None, None, None, None, :, None]
    inb = ((xs >= 0) & (xs <= Wb - 1) & (ys >= 0) & (ys <= Hb - 1)).astype(jnp.float32)
    w = w * inb * attention_weights[None]                           # fold attn weights + zero-pad OOB

    ix = jnp.clip(xs, 0, Wb - 1).astype(jnp.int32)
    iy = jnp.clip(ys, 0, Hb - 1).astype(jnp.int32)
    flat = (iy * Wi[None, None, None, None, :, None] + ix
            + starts[None, None, None, None, :, None])              # global flat index, all levels

    idx = flat.transpose(1, 3, 0, 2, 4, 5).reshape(B, H, 4 * Nq * L * P)   # [B,H,4NqLP]
    g = jnp.take_along_axis(vt, idx[..., None], axis=2)             # [B,H,4NqLP,Dh] bf16
    g = g.reshape(B, H, 4, Nq, L, P, Dh)
    wv = w.transpose(1, 3, 0, 2, 4, 5)                              # [B,H,4,Nq,L,P] f32
    out = jnp.einsum('bhcqlp,bhcqlpd->bqhd', wv, g,
                     preferred_element_type=jnp.float32)            # f32 accumulation
    return out.reshape(B, Nq, H * Dh)


# --------------------------------------------------------------------------------------
# Encoder layer (MSDeformAttn + FFN) and encoder forward
# --------------------------------------------------------------------------------------

def msdeform_attn_forward(p, src, pos, keep_rows, reference_points, spatial_shapes,
                          level_start_index, n_heads, n_levels, n_points):
    B, Nq, D = src.shape
    Dh = D // n_heads

    # value proj (+masked_fill) and query-side offsets/attention proj fused: src read once.
    value, offs, attw = pallas_fused_proj(
        src, pos, keep_rows, p["value_w"], p["value_b"], p["qproj_w"], p["qproj_b"],
        n_heads=n_heads, n_levels=n_levels, n_points=n_points)

    value = value.reshape(B, Nq, n_heads, Dh)
    sampling_offsets = offs.reshape(B, Nq, n_heads, n_levels, n_points, 2)
    attention_weights = attw.reshape(B, Nq, n_heads, n_levels, n_points)

    # offset_normalizer = (W, H) per level
    wh = jnp.array([[w, h] for (h, w) in spatial_shapes], jnp.float32)   # [L, 2]
    # TODO(synk): compute sampling_locations inside a fused Pallas gather kernel so this
    # [B,Nq,H,L,P,2] f32 tensor never materializes in HBM.
    sampling_locations = (reference_points[:, :, None, :, None, :]
                          + sampling_offsets / wh[None, None, None, :, None, :])

    return ms_deform_attn_core(value, spatial_shapes, level_start_index,
                               sampling_locations, attention_weights)     # [B, Nq, D]


def encoder_layer_forward(p, src, pos, keep_rows, reference_points, spatial_shapes,
                          level_start_index, n_heads, n_levels, n_points):
    attn_out = msdeform_attn_forward(p, src, pos, keep_rows, reference_points,
                                     spatial_shapes, level_start_index,
                                     n_heads, n_levels, n_points)
    # output projection + residual + norm1 fused in one kernel
    src = pallas_outproj_add_ln(attn_out, src, p["out_w"], p["out_b"],
                                p["norm1_g"], p["norm1_b"])
    # forward_ffn: linear1 + ReLU + linear2 + residual + norm2 fused in one kernel
    src = pallas_ffn(src, p["w1"], p["b1"], p["w2"], p["b2"],
                     p["norm2_g"], p["norm2_b"])
    return src


def get_reference_points(spatial_shapes, valid_ratios):
    """spatial_shapes: python sequence of (H, W); valid_ratios: [B, L, 2] (w_ratio, h_ratio)."""
    ref_list = []
    for lvl, (H_, W_) in enumerate(spatial_shapes):
        ref_y, ref_x = jnp.meshgrid(
            jnp.linspace(0.5, H_ - 0.5, H_, dtype=jnp.float32),
            jnp.linspace(0.5, W_ - 0.5, W_, dtype=jnp.float32),
            indexing="ij")
        ref_y = ref_y.reshape(-1)[None] / (valid_ratios[:, None, lvl, 1] * H_)
        ref_x = ref_x.reshape(-1)[None] / (valid_ratios[:, None, lvl, 0] * W_)
        ref_list.append(jnp.stack((ref_x, ref_y), -1))
    reference_points = jnp.concatenate(ref_list, 1)                          # [B, N, 2]
    reference_points = reference_points[:, :, None] * valid_ratios[:, None]  # [B, N, L, 2]
    return reference_points


def deformable_transformer_encoder_forward(params, src, pos, spatial_shapes,
                                           level_start_index, valid_ratios,
                                           key_padding_mask, memory_text,
                                           text_attention_mask, pos_text,
                                           text_self_attention_masks, position_ids,
                                           *, n_heads, n_levels, n_points):
    B, N, _ = src.shape
    output = src
    layer_image_outputs = []
    num_layers = len(params["layers"])
    if num_layers > 0:
        reference_points = get_reference_points(spatial_shapes, valid_ratios)
    # padding mask converted once per forward: keep = 1 - mask, multiplied inside the kernel
    keep_rows = (1.0 - key_padding_mask.reshape(B * N).astype(jnp.float32))[:, None]
    # feature_fusion_layer defaults to None -> no fusion step; memory_text passes through.
    for layer_p in params["layers"]:
        output = encoder_layer_forward(layer_p, output, pos, keep_rows, reference_points,
                                       spatial_shapes, level_start_index,
                                       n_heads, n_levels, n_points)
        layer_image_outputs.append(output)
    return output, memory_text, layer_image_outputs


# --------------------------------------------------------------------------------------
# Deterministic parameter init (synthetic; shapes follow the module's __init__)
# --------------------------------------------------------------------------------------

def init_params(key, d_model, d_ffn, n_heads, n_levels, n_points, num_layers):
    def lin(k, din, dout, scale=0.05):
        kw, kb = jax.random.split(k)
        return (jax.random.normal(kw, (din, dout), jnp.float32) * scale,
                jax.random.normal(kb, (dout,), jnp.float32) * 0.01)

    layers = []
    for _ in range(num_layers):
        key, k0, k1, k2, k3, k4, k5 = jax.random.split(key, 7)
        p = {}
        p["value_w"], p["value_b"] = lin(k0, d_model, d_model)
        p["samp_w"], p["samp_b"] = lin(k1, d_model, n_heads * n_levels * n_points * 2, scale=0.01)
        p["attn_w"], p["attn_b"] = lin(k2, d_model, n_heads * n_levels * n_points)
        p["out_w"], p["out_b"] = lin(k3, d_model, d_model)
        p["norm1_g"] = jnp.ones((d_model,), jnp.float32)
        p["norm1_b"] = jnp.zeros((d_model,), jnp.float32)
        p["w1"], p["b1"] = lin(k4, d_model, d_ffn)
        p["w2"], p["b2"] = lin(k5, d_ffn, d_model)
        p["norm2_g"] = jnp.ones((d_model,), jnp.float32)
        p["norm2_b"] = jnp.zeros((d_model,), jnp.float32)
        layers.append(p)
    return {"layers": layers}


def prepare_params(params):
    """One-time prep: cast matmul weights to bf16 and concatenate samp/attn projections."""
    prepared = {"layers": []}
    for p in params["layers"]:
        q = {
            "value_w": p["value_w"].astype(jnp.bfloat16),
            "value_b": p["value_b"],
            "qproj_w": jnp.concatenate([p["samp_w"], p["attn_w"]], axis=1).astype(jnp.bfloat16),
            "qproj_b": jnp.concatenate([p["samp_b"], p["attn_b"]], axis=0),
            "out_w": p["out_w"].astype(jnp.bfloat16),
            "out_b": p["out_b"],
            "norm1_g": p["norm1_g"], "norm1_b": p["norm1_b"],
            "w1": p["w1"].astype(jnp.bfloat16), "b1": p["b1"],
            "w2": p["w2"].astype(jnp.bfloat16), "b2": p["b2"],
            "norm2_g": p["norm2_g"], "norm2_b": p["norm2_b"],
        }
        prepared["layers"].append(q)
    return prepared


# --------------------------------------------------------------------------------------
# Main
# --------------------------------------------------------------------------------------

if __name__ == "__main__":
    # Small deterministic smoke-test configuration (NOT for perf measurement).
    B = 2
    d_model = 32
    d_ffn = 64
    n_heads = 4
    n_levels = 2
    n_points = 2
    num_layers = 2
    n_text = 4

    spatial_shapes = ((8, 8), (4, 4))                     # static python tuples
    level_start_index = (0, 8 * 8)
    N = sum(h * w for h, w in spatial_shapes)             # 80

    key = jax.random.PRNGKey(0)
    key, k_src, k_pos, k_txt, k_ptxt, k_par = jax.random.split(key, 6)

    src = jax.random.normal(k_src, (B, N, d_model), jnp.float32)
    pos = jax.random.normal(k_pos, (B, N, d_model), jnp.float32)
    valid_ratios = jnp.ones((B, n_levels, 2), jnp.float32)
    key_padding_mask = jnp.zeros((B, N), jnp.bool_)       # no padding
    memory_text = jax.random.normal(k_txt, (B, n_text, d_model), jnp.float32)
    text_attention_mask = jnp.zeros((B, n_text), jnp.bool_)
    pos_text = jax.random.normal(k_ptxt, (B, n_text, d_model), jnp.float32)
    text_self_attention_masks = jnp.ones((B, n_text, n_text), jnp.bool_)
    position_ids = jnp.tile(jnp.arange(n_text)[None], (B, 1))

    raw_params = init_params(k_par, d_model, d_ffn, n_heads, n_levels, n_points, num_layers)
    params = prepare_params(raw_params)

    @jax.jit
    def run(params, src, pos, valid_ratios, key_padding_mask, memory_text,
            text_attention_mask, pos_text, text_self_attention_masks, position_ids):
        return deformable_transformer_encoder_forward(
            params, src, pos, spatial_shapes, level_start_index, valid_ratios,
            key_padding_mask, memory_text, text_attention_mask, pos_text,
            text_self_attention_masks, position_ids,
            n_heads=n_heads, n_levels=n_levels, n_points=n_points)

    output, mem_text_out, layer_outs = run(
        params, src, pos, valid_ratios, key_padding_mask, memory_text,
        text_attention_mask, pos_text, text_self_attention_masks, position_ids)

    output = jax.block_until_ready(output)
    mem_text_out = jax.block_until_ready(mem_text_out)
    for lo in layer_outs:
        jax.block_until_ready(lo)

    assert output.shape == (B, N, d_model)
    assert mem_text_out.shape == (B, n_text, d_model)
    assert len(layer_outs) == num_layers
    assert bool(jnp.all(jnp.isfinite(output)))
    print("KERNEL_OK")
</pallas_src>

<mosaic_0001>
module attributes {stable_mosaic.version = 11 : i64} {
  func.func @_fused_proj_kernel(%arg0: i32, %arg1: memref<80x32xf32, #tpu.memory_space<vmem>>, %arg2: memref<80x32xf32, #tpu.memory_space<vmem>>, %arg3: memref<80x1xf32, #tpu.memory_space<vmem>>, %arg4: memref<32x32xbf16, #tpu.memory_space<vmem>>, %arg5: memref<1x32xf32, #tpu.memory_space<vmem>>, %arg6: memref<32x48xbf16, #tpu.memory_space<vmem>>, %arg7: memref<1x48xf32, #tpu.memory_space<vmem>>, %arg8: memref<16x16xf32, #tpu.memory_space<vmem>>, %arg9: memref<80x32xbf16, #tpu.memory_space<vmem>>, %arg10: memref<80x32xf32, #tpu.memory_space<vmem>>, %arg11: memref<80x16xf32, #tpu.memory_space<vmem>>) attributes {dimension_semantics = [#tpu.dimension_semantics<parallel>], iteration_bounds = array<i64: 2>, scalar_prefetch = 0 : i64, scratch_operands = 0 : i64, tpu.core_type = #tpu.core_type<tc>, window_params = [{transform_indices = @transform_0, window_bounds = array<i64: 80, 32>}, {transform_indices = @transform_1, window_bounds = array<i64: 80, 32>}, {transform_indices = @transform_2, window_bounds = array<i64: 80, 1>}, {pipeline_mode = #tpu.pipeline_mode<synchronous>, transform_indices = @transform_3, window_bounds = array<i64: 32, 32>}, {pipeline_mode = #tpu.pipeline_mode<synchronous>, transform_indices = @transform_4, window_bounds = array<i64: 1, 32>}, {pipeline_mode = #tpu.pipeline_mode<synchronous>, transform_indices = @transform_5, window_bounds = array<i64: 32, 48>}, {pipeline_mode = #tpu.pipeline_mode<synchronous>, transform_indices = @transform_6, window_bounds = array<i64: 1, 48>}, {pipeline_mode = #tpu.pipeline_mode<synchronous>, transform_indices = @transform_7, window_bounds = array<i64: 16, 16>}, {transform_indices = @transform_8, window_bounds = array<i64: 80, 32>}, {transform_indices = @transform_9, window_bounds = array<i64: 80, 32>}, {transform_indices = @transform_10, window_bounds = array<i64: 80, 16>}]} {
    %c0 = arith.constant 0 : index
    %c0_0 = arith.constant 0 : index
    %0 = vector.load %arg1[%c0, %c0_0] : memref<80x32xf32, #tpu.memory_space<vmem>>, vector<80x32xf32>
    %1 = arith.truncf %0 : vector<80x32xf32> to vector<80x32xbf16>
    %c0_1 = arith.constant 0 : index
    %c0_2 = arith.constant 0 : index
    %2 = vector.load %arg4[%c0_1, %c0_2] : memref<32x32xbf16, #tpu.memory_space<vmem>>, vector<32x32xbf16>
    %cst = arith.constant dense<0.000000e+00> : vector<80x32xf32>
    %3 = tpu.matmul %1, %2, %cst {dimension_numbers = #tpu.dot_dimension_numbers<[1], [0], [0], [1], [0, 0, 1, 1], [], []>} : vector<80x32xbf16>, vector<32x32xbf16>, vector<80x32xf32> -> vector<80x32xf32>
    %c0_3 = arith.constant 0 : index
    %c0_4 = arith.constant 0 : index
    %4 = vector.load %arg5[%c0_3, %c0_4] : memref<1x32xf32, #tpu.memory_space<vmem>>, vector<1x32xf32>
    %5 = vector.broadcast %4 : vector<1x32xf32> to vector<80x32xf32>
    %6 = arith.addf %3, %5 : vector<80x32xf32>
    %c0_5 = arith.constant 0 : index
    %c0_6 = arith.constant 0 : index
    %7 = vector.load %arg3[%c0_5, %c0_6] : memref<80x1xf32, #tpu.memory_space<vmem>>, vector<80x1xf32>
    %8 = vector.broadcast %7 : vector<80x1xf32> to vector<80x32xf32>
    %9 = arith.mulf %6, %8 : vector<80x32xf32>
    %10 = arith.truncf %9 : vector<80x32xf32> to vector<80x32xbf16>
    %c0_7 = arith.constant 0 : index
    %c0_8 = arith.constant 0 : index
    %11 = vector.load %arg9[%c0_7, %c0_8] : memref<80x32xbf16, #tpu.memory_space<vmem>>, vector<80x32xbf16>
    tpu.vector_store %arg9[%c0_7, %c0_8], %10 {strides = array<i32>} : memref<80x32xbf16, #tpu.memory_space<vmem>>, vector<80x32xbf16>,
    %c0_9 = arith.constant 0 : index
    %c0_10 = arith.constant 0 : index
    %12 = vector.load %arg2[%c0_9, %c0_10] : memref<80x32xf32, #tpu.memory_space<vmem>>, vector<80x32xf32>
    %13 = arith.addf %0, %12 : vector<80x32xf32>
    %14 = arith.truncf %13 : vector<80x32xf32> to vector<80x32xbf16>
    %c0_11 = arith.constant 0 : index
    %c0_12 = arith.constant 0 : index
    %15 = vector.load %arg6[%c0_11, %c0_12] : memref<32x48xbf16, #tpu.memory_space<vmem>>, vector<32x48xbf16>
    %cst_13 = arith.constant dense<0.000000e+00> : vector<80x48xf32>
    %16 = tpu.matmul %14, %15, %cst_13 {dimension_numbers = #tpu.dot_dimension_numbers<[1], [0], [0], [1], [0, 0, 1, 1], [], []>} : vector<80x32xbf16>, vector<32x48xbf16>, vector<80x48xf32> -> vector<80x48xf32>
    %c0_14 = arith.constant 0 : index
    %c0_15 = arith.constant 0 : index
    %17 = vector.load %arg7[%c0_14, %c0_15] : memref<1x48xf32, #tpu.memory_space<vmem>>, vector<1x48xf32>
    %18 = vector.broadcast %17 : vector<1x48xf32> to vector<80x48xf32>
    %19 = arith.addf %16, %18 : vector<80x48xf32>
    %20 = vector.extract_strided_slice %19 {offsets = [0, 0], sizes = [80, 32], strides = [1, 1]} : vector<80x48xf32> to vector<80x32xf32>
    %c0_16 = arith.constant 0 : index
    %c0_17 = arith.constant 0 : index
    %21 = vector.load %arg10[%c0_16, %c0_17] : memref<80x32xf32, #tpu.memory_space<vmem>>, vector<80x32xf32>
    tpu.vector_store %arg10[%c0_16, %c0_17], %20 {strides = array<i32>} : memref<80x32xf32, #tpu.memory_space<vmem>>, vector<80x32xf32>,
    %22 = vector.extract_strided_slice %19 {offsets = [0, 32], sizes = [80, 16], strides = [1, 1]} : vector<80x48xf32> to vector<80x16xf32>
    %cst_18 = arith.constant dense<0xFF800000> : vector<80xf32>
    %23 = vector.multi_reduction <maximumf>, %22, %cst_18 [1] : vector<80x16xf32> to vector<80xf32>
    %24 = vector.shape_cast %23 : vector<80xf32> to vector<80x1xf32>
    %25 = vector.broadcast %24 : vector<80x1xf32> to vector<80x16xf32>
    %26 = arith.subf %22, %25 : vector<80x16xf32>
    %27 = math.exp %26 : vector<80x16xf32>
    %c0_19 = arith.constant 0 : index
    %c0_20 = arith.constant 0 : index
    %28 = vector.load %arg8[%c0_19, %c0_20] : memref<16x16xf32, #tpu.memory_space<vmem>>, vector<16x16xf32>
    %cst_21 = arith.constant dense<0.000000e+00> : vector<80x16xf32>
    %29 = tpu.matmul %27, %28, %cst_21 {dimension_numbers = #tpu.dot_dimension_numbers<[1], [0], [0], [1], [0, 0, 1, 1], [], []>} : vector<80x16xf32>, vector<16x16xf32>, vector<80x16xf32> -> vector<80x16xf32>
    %30 = tpu.reciprocal %29 {approx = true} : vector<80x16xf32> -> vector<80x16xf32>
    %31 = arith.mulf %27, %30 : vector<80x16xf32>
    %c0_22 = arith.constant 0 : index
    %c0_23 = arith.constant 0 : index
    %32 = vector.load %arg11[%c0_22, %c0_23] : memref<80x16xf32, #tpu.memory_space<vmem>>, vector<80x16xf32>
    tpu.vector_store %arg11[%c0_22, %c0_23], %31 {strides = array<i32>} : memref<80x16xf32, #tpu.memory_space<vmem>>, vector<80x16xf32>,
    return
  }
  func.func @transform_0(%arg0: i32) -> (i32, i32) {
    %c0_i32 = arith.constant 0 : i32
    %c0_i32_0 = arith.constant 0 : i32
    return %arg0, %c0_i32 : i32, i32
  }
  func.func @transform_1(%arg0: i32) -> (i32, i32) {
    %c0_i32 = arith.constant 0 : i32
    %c0_i32_0 = arith.constant 0 : i32
    return %arg0, %c0_i32 : i32, i32
  }
  func.func @transform_2(%arg0: i32) -> (i32, i32) {
    %c0_i32 = arith.constant 0 : i32
    %c0_i32_0 = arith.constant 0 : i32
    return %arg0, %c0_i32 : i32, i32
  }
  func.func @transform_3(%arg0: i32) -> (i32, i32) {
    %c0_i32 = arith.constant 0 : i32
    %c0_i32_0 = arith.constant 0 : i32
    %c0_i32_1 = arith.constant 0 : i32
    return %c0_i32, %c0_i32_0 : i32, i32
  }
  func.func @transform_4(%arg0: i32) -> (i32, i32) {
    %c0_i32 = arith.constant 0 : i32
    %c0_i32_0 = arith.constant 0 : i32
    %c0_i32_1 = arith.constant 0 : i32
    return %c0_i32, %c0_i32_0 : i32, i32
  }
  func.func @transform_5(%arg0: i32) -> (i32, i32) {
    %c0_i32 = arith.constant 0 : i32
    %c0_i32_0 = arith.constant 0 : i32
    %c0_i32_1 = arith.constant 0 : i32
    return %c0_i32, %c0_i32_0 : i32, i32
  }
  func.func @transform_6(%arg0: i32) -> (i32, i32) {
    %c0_i32 = arith.constant 0 : i32
    %c0_i32_0 = arith.constant 0 : i32
    %c0_i32_1 = arith.constant 0 : i32
    return %c0_i32, %c0_i32_0 : i32, i32
  }
  func.func @transform_7(%arg0: i32) -> (i32, i32) {
    %c0_i32 = arith.constant 0 : i32
    %c0_i32_0 = arith.constant 0 : i32
    %c0_i32_1 = arith.constant 0 : i32
    return %c0_i32, %c0_i32_0 : i32, i32
  }
  func.func @transform_8(%arg0: i32) -> (i32, i32) {
    %c0_i32 = arith.constant 0 : i32
    %c0_i32_0 = arith.constant 0 : i32
    return %arg0, %c0_i32 : i32, i32
  }
  func.func @transform_9(%arg0: i32) -> (i32, i32) {
    %c0_i32 = arith.constant 0 : i32
    %c0_i32_0 = arith.constant 0 : i32
    return %arg0, %c0_i32 : i32, i32
  }
  func.func @transform_10(%arg0: i32) -> (i32, i32) {
    %c0_i32 = arith.constant 0 : i32
    %c0_i32_0 = arith.constant 0 : i32
    return %arg0, %c0_i32 : i32, i32
  }
}

module attributes {stable_mosaic.version = 11 : i64} {
  func.func @_outproj_ln_kernel(%arg0: i32, %arg1: memref<80x32xf32, #tpu.memory_space<vmem>>, %arg2: memref<80x32xf32, #tpu.memory_space<vmem>>, %arg3: memref<32x32xbf16, #tpu.memory_space<vmem>>, %arg4: memref<1x32xf32, #tpu.memory_space<vmem>>, %arg5: memref<1x32xf32, #tpu.memory_space<vmem>>, %arg6: memref<1x32xf32, #tpu.memory_space<vmem>>, %arg7: memref<80x32xf32, #tpu.memory_space<vmem>>) attributes {dimension_semantics = [#tpu.dimension_semantics<parallel>], iteration_bounds = array<i64: 2>, scalar_prefetch = 0 : i64, scratch_operands = 0 : i64, tpu.core_type = #tpu.core_type<tc>, window_params = [{transform_indices = @transform_0, window_bounds = array<i64: 80, 32>}, {transform_indices = @transform_1, window_bounds = array<i64: 80, 32>}, {pipeline_mode = #tpu.pipeline_mode<synchronous>, transform_indices = @transform_2, window_bounds = array<i64: 32, 32>}, {pipeline_mode = #tpu.pipeline_mode<synchronous>, transform_indices = @transform_3, window_bounds = array<i64: 1, 32>}, {pipeline_mode = #tpu.pipeline_mode<synchronous>, transform_indices = @transform_4, window_bounds = array<i64: 1, 32>}, {pipeline_mode = #tpu.pipeline_mode<synchronous>, transform_indices = @transform_5, window_bounds = array<i64: 1, 32>}, {transform_indices = @transform_6, window_bounds = array<i64: 80, 32>}]} {
    %c0 = arith.constant 0 : index
    %c0_0 = arith.constant 0 : index
    %0 = vector.load %arg1[%c0, %c0_0] : memref<80x32xf32, #tpu.memory_space<vmem>>, vector<80x32xf32>
    %1 = arith.truncf %0 : vector<80x32xf32> to vector<80x32xbf16>
    %c0_1 = arith.constant 0 : index
    %c0_2 = arith.constant 0 : index
    %2 = vector.load %arg3[%c0_1, %c0_2] : memref<32x32xbf16, #tpu.memory_space<vmem>>, vector<32x32xbf16>
    %cst = arith.constant dense<0.000000e+00> : vector<80x32xf32>
    %3 = tpu.matmul %1, %2, %cst {dimension_numbers = #tpu.dot_dimension_numbers<[1], [0], [0], [1], [0, 0, 1, 1], [], []>} : vector<80x32xbf16>, vector<32x32xbf16>, vector<80x32xf32> -> vector<80x32xf32>
    %c0_3 = arith.constant 0 : index
    %c0_4 = arith.constant 0 : index
    %4 = vector.load %arg4[%c0_3, %c0_4] : memref<1x32xf32, #tpu.memory_space<vmem>>, vector<1x32xf32>
    %5 = vector.broadcast %4 : vector<1x32xf32> to vector<80x32xf32>
    %6 = arith.addf %3, %5 : vector<80x32xf32>
    %c0_5 = arith.constant 0 : index
    %c0_6 = arith.constant 0 : index
    %7 = vector.load %arg2[%c0_5, %c0_6] : memref<80x32xf32, #tpu.memory_space<vmem>>, vector<80x32xf32>
    %8 = arith.addf %7, %6 : vector<80x32xf32>
    %cst_7 = arith.constant dense<0.000000e+00> : vector<80xf32>
    %9 = vector.multi_reduction <add>, %8, %cst_7 [1] : vector<80x32xf32> to vector<80xf32>
    %10 = vector.shape_cast %9 : vector<80xf32> to vector<80x1xf32>
    %cst_8 = arith.constant 3.200000e+01 : f32
    %11 = vector.broadcast %cst_8 : f32 to vector<80x1xf32>
    %12 = arith.divf %10, %11 : vector<80x1xf32>
    %13 = vector.broadcast %12 : vector<80x1xf32> to vector<80x32xf32>
    %14 = arith.subf %8, %13 : vector<80x32xf32>
    %15 = arith.mulf %14, %14 : vector<80x32xf32>
    %cst_9 = arith.constant dense<0.000000e+00> : vector<80xf32>
    %16 = vector.multi_reduction <add>, %15, %cst_9 [1] : vector<80x32xf32> to vector<80xf32>
    %17 = vector.shape_cast %16 : vector<80xf32> to vector<80x1xf32>
    %cst_10 = arith.constant 3.200000e+01 : f32
    %18 = vector.broadcast %cst_10 : f32 to vector<80x1xf32>
    %19 = arith.divf %17, %18 : vector<80x1xf32>
    %20 = vector.broadcast %12 : vector<80x1xf32> to vector<80x32xf32>
    %21 = arith.subf %8, %20 : vector<80x32xf32>
    %cst_11 = arith.constant 9.99999974E-6 : f32
    %22 = vector.broadcast %cst_11 : f32 to vector<80x1xf32>
    %23 = arith.addf %19, %22 : vector<80x1xf32>
    %24 = math.rsqrt %23 : vector<80x1xf32>
    %25 = vector.broadcast %24 : vector<80x1xf32> to vector<80x32xf32>
    %26 = arith.mulf %21, %25 : vector<80x32xf32>
    %c0_12 = arith.constant 0 : index
    %c0_13 = arith.constant 0 : index
    %27 = vector.load %arg5[%c0_12, %c0_13] : memref<1x32xf32, #tpu.memory_space<vmem>>, vector<1x32xf32>
    %28 = vector.broadcast %27 : vector<1x32xf32> to vector<80x32xf32>
    %29 = arith.mulf %26, %28 : vector<80x32xf32>
    %c0_14 = arith.constant 0 : index
    %c0_15 = arith.constant 0 : index
    %30 = vector.load %arg6[%c0_14, %c0_15] : memref<1x32xf32, #tpu.memory_space<vmem>>, vector<1x32xf32>
    %31 = vector.broadcast %30 : vector<1x32xf32> to vector<80x32xf32>
    %32 = arith.addf %29, %31 : vector<80x32xf32>
    %c0_16 = arith.constant 0 : index
    %c0_17 = arith.constant 0 : index
    %33 = vector.load %arg7[%c0_16, %c0_17] : memref<80x32xf32, #tpu.memory_space<vmem>>, vector<80x32xf32>
    tpu.vector_store %arg7[%c0_16, %c0_17], %32 {strides = array<i32>} : memref<80x32xf32, #tpu.memory_space<vmem>>, vector<80x32xf32>,
    return
  }
  func.func @transform_0(%arg0: i32) -> (i32, i32) {
    %c0_i32 = arith.constant 0 : i32
    %c0_i32_0 = arith.constant 0 : i32
    return %arg0, %c0_i32 : i32, i32
  }
  func.func @transform_1(%arg0: i32) -> (i32, i32) {
    %c0_i32 = arith.constant 0 : i32
    %c0_i32_0 = arith.constant 0 : i32
    return %arg0, %c0_i32 : i32, i32
  }
  func.func @transform_2(%arg0: i32) -> (i32, i32) {
    %c0_i32 = arith.constant 0 : i32
    %c0_i32_0 = arith.constant 0 : i32
    %c0_i32_1 = arith.constant 0 : i32
    return %c0_i32, %c0_i32_0 : i32, i32
  }
  func.func @transform_3(%arg0: i32) -> (i32, i32) {
    %c0_i32 = arith.constant 0 : i32
    %c0_i32_0 = arith.constant 0 : i32
    %c0_i32_1 = arith.constant 0 : i32
    return %c0_i32, %c0_i32_0 : i32, i32
  }
  func.func @transform_4(%arg0: i32) -> (i32, i32) {
    %c0_i32 = arith.constant 0 : i32
    %c0_i32_0 = arith.constant 0 : i32
    %c0_i32_1 = arith.constant 0 : i32
    return %c0_i32, %c0_i32_0 : i32, i32
  }
  func.func @transform_5(%arg0: i32) -> (i32, i32) {
    %c0_i32 = arith.constant 0 : i32
    %c0_i32_0 = arith.constant 0 : i32
    %c0_i32_1 = arith.constant 0 : i32
    return %c0_i32, %c0_i32_0 : i32, i32
  }
  func.func @transform_6(%arg0: i32) -> (i32, i32) {
    %c0_i32 = arith.constant 0 : i32
    %c0_i32_0 = arith.constant 0 : i32
    return %arg0, %c0_i32 : i32, i32
  }
}

module attributes {stable_mosaic.version = 11 : i64} {
  func.func @_fused_proj_kernel(%arg0: i32, %arg1: memref<80x32xf32, #tpu.memory_space<vmem>>, %arg2: memref<80x32xf32, #tpu.memory_space<vmem>>, %arg3: memref<80x1xf32, #tpu.memory_space<vmem>>, %arg4: memref<32x32xbf16, #tpu.memory_space<vmem>>, %arg5: memref<1x32xf32, #tpu.memory_space<vmem>>, %arg6: memref<32x48xbf16, #tpu.memory_space<vmem>>, %arg7: memref<1x48xf32, #tpu.memory_space<vmem>>, %arg8: memref<16x16xf32, #tpu.memory_space<vmem>>, %arg9: memref<80x32xbf16, #tpu.memory_space<vmem>>, %arg10: memref<80x32xf32, #tpu.memory_space<vmem>>, %arg11: memref<80x16xf32, #tpu.memory_space<vmem>>) attributes {dimension_semantics = [#tpu.dimension_semantics<parallel>], iteration_bounds = array<i64: 2>, scalar_prefetch = 0 : i64, scratch_operands = 0 : i64, tpu.core_type = #tpu.core_type<tc>, window_params = [{transform_indices = @transform_0, window_bounds = array<i64: 80, 32>}, {transform_indices = @transform_1, window_bounds = array<i64: 80, 32>}, {transform_indices = @transform_2, window_bounds = array<i64: 80, 1>}, {pipeline_mode = #tpu.pipeline_mode<synchronous>, transform_indices = @transform_3, window_bounds = array<i64: 32, 32>}, {pipeline_mode = #tpu.pipeline_mode<synchronous>, transform_indices = @transform_4, window_bounds = array<i64: 1, 32>}, {pipeline_mode = #tpu.pipeline_mode<synchronous>, transform_indices = @transform_5, window_bounds = array<i64: 32, 48>}, {pipeline_mode = #tpu.pipeline_mode<synchronous>, transform_indices = @transform_6, window_bounds = array<i64: 1, 48>}, {pipeline_mode = #tpu.pipeline_mode<synchronous>, transform_indices = @transform_7, window_bounds = array<i64: 16, 16>}, {transform_indices = @transform_8, window_bounds = array<i64: 80, 32>}, {transform_indices = @transform_9, window_bounds = array<i64: 80, 32>}, {transform_indices = @transform_10, window_bounds = array<i64: 80, 16>}]} {
    %c0 = arith.constant 0 : index
    %c0_0 = arith.constant 0 : index
    %0 = vector.load %arg1[%c0, %c0_0] : memref<80x32xf32, #tpu.memory_space<vmem>>, vector<80x32xf32>
    %1 = arith.truncf %0 : vector<80x32xf32> to vector<80x32xbf16>
    %c0_1 = arith.constant 0 : index
    %c0_2 = arith.constant 0 : index
    %2 = vector.load %arg4[%c0_1, %c0_2] : memref<32x32xbf16, #tpu.memory_space<vmem>>, vector<32x32xbf16>
    %cst = arith.constant dense<0.000000e+00> : vector<80x32xf32>
    %3 = tpu.matmul %1, %2, %cst {dimension_numbers = #tpu.dot_dimension_numbers<[1], [0], [0], [1], [0, 0, 1, 1], [], []>} : vector<80x32xbf16>, vector<32x32xbf16>, vector<80x32xf32> -> vector<80x32xf32>
    %c0_3 = arith.constant 0 : index
    %c0_4 = arith.constant 0 : index
    %4 = vector.load %arg5[%c0_3, %c0_4] : memref<1x32xf32, #tpu.memory_space<vmem>>, vector<1x32xf32>
    %5 = vector.broadcast %4 : vector<1x32xf32> to vector<80x32xf32>
    %6 = arith.addf %3, %5 : vector<80x32xf32>
    %c0_5 = arith.constant 0 : index
    %c0_6 = arith.constant 0 : index
    %7 = vector.load %arg3[%c0_5, %c0_6] : memref<80x1xf32, #tpu.memory_space<vmem>>, vector<80x1xf32>
    %8 = vector.broadcast %7 : vector<80x1xf32> to vector<80x32xf32>
    %9 = arith.mulf %6, %8 : vector<80x32xf32>
    %10 = arith.truncf %9 : vector<80x32xf32> to vector<80x32xbf16>
    %c0_7 = arith.constant 0 : index
    %c0_8 = arith.constant 0 : index
    %11 = vector.load %arg9[%c0_7, %c0_8] : memref<80x32xbf16, #tpu.memory_space<vmem>>, vector<80x32xbf16>
    tpu.vector_store %arg9[%c0_7, %c0_8], %10 {strides = array<i32>} : memref<80x32xbf16, #tpu.memory_space<vmem>>, vector<80x32xbf16>,
    %c0_9 = arith.constant 0 : index
    %c0_10 = arith.constant 0 : index
    %12 = vector.load %arg2[%c0_9, %c0_10] : memref<80x32xf32, #tpu.memory_space<vmem>>, vector<80x32xf32>
    %13 = arith.addf %0, %12 : vector<80x32xf32>
    %14 = arith.truncf %13 : vector<80x32xf32> to vector<80x32xbf16>
    %c0_11 = arith.constant 0 : index
    %c0_12 = arith.constant 0 : index
    %15 = vector.load %arg6[%c0_11, %c0_12] : memref<32x48xbf16, #tpu.memory_space<vmem>>, vector<32x48xbf16>
    %cst_13 = arith.constant dense<0.000000e+00> : vector<80x48xf32>
    %16 = tpu.matmul %14, %15, %cst_13 {dimension_numbers = #tpu.dot_dimension_numbers<[1], [0], [0], [1], [0, 0, 1, 1], [], []>} : vector<80x32xbf16>, vector<32x48xbf16>, vector<80x48xf32> -> vector<80x48xf32>
    %c0_14 = arith.constant 0 : index
    %c0_15 = arith.constant 0 : index
    %17 = vector.load %arg7[%c0_14, %c0_15] : memref<1x48xf32, #tpu.memory_space<vmem>>, vector<1x48xf32>
    %18 = vector.broadcast %17 : vector<1x48xf32> to vector<80x48xf32>
    %19 = arith.addf %16, %18 : vector<80x48xf32>
    %20 = vector.extract_strided_slice %19 {offsets = [0, 0], sizes = [80, 32], strides = [1, 1]} : vector<80x48xf32> to vector<80x32xf32>
    %c0_16 = arith.constant 0 : index
    %c0_17 = arith.constant 0 : index
    %21 = vector.load %arg10[%c0_16, %c0_17] : memref<80x32xf32, #tpu.memory_space<vmem>>, vector<80x32xf32>
    tpu.vector_store %arg10[%c0_16, %c0_17], %20 {strides = array<i32>} : memref<80x32xf32, #tpu.memory_space<vmem>>, vector<80x32xf32>,
    %22 = vector.extract_strided_slice %19 {offsets = [0, 32], sizes = [80, 16], strides = [1, 1]} : vector<80x48xf32> to vector<80x16xf32>
    %cst_18 = arith.constant dense<0xFF800000> : vector<80xf32>
    %23 = vector.multi_reduction <maximumf>, %22, %cst_18 [1] : vector<80x16xf32> to vector<80xf32>
    %24 = vector.shape_cast %23 : vector<80xf32> to vector<80x1xf32>
    %25 = vector.broadcast %24 : vector<80x1xf32> to vector<80x16xf32>
    %26 = arith.subf %22, %25 : vector<80x16xf32>
    %27 = math.exp %26 : vector<80x16xf32>
    %c0_19 = arith.constant 0 : index
    %c0_20 = arith.constant 0 : index
    %28 = vector.load %arg8[%c0_19, %c0_20] : memref<16x16xf32, #tpu.memory_space<vmem>>, vector<16x16xf32>
    %cst_21 = arith.constant dense<0.000000e+00> : vector<80x16xf32>
    %29 = tpu.matmul %27, %28, %cst_21 {dimension_numbers = #tpu.dot_dimension_numbers<[1], [0], [0], [1], [0, 0, 1, 1], [], []>} : vector<80x16xf32>, vector<16x16xf32>, vector<80x16xf32> -> vector<80x16xf32>
    %30 = tpu.reciprocal %29 {approx = true} : vector<80x16xf32> -> vector<80x16xf32>
    %31 = arith.mulf %27, %30 : vector<80x16xf32>
    %c0_22 = arith.constant 0 : index
    %c0_23 = arith.constant 0 : index
    %32 = vector.load %arg11[%c0_22, %c0_23] : memref<80x16xf32, #tpu.memory_space<vmem>>, vector<80x16xf32>
    tpu.vector_store %arg11[%c0_22, %c0_23], %31 {strides = array<i32>} : memref<80x16xf32, #tpu.memory_space<vmem>>, vector<80x16xf32>,
    return
  }
  func.func @transform_0(%arg0: i32) -> (i32, i32) {
    %c0_i32 = arith.constant 0 : i32
    %c0_i32_0 = arith.constant 0 : i32
    return %arg0, %c0_i32 : i32, i32
  }
  func.func @transform_1(%arg0: i32) -> (i32, i32) {
    %c0_i32 = arith.constant 0 : i32
    %c0_i32_0 = arith.constant 0 : i32
    return %arg0, %c0_i32 : i32, i32
  }
  func.func @transform_2(%arg0: i32) -> (i32, i32) {
    %c0_i32 = arith.constant 0 : i32
    %c0_i32_0 = arith.constant 0 : i32
    return %arg0, %c0_i32 : i32, i32
  }
  func.func @transform_3(%arg0: i32) -> (i32, i32) {
    %c0_i32 = arith.constant 0 : i32
    %c0_i32_0 = arith.constant 0 : i32
    %c0_i32_1 = arith.constant 0 : i32
    return %c0_i32, %c0_i32_0 : i32, i32
  }
  func.func @transform_4(%arg0: i32) -> (i32, i32) {
    %c0_i32 = arith.constant 0 : i32
    %c0_i32_0 = arith.constant 0 : i32
    %c0_i32_1 = arith.constant 0 : i32
    return %c0_i32, %c0_i32_0 : i32, i32
  }
  func.func @transform_5(%arg0: i32) -> (i32, i32) {
    %c0_i32 = arith.constant 0 : i32
    %c0_i32_0 = arith.constant 0 : i32
    %c0_i32_1 = arith.constant 0 : i32
    return %c0_i32, %c0_i32_0 : i32, i32
  }
  func.func @transform_6(%arg0: i32) -> (i32, i32) {
    %c0_i32 = arith.constant 0 : i32
    %c0_i32_0 = arith.constant 0 : i32
    %c0_i32_1 = arith.constant 0 : i32
    return %c0_i32, %c0_i32_0 : i32, i32
  }
  func.func @transform_7(%arg0: i32) -> (i32, i32) {
    %c0_i32 = arith.constant 0 : i32
    %c0_i32_0 = arith.constant 0 : i32
    %c0_i32_1 = arith.constant 0 : i32
    return %c0_i32, %c0_i32_0 : i32, i32
  }
  func.func @transform_8(%arg0: i32) -> (i32, i32) {
    %c0_i32 = arith.constant 0 : i32
    %c0_i32_0 = arith.constant 0 : i32
    return %arg0, %c0_i32 : i32, i32
  }
  func.func @transform_9(%arg0: i32) -> (i32, i32) {
    %c0_i32 = arith.constant 0 : i32
    %c0_i32_0 = arith.constant 0 : i32
    return %arg0, %c0_i32 : i32, i32
  }
  func.func @transform_10(%arg0: i32) -> (i32, i32) {
    %c0_i32 = arith.constant 0 : i32
    %c0_i32_0 = arith.constant 0 : i32
    return %arg0, %c0_i32 : i32, i32
  }
}

module attributes {stable_mosaic.version = 11 : i64} {
  func.func @_ffn_kernel(%arg0: i32, %arg1: memref<80x32xf32, #tpu.memory_space<vmem>>, %arg2: memref<32x64xbf16, #tpu.memory_space<vmem>>, %arg3: memref<1x64xf32, #tpu.memory_space<vmem>>, %arg4: memref<64x32xbf16, #tpu.memory_space<vmem>>, %arg5: memref<1x32xf32, #tpu.memory_space<vmem>>, %arg6: memref<1x32xf32, #tpu.memory_space<vmem>>, %arg7: memref<1x32xf32, #tpu.memory_space<vmem>>, %arg8: memref<80x32xf32, #tpu.memory_space<vmem>>) attributes {dimension_semantics = [#tpu.dimension_semantics<parallel>], iteration_bounds = array<i64: 2>, scalar_prefetch = 0 : i64, scratch_operands = 0 : i64, tpu.core_type = #tpu.core_type<tc>, window_params = [{transform_indices = @transform_0, window_bounds = array<i64: 80, 32>}, {pipeline_mode = #tpu.pipeline_mode<synchronous>, transform_indices = @transform_1, window_bounds = array<i64: 32, 64>}, {pipeline_mode = #tpu.pipeline_mode<synchronous>, transform_indices = @transform_2, window_bounds = array<i64: 1, 64>}, {pipeline_mode = #tpu.pipeline_mode<synchronous>, transform_indices = @transform_3, window_bounds = array<i64: 64, 32>}, {pipeline_mode = #tpu.pipeline_mode<synchronous>, transform_indices = @transform_4, window_bounds = array<i64: 1, 32>}, {pipeline_mode = #tpu.pipeline_mode<synchronous>, transform_indices = @transform_5, window_bounds = array<i64: 1, 32>}, {pipeline_mode = #tpu.pipeline_mode<synchronous>, transform_indices = @transform_6, window_bounds = array<i64: 1, 32>}, {transform_indices = @transform_7, window_bounds = array<i64: 80, 32>}]} {
    %c0 = arith.constant 0 : index
    %c0_0 = arith.constant 0 : index
    %0 = vector.load %arg1[%c0, %c0_0] : memref<80x32xf32, #tpu.memory_space<vmem>>, vector<80x32xf32>
    %1 = arith.truncf %0 : vector<80x32xf32> to vector<80x32xbf16>
    %c0_1 = arith.constant 0 : index
    %c0_2 = arith.constant 0 : index
    %2 = vector.load %arg2[%c0_1, %c0_2] : memref<32x64xbf16, #tpu.memory_space<vmem>>, vector<32x64xbf16>
    %cst = arith.constant dense<0.000000e+00> : vector<80x64xf32>
    %3 = tpu.matmul %1, %2, %cst {dimension_numbers = #tpu.dot_dimension_numbers<[1], [0], [0], [1], [0, 0, 1, 1], [], []>} : vector<80x32xbf16>, vector<32x64xbf16>, vector<80x64xf32> -> vector<80x64xf32>
    %c0_3 = arith.constant 0 : index
    %c0_4 = arith.constant 0 : index
    %4 = vector.load %arg3[%c0_3, %c0_4] : memref<1x64xf32, #tpu.memory_space<vmem>>, vector<1x64xf32>
    %5 = vector.broadcast %4 : vector<1x64xf32> to vector<80x64xf32>
    %6 = arith.addf %3, %5 : vector<80x64xf32>
    %cst_5 = arith.constant 0.000000e+00 : f32
    %7 = vector.broadcast %cst_5 : f32 to vector<80x64xf32>
    %8 = arith.maximumf %6, %7 : vector<80x64xf32>
    %9 = arith.truncf %8 : vector<80x64xf32> to vector<80x64xbf16>
    %c0_6 = arith.constant 0 : index
    %c0_7 = arith.constant 0 : index
    %10 = vector.load %arg4[%c0_6, %c0_7] : memref<64x32xbf16, #tpu.memory_space<vmem>>, vector<64x32xbf16>
    %cst_8 = arith.constant dense<0.000000e+00> : vector<80x32xf32>
    %11 = tpu.matmul %9, %10, %cst_8 {dimension_numbers = #tpu.dot_dimension_numbers<[1], [0], [0], [1], [0, 0, 1, 1], [], []>} : vector<80x64xbf16>, vector<64x32xbf16>, vector<80x32xf32> -> vector<80x32xf32>
    %c0_9 = arith.constant 0 : index
    %c0_10 = arith.constant 0 : index
    %12 = vector.load %arg5[%c0_9, %c0_10] : memref<1x32xf32, #tpu.memory_space<vmem>>, vector<1x32xf32>
    %13 = vector.broadcast %12 : vector<1x32xf32> to vector<80x32xf32>
    %14 = arith.addf %11, %13 : vector<80x32xf32>
    %15 = arith.addf %0, %14 : vector<80x32xf32>
    %cst_11 = arith.constant dense<0.000000e+00> : vector<80xf32>
    %16 = vector.multi_reduction <add>, %15, %cst_11 [1] : vector<80x32xf32> to vector<80xf32>
    %17 = vector.shape_cast %16 : vector<80xf32> to vector<80x1xf32>
    %cst_12 = arith.constant 3.200000e+01 : f32
    %18 = vector.broadcast %cst_12 : f32 to vector<80x1xf32>
    %19 = arith.divf %17, %18 : vector<80x1xf32>
    %20 = vector.broadcast %19 : vector<80x1xf32> to vector<80x32xf32>
    %21 = arith.subf %15, %20 : vector<80x32xf32>
    %22 = arith.mulf %21, %21 : vector<80x32xf32>
    %cst_13 = arith.constant dense<0.000000e+00> : vector<80xf32>
    %23 = vector.multi_reduction <add>, %22, %cst_13 [1] : vector<80x32xf32> to vector<80xf32>
    %24 = vector.shape_cast %23 : vector<80xf32> to vector<80x1xf32>
    %cst_14 = arith.constant 3.200000e+01 : f32
    %25 = vector.broadcast %cst_14 : f32 to vector<80x1xf32>
    %26 = arith.divf %24, %25 : vector<80x1xf32>
    %27 = vector.broadcast %19 : vector<80x1xf32> to vector<80x32xf32>
    %28 = arith.subf %15, %27 : vector<80x32xf32>
    %cst_15 = arith.constant 9.99999974E-6 : f32
    %29 = vector.broadcast %cst_15 : f32 to vector<80x1xf32>
    %30 = arith.addf %26, %29 : vector<80x1xf32>
    %31 = math.rsqrt %30 : vector<80x1xf32>
    %32 = vector.broadcast %31 : vector<80x1xf32> to vector<80x32xf32>
    %33 = arith.mulf %28, %32 : vector<80x32xf32>
    %c0_16 = arith.constant 0 : index
    %c0_17 = arith.constant 0 : index
    %34 = vector.load %arg6[%c0_16, %c0_17] : memref<1x32xf32, #tpu.memory_space<vmem>>, vector<1x32xf32>
    %35 = vector.broadcast %34 : vector<1x32xf32> to vector<80x32xf32>
    %36 = arith.mulf %33, %35 : vector<80x32xf32>
    %c0_18 = arith.constant 0 : index
    %c0_19 = arith.constant 0 : index
    %37 = vector.load %arg7[%c0_18, %c0_19] : memref<1x32xf32, #tpu.memory_space<vmem>>, vector<1x32xf32>
    %38 = vector.broadcast %37 : vector<1x32xf32> to vector<80x32xf32>
    %39 = arith.addf %36, %38 : vector<80x32xf32>
    %c0_20 = arith.constant 0 : index
    %c0_21 = arith.constant 0 : index
    %40 = vector.load %arg8[%c0_20, %c0_21] : memref<80x32xf32, #tpu.memory_space<vmem>>, vector<80x32xf32>
    tpu.vector_store %arg8[%c0_20, %c0_21], %39 {strides = array<i32>} : memref<80x32xf32, #tpu.memory_space<vmem>>, vector<80x32xf32>,
    return
  }
  func.func @transform_0(%arg0: i32) -> (i32, i32) {
    %c0_i32 = arith.constant 0 : i32
    %c0_i32_0 = arith.constant 0 : i32
    return %arg0, %c0_i32 : i32, i32
  }
  func.func @transform_1(%arg0: i32) -> (i32, i32) {
    %c0_i32 = arith.constant 0 : i32
    %c0_i32_0 = arith.constant 0 : i32
    %c0_i32_1 = arith.constant 0 : i32
    return %c0_i32, %c0_i32_0 : i32, i32
  }
  func.func @transform_2(%arg0: i32) -> (i32, i32) {
    %c0_i32 = arith.constant 0 : i32
    %c0_i32_0 = arith.constant 0 : i32
    %c0_i32_1 = arith.constant 0 : i32
    return %c0_i32, %c0_i32_0 : i32, i32
  }
  func.func @transform_3(%arg0: i32) -> (i32, i32) {
    %c0_i32 = arith.constant 0 : i32
    %c0_i32_0 = arith.constant 0 : i32
    %c0_i32_1 = arith.constant 0 : i32
    return %c0_i32, %c0_i32_0 : i32, i32
  }
  func.func @transform_4(%arg0: i32) -> (i32, i32) {
    %c0_i32 = arith.constant 0 : i32
    %c0_i32_0 = arith.constant 0 : i32
    %c0_i32_1 = arith.constant 0 : i32
    return %c0_i32, %c0_i32_0 : i32, i32
  }
  func.func @transform_5(%arg0: i32) -> (i32, i32) {
    %c0_i32 = arith.constant 0 : i32
    %c0_i32_0 = arith.constant 0 : i32
    %c0_i32_1 = arith.constant 0 : i32
    return %c0_i32, %c0_i32_0 : i32, i32
  }
  func.func @transform_6(%arg0: i32) -> (i32, i32) {
    %c0_i32 = arith.constant 0 : i32
    %c0_i32_0 = arith.constant 0 : i32
    %c0_i32_1 = arith.constant 0 : i32
    return %c0_i32, %c0_i32_0 : i32, i32
  }
  func.func @transform_7(%arg0: i32) -> (i32, i32) {
    %c0_i32 = arith.constant 0 : i32
    %c0_i32_0 = arith.constant 0 : i32
    return %arg0, %c0_i32 : i32, i32
  }
}

</mosaic_0001>

<bundles_post_ra>
// kernel: run.6
= control target key start
LH: loop header
LB: loop body
LE: loop exit
PB: predicated region body
PF: predicated region fallthrough
CT: control target
= control target key end

     0   :  { %16 = vsyncpa [#allocation3], 0  ;;  %s2379_s0 = inlined_call_operand.vmem [shape: f32[160,32], index: 0, kind: input, shape index: {}]   ;;  %s2380_s1 = inlined_call_operand.vmem [shape: f32[160,32], index: 1, kind: input, shape index: {}]   ;;  %s2381_s2 = inlined_call_operand.vmem [shape: f32[160,1], index: 2, kind: input, shape index: {}]   ;;  %s2382_s3 = inlined_call_operand.hbm [shape: bf16[32,32], index: 3, kind: input, shape index: {}]   ;;  %s2383_s4 = inlined_call_operand.hbm [shape: f32[1,32], index: 4, kind: input, shape index: {}]   ;;  %s2384_s5 = inlined_call_operand.hbm [shape: bf16[32,48], index: 5, kind: input, shape index: {}]   ;;  %s2385_s6 = inlined_call_operand.hbm [shape: f32[1,48], index: 6, kind: input, shape index: {}]   ;;  %s2386_s7 = inlined_call_operand.vmem [shape: f32[16,16], index: 7, kind: input, shape index: {}]   ;;  %s2387_s8 = inlined_call_operand.vmem [shape: bf16[160,32], index: 8, kind: output, shape index: {0}]   ;;  %s2388_s9 = inlined_call_operand.vmem [shape: f32[160,32], index: 9, kind: output, shape index: {1}]   ;;  %s2389_s10 = inlined_call_operand.vmem [shape: f32[160,16], index: 10, kind: output, shape index: {2}]  }
   0x1   :  { %17 = vsyncpa [#allocation5], 0 }
   0x2   :  { %18 = vsyncpa [#allocation8], 0  ;;  %s1880_s13 = smov 0  }
   0x3 LB: > { %s1814_s14 = smov [#allocation4]   ;;  %s1412_s16 = sadd.s32 4294967295, %s1812_s13   ;;  %s1812_s13 = sphi %s1880_s13, %s24_s13  }
   0x4   : > { %s316_s15 = sshll.u32 %s1814_s14, 4  ;;  %p1414_p0 = scmp.ge.s32.totalorder %s1812_s13, 1  ;;  %s1894_s15 = int_to_ptr.vmem [resolvable:$true] %s316_s15 }
   0x5   : > { %p290_p1 = scmp.lt.s32.totalorder %s1812_s13, 3  ;;  %p1890_p2 = scmp.eq.s32.totalorder %s1412_s16, 0 }
   0x6   : > { %s1815_s19 = smov [#allocation2]   ;;  %s1816_s22 = smov [#allocation6]  }
   0x7   : > { %s2393_s17 = scalar_select %p1890_p2, 1, 0 }
   0x8   : > { %p1896_p3 = pnand %p1414_p0, %p290_p1  ;;  %s302_s20 = sshll.u32 %s1815_s19, 4  ;;  %s1902_s20 = int_to_ptr.vmem [resolvable:$true] %s302_s20 }
   0x9   : > { %s326_s23 = sshll.u32 %s1816_s22, 4  ;;  %s1817_s24 = smov [#allocation7]   ;;  %s1910_s23 = int_to_ptr.vmem [resolvable:$true] %s326_s23 }
   0xa   : > { %s2394_s18 = scalar_select %p1896_p3, 1, 0 }
   0xb   : > { %p1596_p4 = pneg %p1896_p3  ;;  %s1912_s25 = sshll.u32 %s1817_s24, 4  ;;  %s341_s25 = int_to_ptr.vmem [resolvable:$true] %s1912_s25 }
   0xc   : > { %s1682_s28 = scalar_lea.hbm %s2383_s4, 16 }
   0xd   : > { %p1906_p5 = pnand %p1890_p2, %p1596_p4  ;;  %p1683_p6 = scmp.ne.s32.totalorder %s2383_s4, %s1682_s28 }
   0xe   : > { %p1689_p10 = scmp.lt.u32.totalorder %s1682_s28, %s2383_s4 }
   0xf   : > { %p1922_p7 = pneg %p1906_p5 }
  0x11   : > { %p1685_p8 = pnand %p1922_p7, %p1683_p6 }
  0x13   : > { %p1686_p9 = pneg %p1685_p8 }
  0x15   : > { %p1691_p11 = pnand %p1689_p10, %p1686_p9 }
  0x17   : > { %1694 = shalt.err (!%p1691_p11)
}
  0x18   : > { %s1695_s19 = scalar_lea.vmem %s1894_s15, 16  ;;  %s1702_s22 = scalar_lea.vmem %s1894_s15, 32 }
  0x19   : > { %p1696_p12 = scmp.ne.s32.totalorder %s1894_s15, %s1695_s19  ;;  %p1703_p1 = scmp.lt.s32.totalorder %s1894_s15, %s1894_s15 }
  0x1a   : > { %p1704_p4 = scmp.lt.s32.totalorder %s1702_s22, %s1695_s19 }
  0x1b   : > { %p1698_p13 = pnand %p1696_p12, %p1922_p7 }
  0x1c   : > { %p1705_p6 = por %p1704_p4, %p1703_p1 }
  0x1d   : > { %p1699_p0 = pneg %p1698_p13 }
  0x1f   : > { %p1706_p8 = pnand %p1705_p6, %p1699_p0 }
  0x21   : > { %1709 = shalt.err (!%p1706_p8)
}
  0x22   : > { %1602 = dma.hbm_to_vmem [thread:$0]  (!%p1906_p5), %s2383_s4, 16, %s1894_s15, [#allocation5]  }
  0x23   : > { %s1710_s29 = scalar_lea.hbm %s2382_s3, 256 }
  0x24   : > { %p1711_p9 = scmp.ne.s32.totalorder %s2382_s3, %s1710_s29  ;;  %p1717_p12 = scmp.lt.u32.totalorder %s1710_s29, %s2382_s3 }
  0x26   : > { %p1713_p10 = pnand %p1711_p9, %p1922_p7 }
  0x28   : > { %p1714_p11 = pneg %p1713_p10 }
  0x2a   : > { %p1719_p13 = pnand %p1717_p12, %p1714_p11 }
  0x2c   : > { %1722 = shalt.err (!%p1719_p13)
}
  0x2d   : > { %s1723_s15 = scalar_lea.vmem %s1902_s20, 256  ;;  %p1731_p6 = scmp.lt.s32.totalorder %s1902_s20, %s1902_s20 }
  0x2e   : > { %p1724_p0 = scmp.ne.s32.totalorder %s1902_s20, %s1723_s15  ;;  %p1732_p8 = scmp.lt.s32.totalorder %s1723_s15, %s1723_s15 }
  0x30   : > { %p1726_p1 = pnand %p1724_p0, %p1922_p7  ;;  %p1733_p9 = por %p1732_p8, %p1731_p6 }
  0x32   : > { %p1727_p4 = pneg %p1726_p1 }
  0x34   : > { %p1734_p10 = pnand %p1733_p9, %p1727_p4 }
  0x36   : > { %1737 = shalt.err (!%p1734_p10)
}
  0x37   : > { %s1818_s22 = smov 64   ;;  %s1819_s24 = smov 4  }
  0x38   : > { %1599 = dma.hbm_to_vmem [thread:$0]  (!%p1906_p5), %s2382_s3, 256, %s1902_s20, [#allocation3], %s1818_s22, %s1818_s22, %s1819_s24  }
  0x39   : > { %s1738_s30 = scalar_lea.hbm %s2384_s5, 256 }
  0x3a   : > { %p1739_p11 = scmp.ne.s32.totalorder %s2384_s5, %s1738_s30  ;;  %p1745_p0 = scmp.lt.u32.totalorder %s1738_s30, %s2384_s5 }
  0x3c   : > { %p1741_p12 = pnand %p1739_p11, %p1922_p7 }
  0x3e   : > { %p1742_p13 = pneg %p1741_p12 }
  0x40   : > { %p1747_p1 = pnand %p1745_p0, %p1742_p13 }
  0x42   : > { %1750 = shalt.err (!%p1747_p1)
}
  0x43   : > { %s1751_s20 = scalar_lea.vmem %s1910_s23, 256  ;;  %p1759_p9 = scmp.lt.s32.totalorder %s1910_s23, %s1910_s23 }
  0x44   : > { %p1752_p4 = scmp.ne.s32.totalorder %s1910_s23, %s1751_s20  ;;  %p1760_p10 = scmp.lt.s32.totalorder %s1751_s20, %s1751_s20 }
  0x46   : > { %p1754_p6 = pnand %p1752_p4, %p1922_p7  ;;  %p1761_p11 = por %p1760_p10, %p1759_p9 }
  0x48   : > { %p1755_p8 = pneg %p1754_p6 }
  0x4a   : > { %p1762_p12 = pnand %p1761_p11, %p1755_p8 }
  0x4c   : > { %1765 = shalt.err (!%p1762_p12)
}
  0x4d   : > { %1605 = dma.hbm_to_vmem [thread:$0]  (!%p1906_p5), %s2384_s5, 256, %s1910_s23, [#allocation5], %s1818_s22, %s1818_s22, %s1819_s24  }
  0x4e   : > { %s1766_s30 = scalar_lea.hbm %s2385_s6, 16 }
  0x4f   : > { %p1767_p13 = scmp.ne.s32.totalorder %s2385_s6, %s1766_s30  ;;  %p1773_p4 = scmp.lt.u32.totalorder %s1766_s30, %s2385_s6 }
  0x51   : > { %p1769_p0 = pnand %p1767_p13, %p1922_p7 }
  0x53   : > { %p1770_p1 = pneg %p1769_p0 }
  0x55   : > { %p1775_p6 = pnand %p1773_p4, %p1770_p1 }
  0x57   : > { %1778 = shalt.err (!%p1775_p6)
}
  0x58   : > { %s1779_s20 = scalar_lea.vmem %s341_s25, 16  ;;  %s1786_s23 = scalar_lea.vmem %s341_s25, 32 }
  0x59   : > { %p1780_p8 = scmp.ne.s32.totalorder %s341_s25, %s1779_s20  ;;  %p1787_p11 = scmp.lt.s32.totalorder %s341_s25, %s341_s25 }
  0x5a   : > { %p1788_p12 = scmp.lt.s32.totalorder %s1786_s23, %s1779_s20 }
  0x5b   : > { %p1782_p9 = pnand %p1780_p8, %p1922_p7 }
  0x5c   : > { %p1789_p2 = por %p1788_p12, %p1787_p11 }
  0x5d   : > { %p1783_p10 = pneg %p1782_p9 }
  0x5f   : > { %p1790_p3 = pnand %p1789_p2, %p1783_p10 }
  0x61   : > { %1793 = shalt.err (!%p1790_p3)
}
  0x62   : > { %1608 = dma.hbm_to_vmem [thread:$0]  (!%p1906_p5), %s2385_s6, 16, %s341_s25, [#allocation8]  }
  0x63   : > { %p2397_p13 = scmp.ne.s32.totalorder %s2394_s18, 0 }
  0x64   : > { %p2398_p0 = scmp.ne.s32.totalorder (!%p2397_p13), %s2393_s17, 0 }
  0x65   : > { %383 = sbr.rel (%p2397_p13) target bundleno = 1109 (0x455), region = 52 }
  0x6c   : > { %1799 = dma.done.wait (%p2398_p0), [#allocation3], 256  }
  0x6d   : > { %1801 = vsyncadd (%p2398_p0), [#allocation3], 4294967040 }
  0x6e   : > { %1803 = dma.done.wait (%p2398_p0), [#allocation5], 272  }
  0x6f   : > { %1805 = vsyncadd (%p2398_p0), [#allocation5], 4294967024 }
  0x70   : > { %1807 = dma.done.wait (%p2398_p0), [#allocation8], 16  }
  0x71   : > { %1809 = vsyncadd (%p2398_p0), [#allocation8], 4294967280  ;;  %s453_s18 = smul.u32 10, %s1412_s16  ;;  %v1820_v0 = vmov 0.0   ;;  %vm1821_vm0 = vmmov 0   ;;  %v1638_v1 = vld [vmem:[#allocation2] sm:$0xff]  }
  0x72   : > { %1576 = vmatprep.subr.bf16.mxu1 %v1820_v0  ;;  %1525 = vmatprep.mubr.msk.bf16.mxu1 %vm1821_vm0, %v1820_v0  ;;  %v1639_v2 = vld [vmem:[#allocation2 + $0x8] sm:$0xff]   ;;  %v1640_v6 = vld [vmem:[#allocation6] sm:$0xff]   ;;  %vm528_vm1 = vcmask 261120   ;;  %v1641_v13 = vld [vmem:[#allocation6 + $0x8] sm:$0xff]   ;;  %vm884_vm2 = vcmask 392448   ;;  %s1822_s20 = smov 96  }
  0x73   : > { %p454_p2 = scmp.lt.s32.totalorder %s453_s18, 19  ;;  %1505 = vmatprep.subr.bf16.mxu0 %v1820_v0  ;;  %1509 = vmatprep.mubr.msk.bf16.mxu0 %vm1821_vm0, %v1820_v0  ;;  %v1449_v45 = vld [vmem:[#allocation7] ss:$0 sm:$0xff]  ;;  %vm977_vm3 = vcmask 130048   ;;  %s1824_s23 = smov 32   ;;  %vm727_vm4 = vcmask 257024  }
  0x74   : > { %1578 = vmatpush3.bf16.msra.mxu1 %v1638_v1  ;;  %1506 = vmatpush3.bf16.msra.mxu0 %v1638_v1 }
  0x75   : > { %s2400_s18 = smov (!%p454_p2, %s453_s18), 19  ;;  %1577 = vmatprep.subr.bf16.mxu1 %v1820_v0  ;;  %1507 = vmatprep.subr.bf16.mxu0 %v1820_v0 }
  0x76   : > { %s2034_s17 = sshll.u32 %s2400_s18, 3  ;;  %s1428_s21 = sshll.u32 %s2400_s18, 2 }
  0x77   : > { %s2040_s25 = scalar_lea.vmem %s2379_s0, %s2034_s17  ;;  %s2049_s27 = scalar_lea.vmem %s2380_s1, %s2034_s17 }
  0x78   : > { %v498_v3 = vld [vmem:[%s2040_s25 + $0x40] sm:$0xff]  ;;  %v499_v4 = vld [vmem:[%s2040_s25 + $0x48] sm:$0xff]  ;;  %1579 = vmatpush3.bf16.msra.mxu1 %v1639_v2  ;;  %1508 = vmatpush3.bf16.msra.mxu0 %v1639_v2  ;;  %v2068_v15 = vld [vmem:[%s2040_s25 + $0x10] sm:$0xff]  ;;  %s2120_s30 = scalar_lea.vmem %s2388_s9, %s2034_s17  ;;  %s469_s16 = scalar_lea.vmem %s2381_s2, %s2034_s17 }
  0x79   : > { %v504_v5 = vpack.c.bf16 %v499_v4, %v498_v3  ;;  %v2053_v7 = vld [vmem:[%s2040_s25] sm:$0xff]  ;;  %v2056_v8 = vld [vmem:[%s2040_s25 + $0x8] sm:$0xff]  ;;  %1529 = vmatprep.subr.bf16.mxu1 %v1820_v0  ;;  %v2071_v16 = vld [vmem:[%s2040_s25 + $0x18] sm:$0xff]  ;;  %s2332_s26 = scalar_lea.vmem %s2387_s8, %s1428_s21  ;;  %s487_s28 = scalar_lea.vmem %s2389_s10, %s2034_s17 }
  0x7a   : > { %v738_v9 = vld [vmem:[%s2049_s27] sm:$0xff]  ;;  %v739_v10 = vld [vmem:[%s2049_s27 + $0x8] sm:$0xff]  ;;  %v740_v17 = vld [vmem:[%s2049_s27 + $0x10] sm:$0xff] }
  0x7b   : > { %1526 = vmatmul.mubr.msk.bf16.vlgmr.msra.gmra.mrb[0].mxu1 %vm528_vm1, %v504_v5  ;;  %v748_v11 = vadd.f32 %v738_v9, %v2053_v7  ;;  %v749_v12 = vadd.f32 %v739_v10, %v2056_v8  ;;  %v741_v18 = vld [vmem:[%s2049_s27 + $0x18] sm:$0xff]  ;;  %v750_v19 = vadd.f32 %v740_v17, %v2068_v15  ;;  %v2081_v22 = vld [vmem:[%s2040_s25 + $0x20] sm:$0xff]  ;;  %v2084_v23 = vld [vmem:[%s2040_s25 + $0x28] sm:$0xff] }
  0x7c   : > { %1530 = vmatpush3.bf16.msra.mxu1 %v1640_v6  ;;  %1533 = vmatprep.mubr.msk.bf16.mxu1 %vm1821_vm0, %v1820_v0  ;;  %v751_v20 = vadd.f32 %v741_v18, %v2071_v16  ;;  %v742_v24 = vld [vmem:[%s2049_s27 + $0x20] sm:$0xff]  ;;  %v743_v25 = vld [vmem:[%s2049_s27 + $0x28] sm:$0xff]  ;;  %v2094_v29 = vld [vmem:[%s2040_s25 + $0x30] sm:$0xff] }
  0x7d   : > { %1531 = vmatprep.subr.bf16.mxu1 %v1820_v0  ;;  %v758_v14 = vpack.c.bf16 %v749_v12, %v748_v11  ;;  %v752_v26 = vadd.f32 %v742_v24, %v2081_v22  ;;  %v753_v27 = vadd.f32 %v743_v25, %v2084_v23  ;;  %v2097_v30 = vld [vmem:[%s2040_s25 + $0x38] sm:$0xff]  ;;  %v744_v31 = vld [vmem:[%s2049_s27 + $0x30] sm:$0xff]  ;;  %v746_v36 = vld [vmem:[%s2049_s27 + $0x40] sm:$0xff] }
  0x7e   : > { %v759_v21 = vpack.c.bf16 %v751_v20, %v750_v19  ;;  %v745_v32 = vld [vmem:[%s2049_s27 + $0x38] sm:$0xff]  ;;  %v754_v33 = vadd.f32 %v744_v31, %v2094_v29  ;;  %v747_v37 = vld [vmem:[%s2049_s27 + $0x48] sm:$0xff]  ;;  %v756_v38 = vadd.f32 %v746_v36, %v498_v3  ;;  %v500_v31 = vpack.c.bf16 %v2056_v8, %v2053_v7 }
  0x7f   : > { %v760_v28 = vpack.c.bf16 %v753_v27, %v752_v26  ;;  %v755_v34 = vadd.f32 %v745_v32, %v2097_v30  ;;  %v757_v39 = vadd.f32 %v747_v37, %v499_v4  ;;  %v945_v32 = vld [vmem:[%s2386_s7] sm:$0xff]  ;;  %v502_v7 = vpack.c.bf16 %v2084_v23, %v2081_v22 }
  0x80   : > { %1532 = vmatpush3.bf16.msra.mxu1 %v1641_v13  ;;  %1510 = vmatmul.mubr.msk.bf16.vlgmr.msra.gmra.mrb[0].mxu0 %vm528_vm1, %v500_v31  ;;  %v503_v8 = vpack.c.bf16 %v2097_v30, %v2094_v29 }
  0x81   : > { %v761_v35 = vpack.c.bf16 %v755_v34, %v754_v33  ;;  %v762_v40 = vpack.c.bf16 %v757_v39, %v756_v38  ;;  %v946_v33 = vld [vmem:[%s2386_s7 + $0x8] sm:$0xff]  ;;  %1513 = vmatprep.mubr.msk.bf16.mxu0 %vm1821_vm0, %v1820_v0 }
  0x82   : > { %v1572_v34 = vpack.c.bf16 %v946_v33, %v945_v32 }
  0x83   : > { %1534 = vmatmul.mubr.msk.bf16.vlgmr.msra.gmra.mrb[4].mxu1 %vm528_vm1, %v758_v14 }
  0x84   : > { %1537 = vmatprep.mubr.msk.bf16.mxu1 %vm1821_vm0, %v1820_v0  ;;  %1573 = vmatprep.subr.bf16.mxu0 %v1572_v34 }
  0x85   : > { %1575 = vmatpush3.bf16.msra.mxu0 %v1572_v34 }
  0x8b   : > { %1538 = vmatmul.mubr.msk.bf16.gmra.mrb[8].mxu1 %vm528_vm1, %v759_v21 }
  0x8c   : > { %1541 = vmatprep.mubr.msk.bf16.mxu1 %vm1821_vm0, %v1820_v0 }
  0x93   : > { %1542 = vmatmul.mubr.msk.bf16.gmra.mrb[12].mxu1 %vm528_vm1, %v760_v28 }
  0x94   : > { %1545 = vmatprep.mubr.msk.bf16.mxu1 %vm1821_vm0, %v1820_v0 }
  0x9b   : > { %1546 = vmatmul.mubr.msk.bf16.gmra.mrb[16].mxu1 %vm528_vm1, %v761_v35  ;;  %v501_v35 = vpack.c.bf16 %v2071_v16, %v2068_v15 }
  0x9c   : > { %1549 = vmatprep.mubr.msk.bf16.mxu1 %vm1821_vm0, %v1820_v0 }
  0x9d   : > { %1514 = vmatmul.mubr.msk.bf16.gmra.mrb[4].mxu0 %vm528_vm1, %v501_v35 }
  0x9e   : > { %1517 = vmatprep.mubr.msk.bf16.mxu0 %vm1821_vm0, %v1820_v0 }
  0xa3   : > { %1550 = vmatmul.mubr.msk.bf16.gmra.mrb[20].mxu1 %vm528_vm1, %v762_v40 }
  0xa5   : > { %1518 = vmatmul.mubr.msk.bf16.gmra.mrb[8].mxu0 %vm528_vm1, %v502_v7 }
  0xa6   : > { %1521 = vmatprep.mubr.msk.bf16.mxu0 %vm1821_vm0, %v1820_v0 }
  0xad   : > { %1522 = vmatmul.mubr.msk.bf16.gmra.mrb[12].mxu0 %vm528_vm1, %v503_v8 }
 0x14e   : > { %v2112_v41 = vpop.f32.mrb[0].mxu1 }
 0x14f   : > { %v1527_v42 = vpop.f32.mrb[1].mxu1 }
 0x150   : > { %v2114_v43 = vpop.f32.mrb[2].mxu1 }
 0x151   : > { %v1528_v44 = vpop.f32.mrb[3].mxu1 }
 0x156   : > { %v835_v46 = vpop.f32.mrb[4].mxu1 }
 0x157   : > { %v2122_v47 = vadd.f32 %v1449_v45, %v835_v46  ;;  %v1535_v48 = vpop.f32.mrb[5].mxu1 }
 0x158   : > { %v838_v49 = vpop.f32.mrb[6].mxu1 }
 0x159   : > { %874 = vst.msk [vmem:[%s2120_s30] sm:$0xff] %vm528_vm1, %v2122_v47  ;;  %v2127_v50 = vadd.f32 %v1449_v45, %v838_v49  ;;  %v1536_v51 = vpop.f32.mrb[7].mxu1  ;;  %v885_v52 = vsel %vm884_vm2, %v2122_v47, -inf }
 0x15a   : > { %886 = vmax.xlane.f32.xlu0 %v885_v52 }
 0x15b   : > { %875 = vst.msk [vmem:[%s2120_s30 + $0x8] sm:$0xff] %vm528_vm1, %v2127_v50  ;;  %v888_v53 = vsel %vm884_vm2, %v2127_v50, -inf }
 0x15e   : > { %889 = vmax.xlane.f32.xlu0 %v888_v53  ;;  %v843_v54 = vpop.f32.mrb[8].mxu1 }
 0x15f   : > { %v2136_v55 = vadd.f32 %v1449_v45, %v843_v54  ;;  %v1539_v56 = vpop.f32.mrb[9].mxu1 }
 0x160   : > { %v846_v57 = vpop.f32.mrb[10].mxu1 }
 0x161   : > { %876 = vst.msk [vmem:[%s2120_s30 + $0x10] sm:$0xff] %vm528_vm1, %v2136_v55  ;;  %v2141_v58 = vadd.f32 %v1449_v45, %v846_v57  ;;  %v1540_v59 = vpop.f32.mrb[11].mxu1  ;;  %v891_v60 = vsel %vm884_vm2, %v2136_v55, -inf }
 0x162   : > { %892 = vmax.xlane.f32.xlu1 %v891_v60 }
 0x163   : > { %877 = vst.msk [vmem:[%s2120_s30 + $0x18] sm:$0xff] %vm528_vm1, %v2141_v58  ;;  %v894_v61 = vsel %vm884_vm2, %v2141_v58, -inf }
 0x166   : > { %895 = vmax.xlane.f32.xlu1 %v894_v61  ;;  %v851_v62 = vpop.f32.mrb[12].mxu1 }
 0x167   : > { %v2150_v63 = vadd.f32 %v1449_v45, %v851_v62  ;;  %v1543_v1 = vpop.f32.mrb[13].mxu1 }
 0x168   : > { %v854_v2 = vpop.f32.mrb[14].mxu1 }
 0x169   : > { %878 = vst.msk [vmem:[%s2120_s30 + $0x20] sm:$0xff] %vm528_vm1, %v2150_v63  ;;  %v2155_v3 = vadd.f32 %v1449_v45, %v854_v2  ;;  %v1544_v4 = vpop.f32.mrb[15].mxu1  ;;  %v897_v5 = vsel %vm884_vm2, %v2150_v63, -inf }
 0x16a   : > { %898 = vmax.xlane.f32.xlu0 %v897_v5 }
 0x16b   : > { %879 = vst.msk [vmem:[%s2120_s30 + $0x28] sm:$0xff] %vm528_vm1, %v2155_v3  ;;  %v900_v6 = vsel %vm884_vm2, %v2155_v3, -inf }
 0x16c   : > { %901 = vmax.xlane.f32.xlu1 %v900_v6 }
 0x16e   : > { %v859_v9 = vpop.f32.mrb[16].mxu1 }
 0x16f   : > { %v2164_v10 = vadd.f32 %v1449_v45, %v859_v9  ;;  %v1547_v11 = vpop.f32.mrb[17].mxu1 }
 0x170   : > { %v862_v12 = vpop.f32.mrb[18].mxu1 }
 0x171   : > { %880 = vst.msk [vmem:[%s2120_s30 + $0x30] sm:$0xff] %vm528_vm1, %v2164_v10  ;;  %v2169_v13 = vadd.f32 %v1449_v45, %v862_v12  ;;  %v1548_v14 = vpop.f32.mrb[19].mxu1  ;;  %v903_v17 = vsel %vm884_vm2, %v2164_v10, -inf  ;;  %v2268_v12 = vpop.f32.mrb[0].mxu0 }
 0x172   : > { %904 = vmax.xlane.f32.xlu0 %v903_v17 }
 0x173   : > { %881 = vst.msk [vmem:[%s2120_s30 + $0x38] sm:$0xff] %vm528_vm1, %v2169_v13  ;;  %v906_v18 = vsel %vm884_vm2, %v2169_v13, -inf }
 0x174   : > { %907 = vmax.xlane.f32.xlu1 %v906_v18 }
 0x176   : > { %v867_v19 = vpop.f32.mrb[20].mxu1 }
 0x177   : > { %v2178_v20 = vadd.f32 %v1449_v45, %v867_v19  ;;  %v1551_v21 = vpop.f32.mrb[21].mxu1 }
 0x178   : > { %v870_v24 = vpop.f32.mrb[22].mxu1 }
 0x179   : > { %882 = vst.msk [vmem:[%s2120_s30 + $0x40] sm:$0xff] %vm528_vm1, %v2178_v20  ;;  %v2183_v25 = vadd.f32 %v1449_v45, %v870_v24  ;;  %v1552_v26 = vpop.f32.mrb[23].mxu1  ;;  %v909_v27 = vsel %vm884_vm2, %v2178_v20, -inf }
 0x17a   : > { %910 = vmax.xlane.f32.xlu0 %v909_v27 }
 0x17b   : > { %883 = vst.msk [vmem:[%s2120_s30 + $0x48] sm:$0xff] %vm528_vm1, %v2183_v25  ;;  %v912_v28 = vsel %vm884_vm2, %v2183_v25, -inf }
 0x17c   : > { %913 = vmax.xlane.f32.xlu1 %v912_v28 }
 0x1e7   : > { %v887_v36 = vpop.xlane.xlu0 %886 }
 0x1e8   : > { %v915_v15 = vsub.f32 %v2122_v47, %v887_v36 }
 0x1ea   : > { %v925_v16 = vmul.f32 1.442695, %v915_v15 }
 0x1eb   : > { %v890_v37 = vpop.xlane.xlu0 %889 }
 0x1ec   : > { %1642 = vpow2.f32 %v925_v16  ;;  %v916_v38 = vsub.f32 %v2127_v50, %v890_v37 }
 0x1ee   : > { %v927_v39 = vmul.f32 1.442695, %v916_v38  ;;  %v1823_v38 = vmov 0  }
 0x1ef   : > { %v893_v22 = vpop.xlane.xlu1 %892  ;;  %1637 = vset.pattern.permute.xlu1 %v1823_v38  ;;  %1636 = vset.pattern.permute.xlu0 %v1823_v38 }
 0x1f0   : > { %1644 = vpow2.f32 %v927_v39  ;;  %v917_v23 = vsub.f32 %v2136_v55, %v893_v22 }
 0x1f2   : > { %v929_v40 = vmul.f32 1.442695, %v917_v23 }
 0x1f3   : > { %v896_v0 = vpop.xlane.xlu1 %895 }
 0x1f4   : > { %1646 = vpow2.f32 %v929_v40  ;;  %v918_v29 = vsub.f32 %v2141_v58, %v896_v0 }
 0x1f6   : > { %v2220_v30 = vpop.eup %1642  ;;  %v931_v42 = vmul.f32 1.442695, %v918_v29 }
 0x1f7   : > { %v899_v44 = vpop.xlane.xlu0 %898  ;;  %957 = vrot.lane.b32.xlu0 %v2220_v30, %s1822_s20 }
 0x1f8   : > { %1648 = vpow2.f32 %v931_v42  ;;  %v919_v45 = vsub.f32 %v2150_v63, %v899_v44 }
 0x1f9   : > { %v902_v46 = vpop.xlane.xlu1 %901 }
 0x1fa   : > { %v2225_v47 = vpop.eup %1644  ;;  %v933_v48 = vmul.f32 1.442695, %v919_v45  ;;  %v920_v49 = vsub.f32 %v2155_v3, %v902_v46 }
 0x1fb   : > { %959 = vrot.lane.b32.xlu1 %v2225_v47, %s1822_s20 }
 0x1fc   : > { %1650 = vpow2.f32 %v933_v48  ;;  %v935_v50 = vmul.f32 1.442695, %v920_v49 }
 0x1fe   : > { %v2230_v51 = vpop.eup %1646  ;;  %1652 = vpow2.f32 %v935_v50 }
 0x1ff   : > { %v905_v52 = vpop.xlane.xlu0 %904  ;;  %961 = vrot.lane.b32.xlu1 %v2230_v51, %s1822_s20 }
 0x200   : > { %v921_v53 = vsub.f32 %v2164_v10, %v905_v52 }
 0x201   : > { %v908_v54 = vpop.xlane.xlu1 %907 }
 0x202   : > { %v2235_v55 = vpop.eup %1648  ;;  %v937_v56 = vmul.f32 1.442695, %v921_v53  ;;  %v922_v57 = vsub.f32 %v2169_v13, %v908_v54  ;;  %v1511_v13 = vpop.f32.mrb[1].mxu0 }
 0x203   : > { %963 = vrot.lane.b32.xlu1 %v2235_v55, %s1822_s20  ;;  %v2270_v14 = vpop.f32.mrb[2].mxu0  ;;  %v624_v13 = vld [vmem:[%s469_s16 + $0x38] sm:$0xff] }
 0x204   : > { %1654 = vpow2.f32 %v937_v56  ;;  %v939_v58 = vmul.f32 1.442695, %v922_v57  ;;  %v1512_v18 = vpop.f32.mrb[3].mxu0 }
 0x205   : > { %v626_v18 = vld [vmem:[%s469_s16 + $0x48] sm:$0xff] }
 0x206   : > { %v2240_v59 = vpop.eup %1650  ;;  %1656 = vpow2.f32 %v939_v58 }
 0x207   : > { %965 = vrot.lane.b32.xlu0 %v2240_v59, %s1822_s20  ;;  %v911_v60 = vpop.xlane.xlu0 %910 }
 0x208   : > { %v2244_v61 = vpop.eup %1652  ;;  %v923_v62 = vsub.f32 %v2178_v20, %v911_v60  ;;  %v2274_v20 = vpop.f32.mrb[4].mxu0 }
 0x209   : > { %967 = vrot.lane.b32.xlu1 %v2244_v61, %s1822_s20  ;;  %v914_v63 = vpop.xlane.xlu1 %913  ;;  %v1515_v21 = vpop.f32.mrb[5].mxu0 }
 0x20a   : > { %v941_v1 = vmul.f32 1.442695, %v923_v62  ;;  %v924_v2 = vsub.f32 %v2183_v25, %v914_v63  ;;  %v2276_v24 = vpop.f32.mrb[6].mxu0  ;;  %v618_v62 = vld [vmem:[%s469_s16 + $0x8] sm:$0xff]  ;;  %v617_v63 = vld [vmem:[%s469_s16] sm:$0xff] }
 0x20b   : > { %v1516_v26 = vpop.f32.mrb[7].mxu0 }
 0x20c   : > { %1658 = vpow2.f32 %v941_v1  ;;  %v943_v3 = vmul.f32 1.442695, %v924_v2  ;;  %v2280_v28 = vpop.f32.mrb[8].mxu0  ;;  %v619_v1 = vld [vmem:[%s469_s16 + $0x10] sm:$0xff]  ;;  %v620_v2 = vld [vmem:[%s469_s16 + $0x18] sm:$0xff] }
 0x20d   : > { %v1519_v31 = vpop.f32.mrb[9].mxu0 }
 0x20e   : > { %v2250_v4 = vpop.eup %1654  ;;  %1660 = vpow2.f32 %v943_v3  ;;  %v2282_v32 = vpop.f32.mrb[10].mxu0  ;;  %v621_v3 = vld [vmem:[%s469_s16 + $0x20] sm:$0xff] }
 0x20f   : > { %969 = vrot.lane.b32.xlu0 %v2250_v4, %s1822_s20  ;;  %v1520_v34 = vpop.f32.mrb[11].mxu0 }
 0x210   : > { %v2254_v5 = vpop.eup %1656  ;;  %v2286_v7 = vpop.f32.mrb[12].mxu0 }
 0x211   : > { %971 = vrot.lane.b32.xlu1 %v2254_v5, %s1822_s20  ;;  %v1523_v8 = vpop.f32.mrb[13].mxu0 }
 0x212   : > { %v2288_v36 = vpop.f32.mrb[14].mxu0 }
 0x213   : > { %v1524_v16 = vpop.f32.mrb[15].mxu0 }
 0x216   : > { %v2258_v6 = vpop.eup %1658 }
 0x217   : > { %973 = vrot.lane.b32.xlu0 %v2258_v6, %s1822_s20 }
 0x218   : > { %v2262_v9 = vpop.eup %1660 }
 0x219   : > { %975 = vrot.lane.b32.xlu1 %v2262_v9, %s1822_s20 }
 0x269   : > { %v958_v10 = vpop.permute.xlu0 %957 }
 0x26a   : > { %1557 = vmatprep.mubr.msk.f32.mxu0 %vm977_vm3, %v958_v10  ;;  %v622_v10 = vld [vmem:[%s469_s16 + $0x28] sm:$0xff] }
 0x26d   : > { %v960_v11 = vpop.permute.xlu1 %959 }
 0x26e   : > { %1558 = vmatmul.mubr.msk.f32.vlgmr.msra.gmra.mrb[16].mxu0 %vm977_vm3, %v960_v11  ;;  %v623_v11 = vld [vmem:[%s469_s16 + $0x30] sm:$0xff] }
 0x271   : > { %v962_v17 = vpop.permute.xlu1 %961 }
 0x272   : > { %1560 = vmatprep.mubr.msk.f32.mxu0 %vm977_vm3, %v962_v17  ;;  %v625_v17 = vld [vmem:[%s469_s16 + $0x40] sm:$0xff] }
 0x275   : > { %v964_v19 = vpop.permute.xlu1 %963 }
 0x276   : > { %1561 = vmatmul.mubr.msk.f32.gmra.mrb[18].mxu0 %vm977_vm3, %v964_v19 }
 0x279   : > { %v966_v25 = vpop.permute.xlu0 %965 }
 0x27a   : > { %1563 = vmatprep.mubr.msk.f32.mxu0 %vm977_vm3, %v966_v25 }
 0x27b   : > { %v968_v27 = vpop.permute.xlu1 %967 }
 0x27c   : > { %1564 = vmatmul.mubr.msk.f32.gmra.mrb[20].mxu0 %vm977_vm3, %v968_v27 }
 0x281   : > { %v970_v33 = vpop.permute.xlu0 %969 }
 0x282   : > { %1566 = vmatprep.mubr.msk.f32.mxu0 %vm977_vm3, %v970_v33 }
 0x283   : > { %v972_v35 = vpop.permute.xlu1 %971 }
 0x284   : > { %1567 = vmatmul.mubr.msk.f32.gmra.mrb[22].mxu0 %vm977_vm3, %v972_v35 }
 0x289   : > { %v974_v15 = vpop.permute.xlu0 %973 }
 0x28a   : > { %1569 = vmatprep.mubr.msk.f32.mxu0 %vm977_vm3, %v974_v15 }
 0x28b   : > { %v976_v37 = vpop.permute.xlu1 %975 }
 0x28c   : > { %1570 = vmatmul.mubr.msk.f32.gmra.mrb[24].mxu0 %vm977_vm3, %v976_v37 }
 0x341   : > { %v1559_v39 = vpop.f32.mrb[16].mxu0 }
 0x342   : > { %1662 = vrcp.f32 %v1559_v39  ;;  %v1064_v22 = vpop.f32.mrb[17].mxu0  ;;  %v1431_v39 = vld [vmem:[#allocation4] ss:$0 sm:$0xff] }
 0x343   : > { %1664 = vrcp.f32 %v1064_v22 }
 0x349   : > { %v1562_v23 = vpop.f32.mrb[18].mxu0 }
 0x34a   : > { %1666 = vrcp.f32 %v1562_v23  ;;  %v1074_v40 = vpop.f32.mrb[19].mxu0 }
 0x34b   : > { %1668 = vrcp.f32 %v1074_v40 }
 0x34c   : > { %v1663_v0 = vpop.eup %1662 }
 0x34d   : > { %v1665_v29 = vpop.eup %1664  ;;  %1135 = vrot.lane.b32.xlu1 %v1663_v0, %s1824_s23 }
 0x34e   : > { %1133 = vrot.lane.b32.xlu0 %v1665_v29, %s1824_s23 }
 0x34f   : > { %v1565_v42 = vpop.f32.mrb[20].mxu0 }
 0x350   : > { %1670 = vrcp.f32 %v1565_v42  ;;  %v1084_v44 = vpop.f32.mrb[21].mxu0 }
 0x351   : > { %1672 = vrcp.f32 %v1084_v44 }
 0x354   : > { %v1667_v45 = vpop.eup %1666 }
 0x355   : > { %v1669_v46 = vpop.eup %1668  ;;  %1139 = vrot.lane.b32.xlu1 %v1667_v45, %s1824_s23 }
 0x356   : > { %1137 = vrot.lane.b32.xlu0 %v1669_v46, %s1824_s23  ;;  %v595_v46 = vadd.f32 %v1431_v39, %v2280_v28 }
 0x357   : > { %v1568_v48 = vpop.f32.mrb[22].mxu0 }
 0x358   : > { %1674 = vrcp.f32 %v1568_v48  ;;  %v1094_v49 = vpop.f32.mrb[23].mxu0 }
 0x359   : > { %1676 = vrcp.f32 %v1094_v49  ;;  %v598_v49 = vadd.f32 %v1431_v39, %v2282_v32 }
 0x35a   : > { %v1671_v50 = vpop.eup %1670 }
 0x35b   : > { %v1673_v52 = vpop.eup %1672  ;;  %1143 = vrot.lane.b32.xlu1 %v1671_v50, %s1824_s23 }
 0x35c   : > { %1141 = vrot.lane.b32.xlu0 %v1673_v52, %s1824_s23 }
 0x35f   : > { %v1571_v53 = vpop.f32.mrb[24].mxu0 }
 0x360   : > { %1678 = vrcp.f32 %v1571_v53  ;;  %v1104_v54 = vpop.f32.mrb[25].mxu0 }
 0x361   : > { %1680 = vrcp.f32 %v1104_v54  ;;  %v603_v54 = vadd.f32 %v1431_v39, %v2286_v7  ;;  %v614_v7 = vadd.f32 %v1431_v39, %v2114_v43 }
 0x362   : > { %v1675_v56 = vpop.eup %1674 }
 0x363   : > { %v1677_v57 = vpop.eup %1676  ;;  %1147 = vrot.lane.b32.xlu1 %v1675_v56, %s1824_s23 }
 0x364   : > { %1145 = vrot.lane.b32.xlu0 %v1677_v57, %s1824_s23  ;;  %v606_v57 = vadd.f32 %v1431_v39, %v2288_v36 }
 0x36a   : > { %v1679_v58 = vpop.eup %1678 }
 0x36b   : > { %v1681_v60 = vpop.eup %1680  ;;  %1151 = vrot.lane.b32.xlu1 %v1679_v58, %s1824_s23 }
 0x36c   : > { %1149 = vrot.lane.b32.xlu0 %v1681_v60, %s1824_s23 }
 0x36f   : > { %634 = vperm.xlu1 %1637, %v618_v62  }
 0x370   : > { %629 = vperm.xlu0 %1636, %v617_v63   ;;  %v611_v63 = vadd.f32 %v1431_v39, %v2112_v41 }
 0x373   : > { %639 = vperm.xlu1 %1637, %v619_v1  }
 0x374   : > { %644 = vperm.xlu0 %1636, %v620_v2  }
 0x377   : > { %649 = vperm.xlu1 %1637, %v621_v3  }
 0x378   : > { %654 = vperm.xlu0 %1636, %v622_v10  }
 0x37b   : > { %659 = vperm.xlu1 %1637, %v623_v11  }
 0x37c   : > { %664 = vperm.xlu0 %1636, %v624_v13  }
 0x37f   : > { %669 = vperm.xlu1 %1637, %v625_v17  }
 0x380   : > { %674 = vperm.xlu0 %1636, %v626_v18  }
 0x3bf   : > { %v1136_v19 = vpop.permute.xlu1 %1135 }
 0x3c0   : > { %v1164_v21 = vmul.f32 %v2225_v47, %v1136_v19  ;;  %v1134_v25 = vpop.permute.xlu0 %1133 }
 0x3c1   : > { %v1163_v26 = vmul.f32 %v2220_v30, %v1134_v25 }
 0x3c2   : > { %1185 = vrot.lane.b32.xlu0 %v1164_v21, %s1822_s20 }
 0x3c3   : > { %1183 = vrot.lane.b32.xlu1 %v1163_v26, %s1822_s20 }
 0x3c7   : > { %v1140_v27 = vpop.permute.xlu1 %1139 }
 0x3c8   : > { %v1166_v31 = vmul.f32 %v2235_v55, %v1140_v27  ;;  %v1138_v33 = vpop.permute.xlu0 %1137 }
 0x3c9   : > { %v1165_v34 = vmul.f32 %v2230_v51, %v1138_v33 }
 0x3ca   : > { %1189 = vrot.lane.b32.xlu0 %v1166_v31, %s1822_s20 }
 0x3cb   : > { %1187 = vrot.lane.b32.xlu1 %v1165_v34, %s1822_s20 }
 0x3cd   : > { %v1144_v35 = vpop.permute.xlu1 %1143 }
 0x3ce   : > { %v1168_v47 = vmul.f32 %v2244_v61, %v1144_v35  ;;  %v1142_v8 = vpop.permute.xlu0 %1141 }
 0x3cf   : > { %v1167_v30 = vmul.f32 %v2240_v59, %v1142_v8 }
 0x3d0   : > { %1193 = vrot.lane.b32.xlu0 %v1168_v47, %s1822_s20 }
 0x3d1   : > { %1191 = vrot.lane.b32.xlu1 %v1167_v30, %s1822_s20 }
 0x3d5   : > { %v1148_v15 = vpop.permute.xlu1 %1147 }
 0x3d6   : > { %v1170_v55 = vmul.f32 %v2254_v5, %v1148_v15  ;;  %v1146_v16 = vpop.permute.xlu0 %1145  ;;  %v582_v5 = vadd.f32 %v1431_v39, %v2270_v14  ;;  %v590_v14 = vadd.f32 %v1431_v39, %v2276_v24 }
 0x3d7   : > { %v1169_v51 = vmul.f32 %v2250_v4, %v1146_v16  ;;  %v579_v4 = vadd.f32 %v1431_v39, %v2268_v12 }
 0x3d8   : > { %1197 = vrot.lane.b32.xlu0 %v1170_v55, %s1822_s20 }
 0x3d9   : > { %1195 = vrot.lane.b32.xlu1 %v1169_v51, %s1822_s20 }
 0x3dd   : > { %v1152_v37 = vpop.permute.xlu1 %1151 }
 0x3de   : > { %v1172_v61 = vmul.f32 %v2262_v9, %v1152_v37  ;;  %v1150_v38 = vpop.permute.xlu0 %1149  ;;  %v587_v9 = vadd.f32 %v1431_v39, %v2274_v20 }
 0x3df   : > { %v1171_v59 = vmul.f32 %v2258_v6, %v1150_v38 }
 0x3e0   : > { %1201 = vrot.lane.b32.xlu0 %v1172_v61, %s1822_s20 }
 0x3e1   : > { %1199 = vrot.lane.b32.xlu1 %v1171_v59, %s1822_s20 }
 0x3ee   : > { %v635_v22 = vpop.permute.xlu1 %634 }
 0x3ef   : > { %v678_v23 = vmul.f32 %v635_v22, %v582_v5  ;;  %v630_v40 = vpop.permute.xlu0 %629 }
 0x3f0   : > { %v677_v6 = vmul.f32 %v630_v40, %v579_v4 }
 0x3f1   : > { %v1470_v0 = vpack.c.bf16 %v678_v23, %v678_v23 }
 0x3f2   : > { %v1469_v12 = vpack.c.bf16 %v677_v6, %v677_v6  ;;  %v640_v29 = vpop.permute.xlu1 %639 }
 0x3f3   : > { %729 = vst.msk [vmem:[%s2332_s26 + $0x4] sm:$0xf] %vm727_vm4, %v1470_v0  ;;  %v679_v42 = vmul.f32 %v640_v29, %v587_v9  ;;  %v645_v44 = vpop.permute.xlu0 %644 }
 0x3f4   : > { %728 = vst.msk [vmem:[%s2332_s26] sm:$0xf] %vm727_vm4, %v1469_v12  ;;  %v680_v45 = vmul.f32 %v645_v44, %v590_v14 }
 0x3f5   : > { %v1471_v48 = vpack.c.bf16 %v679_v42, %v679_v42 }
 0x3f6   : > { %v1472_v20 = vpack.c.bf16 %v680_v45, %v680_v45  ;;  %v650_v50 = vpop.permute.xlu1 %649 }
 0x3f7   : > { %730 = vst.msk [vmem:[%s2332_s26 + $0x8] sm:$0xf] %vm727_vm4, %v1471_v48  ;;  %v681_v24 = vmul.f32 %v650_v50, %v595_v46  ;;  %v655_v52 = vpop.permute.xlu0 %654 }
 0x3f8   : > { %731 = vst.msk [vmem:[%s2332_s26 + $0xc] sm:$0xf] %vm727_vm4, %v1472_v20  ;;  %v682_v53 = vmul.f32 %v655_v52, %v598_v49 }
 0x3f9   : > { %v1473_v56 = vpack.c.bf16 %v681_v24, %v681_v24 }
 0x3fa   : > { %v1474_v28 = vpack.c.bf16 %v682_v53, %v682_v53  ;;  %v660_v58 = vpop.permute.xlu1 %659 }
 0x3fb   : > { %732 = vst.msk [vmem:[%s2332_s26 + $0x10] sm:$0xf] %vm727_vm4, %v1473_v56  ;;  %v683_v32 = vmul.f32 %v660_v58, %v603_v54  ;;  %v665_v60 = vpop.permute.xlu0 %664 }
 0x3fc   : > { %733 = vst.msk [vmem:[%s2332_s26 + $0x14] sm:$0xf] %vm727_vm4, %v1474_v28  ;;  %v684_v62 = vmul.f32 %v665_v60, %v606_v57 }
 0x3fd   : > { %v1475_v1 = vpack.c.bf16 %v683_v32, %v683_v32 }
 0x3fe   : > { %v1476_v2 = vpack.c.bf16 %v684_v62, %v684_v62  ;;  %v670_v36 = vpop.permute.xlu1 %669 }
 0x3ff   : > { %734 = vst.msk [vmem:[%s2332_s26 + $0x18] sm:$0xf] %vm727_vm4, %v1475_v1  ;;  %v685_v3 = vmul.f32 %v670_v36, %v611_v63  ;;  %v675_v10 = vpop.permute.xlu0 %674 }
 0x400   : > { %735 = vst.msk [vmem:[%s2332_s26 + $0x1c] sm:$0xf] %vm727_vm4, %v1476_v2  ;;  %v686_v11 = vmul.f32 %v675_v10, %v614_v7 }
 0x401   : > { %v1477_v13 = vpack.c.bf16 %v685_v3, %v685_v3 }
 0x402   : > { %v1478_v17 = vpack.c.bf16 %v686_v11, %v686_v11 }
 0x403   : > { %736 = vst.msk [vmem:[%s2332_s26 + $0x20] sm:$0xf] %vm727_vm4, %v1477_v13 }
 0x404   : > { %737 = vst.msk [vmem:[%s2332_s26 + $0x24] sm:$0xf] %vm727_vm4, %v1478_v17 }
 0x434   : > { %v1186_v41 = vpop.permute.xlu0 %1185 }
 0x435   : > { %1214 = vst.msk [vmem:[%s487_s28 + $0x8] sm:$0xff] %vm977_vm3, %v1186_v41  ;;  %v1184_v43 = vpop.permute.xlu1 %1183 }
 0x436   : > { %1213 = vst.msk [vmem:[%s487_s28] sm:$0xff] %vm977_vm3, %v1184_v43 }
 0x43c   : > { %v1190_v18 = vpop.permute.xlu0 %1189 }
 0x43d   : > { %1216 = vst.msk [vmem:[%s487_s28 + $0x18] sm:$0xff] %vm977_vm3, %v1190_v18  ;;  %v1188_v19 = vpop.permute.xlu1 %1187 }
 0x43e   : > { %1215 = vst.msk [vmem:[%s487_s28 + $0x10] sm:$0xff] %vm977_vm3, %v1188_v19 }
 0x442   : > { %v1194_v21 = vpop.permute.xlu0 %1193 }
 0x443   : > { %1218 = vst.msk [vmem:[%s487_s28 + $0x28] sm:$0xff] %vm977_vm3, %v1194_v21  ;;  %v1192_v25 = vpop.permute.xlu1 %1191 }
 0x444   : > { %1217 = vst.msk [vmem:[%s487_s28 + $0x20] sm:$0xff] %vm977_vm3, %v1192_v25 }
 0x44a   : > { %v1198_v26 = vpop.permute.xlu0 %1197 }
 0x44b   : > { %1220 = vst.msk [vmem:[%s487_s28 + $0x38] sm:$0xff] %vm977_vm3, %v1198_v26  ;;  %v1196_v27 = vpop.permute.xlu1 %1195 }
 0x44c   : > { %1219 = vst.msk [vmem:[%s487_s28 + $0x30] sm:$0xff] %vm977_vm3, %v1196_v27 }
 0x452   : > { %v1202_v31 = vpop.permute.xlu0 %1201 }
 0x453   : > { %1222 = vst.msk [vmem:[%s487_s28 + $0x48] sm:$0xff] %vm977_vm3, %v1202_v31  ;;  %v1200_v33 = vpop.permute.xlu1 %1199 }
 0x454   : > { %1221 = vst.msk [vmem:[%s487_s28 + $0x40] sm:$0xff] %vm977_vm3, %v1200_v33 }
 0x455 PF: > { %s24_s13 = sadd.s32 1, %s1812_s13  }
 0x456   : > { %p21_p3 = scmp.ge.s32.totalorder %s24_s13, 4  }
 0x458   :  { %23 = sbr.rel (!%p21_p3) target bundleno = 3 (0x3), region = 129 }
 0x45f   :  { %1279 = vsyncpa [#allocation3], 1 }
 0x460   :  { %1281 = vsyncpa [#allocation3 + $0x1], 1 }
 0x461   :  { %1282 = vsyncpa [#allocation5], 1 }
 0x462   :  { %1283 = vsyncpa [#allocation8], 1 }

// kernel: mul.110
= control target key start
LH: loop header
LB: loop body
LE: loop exit
PB: predicated region body
PF: predicated region fallthrough
CT: control target
= control target key end

     0   :  { %vm3_vm0 = vcmask 654336   ;;  %vm20_vm1 = vcmask 392192   ;;  %vm25_vm2 = vcmask 654720   ;;  %s248_s0 = inlined_call_operand.vmem [shape: f32[160,16], index: 0, kind: input, shape index: {}]   ;;  %s249_s1 = inlined_call_operand.vmem [shape: f32[2,80,4,2,2], index: 1, kind: output, shape index: {}]  }
   0x1   :  { %v157_v0 = vld [vmem:[%s248_s0 + $0x10] sm:$0xff]   ;;  %v13_v1 = vld [vmem:[%s248_s0] sm:$0xff]   ;;  %v158_v2 = vld [vmem:[%s248_s0 + $0x8] sm:$0xff]  }
   0x2   :  { %v17_v3 = vsel %vm3_vm0, %v158_v2, %v13_v1  ;;  %4 = vst.msk [vmem:[#allocation0] ss:$8 sm:$0xf] %vm3_vm0, %v13_v1   ;;  %5 = vst.msk [vmem:[#allocation0] ss:$8 sm:$0xf0] %vm3_vm0, %v13_v1  }
   0x3   :  { %10 = vst.msk [vmem:[#allocation0 + $0x40] ss:$8 sm:$0xf] %vm3_vm0, %v157_v0   ;;  %12 = vst.msk [vmem:[#allocation0 + $0x40] ss:$8 sm:$0xf0] %vm3_vm0, %v157_v0  }
   0x4   :  { %v160_v4 = vld [vmem:[%s248_s0 + $0x18] sm:$0xff]   ;;  %s177_s0 = smov 48  }
   0x5   :  { %18 = vrot.lane.b32.xlu0 %v17_v3, %s177_s0  ;;  %v35_v5 = vsel %vm3_vm0, %v160_v4, %v157_v0 }
   0x9   :  { %36 = vrot.lane.b32.xlu0 %v35_v5, %s177_s0 }
  0x77   :  { %v19_v6 = vpop.permute.xlu0 %18  }
  0x78   :  { %22 = vst.msk [vmem:[#allocation0 + $0x1] ss:$8 sm:$0xf] %vm20_vm1, %v19_v6   ;;  %24 = vst.msk [vmem:[#allocation0 + $0x1] ss:$8 sm:$0xf0] %vm20_vm1, %v19_v6  }
  0x79   :  { %27 = vst.msk [vmem:[#allocation0 + $0x1] ss:$8 sm:$0xf] %vm25_vm2, %v19_v6   ;;  %29 = vst.msk [vmem:[#allocation0 + $0x1] ss:$8 sm:$0xf0] %vm25_vm2, %v19_v6  }
  0x7b   :  { %v37_v7 = vpop.permute.xlu0 %36  }
  0x7c   :  { %40 = vst.msk [vmem:[#allocation0 + $0x41] ss:$8 sm:$0xf] %vm20_vm1, %v37_v7   ;;  %42 = vst.msk [vmem:[#allocation0 + $0x41] ss:$8 sm:$0xf0] %vm20_vm1, %v37_v7  }
  0x7d   :  { %45 = vst.msk [vmem:[#allocation0 + $0x41] ss:$8 sm:$0xf] %vm25_vm2, %v37_v7   ;;  %47 = vst.msk [vmem:[#allocation0 + $0x41] ss:$8 sm:$0xf0] %vm25_vm2, %v37_v7  }
  0x80   :  { %v51_v8 = vld [vmem:[#allocation0] sm:$0x3]  ;;  %v55_v9 = vld [vmem:[#allocation0 + $0x8] sm:$0x3]  ;;  %v60_v10 = vld [vmem:[#allocation0 + $0x10] sm:$0x3] }
  0x81   :  { %53 = vst [vmem:[%s249_s1] sm:$0x3] %v51_v8  ;;  %161 = vst [vmem:[%s249_s1 + $0x2] sm:$0x3] %v55_v9  ;;  %v66_v11 = vld [vmem:[#allocation0 + $0x18] sm:$0x3] }
  0x82   :  { %162 = vst [vmem:[%s249_s1 + $0x4] sm:$0x3] %v60_v10  ;;  %v72_v12 = vld [vmem:[#allocation0 + $0x20] sm:$0x3]  ;;  %v78_v13 = vld [vmem:[#allocation0 + $0x28] sm:$0x3] }
  0x83   :  { %163 = vst [vmem:[%s249_s1 + $0x6] sm:$0x3] %v66_v11  ;;  %164 = vst [vmem:[%s249_s1 + $0x8] sm:$0x3] %v72_v12  ;;  %v84_v14 = vld [vmem:[#allocation0 + $0x30] sm:$0x3] }
  0x84   :  { %165 = vst [vmem:[%s249_s1 + $0xa] sm:$0x3] %v78_v13  ;;  %v90_v15 = vld [vmem:[#allocation0 + $0x38] sm:$0x3]  ;;  %166 = vst [vmem:[%s249_s1 + $0xc] sm:$0x3] %v84_v14 }
  0x85   :  { %167 = vst [vmem:[%s249_s1 + $0xe] sm:$0x3] %v90_v15  ;;  %v96_v16 = vld [vmem:[#allocation0 + $0x40] sm:$0x3]  ;;  %v102_v17 = vld [vmem:[#allocation0 + $0x48] sm:$0x3] }
  0x86   :  { %v108_v18 = vld [vmem:[#allocation0 + $0x50] sm:$0x3]  ;;  %168 = vst [vmem:[%s249_s1 + $0x10] sm:$0x3] %v96_v16  ;;  %169 = vst [vmem:[%s249_s1 + $0x12] sm:$0x3] %v102_v17 }
  0x87   :  { %170 = vst [vmem:[%s249_s1 + $0x14] sm:$0x3] %v108_v18  ;;  %v114_v19 = vld [vmem:[#allocation0 + $0x58] sm:$0x3]  ;;  %v120_v20 = vld [vmem:[#allocation0 + $0x60] sm:$0x3] }
  0x88   :  { %v126_v21 = vld [vmem:[#allocation0 + $0x68] sm:$0x3]  ;;  %171 = vst [vmem:[%s249_s1 + $0x16] sm:$0x3] %v114_v19  ;;  %172 = vst [vmem:[%s249_s1 + $0x18] sm:$0x3] %v120_v20 }
  0x89   :  { %173 = vst [vmem:[%s249_s1 + $0x1a] sm:$0x3] %v126_v21  ;;  %v132_v22 = vld [vmem:[#allocation0 + $0x70] sm:$0x3]  ;;  %v138_v23 = vld [vmem:[#allocation0 + $0x78] sm:$0x3] }
  0x8a   :  { %174 = vst [vmem:[%s249_s1 + $0x1c] sm:$0x3] %v132_v22  ;;  %175 = vst [vmem:[%s249_s1 + $0x1e] sm:$0x3] %v138_v23 }

// kernel: run.7
= control target key start
LH: loop header
LB: loop body
LE: loop exit
PB: predicated region body
PF: predicated region fallthrough
CT: control target
= control target key end

     0   :  { %s800_s21 = smov 0   ;;  %s986_s0 = inlined_call_operand.vmem [shape: f32[160,32], index: 0, kind: input, shape index: {}]   ;;  %s987_s1 = inlined_call_operand.vmem [shape: f32[160,32], index: 1, kind: input, shape index: {}]   ;;  %s988_s2 = inlined_call_operand.vmem [shape: bf16[32,32], index: 2, kind: input, shape index: {}]   ;;  %s989_s3 = inlined_call_operand.vmem [shape: f32[1,32], index: 3, kind: input, shape index: {}]   ;;  %s990_s4 = inlined_call_operand.vmem [shape: f32[1,32], index: 4, kind: input, shape index: {}]   ;;  %s991_s5 = inlined_call_operand.vmem [shape: f32[1,32], index: 5, kind: input, shape index: {}]   ;;  %s992_s6 = inlined_call_operand.vmem [shape: f32[160,32], index: 6, kind: output, shape index: {}]  }
   0x1 LB: > { %s668_s22 = sadd.s32 4294967295, %s761_s21   ;;  %p672_p0 = scmp.ge.s32.totalorder %s761_s21, 1  ;;  %s761_s21 = sphi %s800_s21, %s16_s21  }
   0x2   : > { %p224_p1 = scmp.lt.s32.totalorder %s761_s21, 3 }
   0x4   : > { %p225_p2 = pnand %p672_p0, %p224_p1 }
   0x5   : > { %v733_v0 = vld [vmem:[%s988_s2] sm:$0xff] (!%p225_p2)   ;;  %v763_v1 = vmov (!%p225_p2), 0.0   ;;  %v734_v2 = vld [vmem:[%s988_s2 + $0x8] sm:$0xff] (!%p225_p2)   ;;  %s259_s27 = smul.u32 (!%p225_p2), 10, %s668_s22  ;;  %vm764_vm0 = vmmov (!%p225_p2), 0   ;;  %vm316_vm1 = vcmask (!%p225_p2), 261120  }
   0x6   : > { %228 = sbr.rel (%p225_p2) target bundleno = 573 (0x23d), region = 44  ;;  %695 = vmatprep.subr.bf16.mxu0 (!%p225_p2), %v763_v1  ;;  %719 = vmatprep.subr.bf16.mxu1 (!%p225_p2), %v763_v1  ;;  %v676_v18 = vld [vmem:[%s989_s3] ss:$0 sm:$0xff] (!%p225_p2) }
   0x7   : > { %696 = vmatpush3.bf16.msra.mxu0 (!%p225_p2), %v733_v0  ;;  %721 = vmatpush3.bf16.msra.mxu1 (!%p225_p2), %v733_v0  ;;  %p260_p3 = scmp.lt.s32.totalorder (!%p225_p2), %s259_s27, 19 }
   0x8   : > { %697 = vmatprep.subr.bf16.mxu0 (!%p225_p2), %v763_v1  ;;  %720 = vmatprep.subr.bf16.mxu1 (!%p225_p2), %v763_v1 }
   0x9   : > { %699 = vmatprep.mubr.msk.bf16.mxu0 (!%p225_p2), %vm764_vm0, %v763_v1  ;;  %711 = vmatprep.mubr.msk.bf16.mxu1 (!%p225_p2), %vm764_vm0, %v763_v1 }
   0xb   : > { %698 = vmatpush3.bf16.msra.mxu0 (!%p225_p2), %v734_v2  ;;  %722 = vmatpush3.bf16.msra.mxu1 (!%p225_p2), %v734_v2 }
   0xd   : > { %s994_s27 = smov (!%p260_p3, %s259_s27), 19 }
   0xe   : > { %s816_s28 = sshll.u32 %s994_s27, 3 }
   0xf   : > { %s263_s7 = scalar_lea.vmem %s986_s0, %s816_s28  ;;  %s834_s10 = scalar_lea.vmem %s987_s1, %s816_s28 }
  0x10   : > { %v278_v3 = vld [vmem:[%s263_s7] sm:$0xff]  ;;  %v279_v4 = vld [vmem:[%s263_s7 + $0x8] sm:$0xff]  ;;  %v284_v5 = vld [vmem:[%s263_s7 + $0x30] sm:$0xff]  ;;  %s933_s19 = scalar_lea.vmem %s992_s6, %s816_s28 }
  0x11   : > { %v288_v6 = vpack.c.bf16 %v279_v4, %v278_v3  ;;  %v285_v7 = vld [vmem:[%s263_s7 + $0x38] sm:$0xff]  ;;  %v280_v9 = vld [vmem:[%s263_s7 + $0x10] sm:$0xff]  ;;  %v286_v11 = vld [vmem:[%s263_s7 + $0x40] sm:$0xff] }
  0x12   : > { %v291_v8 = vpack.c.bf16 %v285_v7, %v284_v5  ;;  %v281_v10 = vld [vmem:[%s263_s7 + $0x18] sm:$0xff]  ;;  %v287_v12 = vld [vmem:[%s263_s7 + $0x48] sm:$0xff]  ;;  %v282_v15 = vld [vmem:[%s263_s7 + $0x20] sm:$0xff] }
  0x13   : > { %700 = vmatmul.mubr.msk.bf16.vlgmr.msra.gmra.mrb[0].mxu0 %vm316_vm1, %v288_v6  ;;  %v289_v13 = vpack.c.bf16 %v281_v10, %v280_v9  ;;  %v292_v14 = vpack.c.bf16 %v287_v12, %v286_v11  ;;  %v283_v16 = vld [vmem:[%s263_s7 + $0x28] sm:$0xff]  ;;  %v405_v20 = vld [vmem:[%s834_s10] sm:$0xff]  ;;  %v411_v24 = vld [vmem:[%s834_s10 + $0x30] sm:$0xff] }
  0x14   : > { %712 = vmatmul.mubr.msk.bf16.vlgmr.msra.gmra.mrb[0].mxu1 %vm316_vm1, %v291_v8  ;;  %703 = vmatprep.mubr.msk.bf16.mxu0 %vm764_vm0, %v763_v1  ;;  %v290_v17 = vpack.c.bf16 %v283_v16, %v282_v15  ;;  %v412_v31 = vld [vmem:[%s834_s10 + $0x38] sm:$0xff]  ;;  %v406_v38 = vld [vmem:[%s834_s10 + $0x8] sm:$0xff]  ;;  %v407_v42 = vld [vmem:[%s834_s10 + $0x10] sm:$0xff] }
  0x15   : > { %715 = vmatprep.mubr.msk.bf16.mxu1 %vm764_vm0, %v763_v1  ;;  %v408_v48 = vld [vmem:[%s834_s10 + $0x18] sm:$0xff]  ;;  %v409_v60 = vld [vmem:[%s834_s10 + $0x20] sm:$0xff]  ;;  %v410_v3 = vld [vmem:[%s834_s10 + $0x28] sm:$0xff] }
  0x16   : > { %v413_v61 = vld [vmem:[%s834_s10 + $0x40] sm:$0xff]  ;;  %v414_v4 = vld [vmem:[%s834_s10 + $0x48] sm:$0xff] }
  0x1b   : > { %704 = vmatmul.mubr.msk.bf16.gmra.mrb[4].mxu0 %vm316_vm1, %v289_v13 }
  0x1c   : > { %707 = vmatprep.mubr.msk.bf16.mxu0 %vm764_vm0, %v763_v1  ;;  %716 = vmatmul.mubr.msk.bf16.gmra.mrb[4].mxu1 %vm316_vm1, %v292_v14 }
  0x23   : > { %708 = vmatmul.mubr.msk.bf16.gmra.mrb[8].mxu0 %vm316_vm1, %v290_v17 }
  0xe6   : > { %v366_v19 = vpop.f32.mrb[0].mxu0 }
  0xe7   : > { %v367_v21 = vadd.f32 %v676_v18, %v366_v19  ;;  %v390_v22 = vpop.f32.mrb[0].mxu1  ;;  %v701_v23 = vpop.f32.mrb[1].mxu0 }
  0xe8   : > { %v391_v25 = vadd.f32 %v676_v18, %v390_v22  ;;  %v713_v26 = vpop.f32.mrb[1].mxu1  ;;  %v369_v27 = vpop.f32.mrb[2].mxu0 }
  0xe9   : > { %v393_v28 = vpop.f32.mrb[2].mxu1  ;;  %v702_v29 = vpop.f32.mrb[3].mxu0  ;;  %v415_v30 = vadd.f32 %v405_v20, %v367_v21  ;;  %v370_v35 = vadd.f32 %v676_v18, %v369_v27 }
  0xea   : > { %v394_v32 = vadd.f32 %v676_v18, %v393_v28  ;;  %v714_v33 = vpop.f32.mrb[3].mxu1  ;;  %v842_v34 = vadd.f32 %v411_v24, %v391_v25 }
  0xeb   : > { %v425_v36 = vsel %vm316_vm1, %v415_v30, 0.0  ;;  %v416_v45 = vadd.f32 %v406_v38, %v370_v35 }
  0xec   : > { %426 = vadd.xlane.f32.xlu0 %v425_v36  ;;  %v845_v37 = vadd.f32 %v412_v31, %v394_v32  ;;  %v443_v39 = vsel %vm316_vm1, %v842_v34, 0.0 }
  0xed   : > { %v428_v55 = vsel %vm316_vm1, %v416_v45, 0.0 }
  0xee   : > { %v446_v40 = vsel %vm316_vm1, %v845_v37, 0.0  ;;  %v374_v41 = vpop.f32.mrb[4].mxu0 }
  0xef   : > { %447 = vadd.xlane.f32.xlu1 %v446_v40  ;;  %v375_v43 = vadd.f32 %v676_v18, %v374_v41  ;;  %v705_v44 = vpop.f32.mrb[5].mxu0  ;;  %v398_v46 = vpop.f32.mrb[4].mxu1 }
  0xf0   : > { %444 = vadd.xlane.f32.xlu0 %v443_v39  ;;  %v377_v47 = vpop.f32.mrb[6].mxu0  ;;  %v717_v49 = vpop.f32.mrb[5].mxu1  ;;  %v399_v58 = vadd.f32 %v676_v18, %v398_v46 }
  0xf1   : > { %v378_v50 = vadd.f32 %v676_v18, %v377_v47  ;;  %v706_v51 = vpop.f32.mrb[7].mxu0  ;;  %v417_v52 = vadd.f32 %v407_v42, %v375_v43  ;;  %v401_v53 = vpop.f32.mrb[6].mxu1 }
  0xf2   : > { %v718_v54 = vpop.f32.mrb[7].mxu1  ;;  %v402_v1 = vadd.f32 %v676_v18, %v401_v53  ;;  %v423_v8 = vadd.f32 %v413_v61, %v399_v58 }
  0xf3   : > { %v431_v56 = vsel %vm316_vm1, %v417_v52, 0.0  ;;  %v418_v57 = vadd.f32 %v408_v48, %v378_v50 }
  0xf4   : > { %429 = vadd.xlane.f32.xlu0 %v428_v55  ;;  %432 = vadd.xlane.f32.xlu1 %v431_v56  ;;  %v424_v11 = vadd.f32 %v414_v4, %v402_v1  ;;  %v449_v13 = vsel %vm316_vm1, %v423_v8, 0.0 }
  0xf5   : > { %v434_v0 = vsel %vm316_vm1, %v418_v57, 0.0 }
  0xf6   : > { %v382_v59 = vpop.f32.mrb[8].mxu0  ;;  %v452_v14 = vsel %vm316_vm1, %v424_v11, 0.0 }
  0xf7   : > { %v383_v62 = vadd.f32 %v676_v18, %v382_v59  ;;  %v709_v63 = vpop.f32.mrb[9].mxu0 }
  0xf8   : > { %435 = vadd.xlane.f32.xlu1 %v434_v0  ;;  %v385_v2 = vpop.f32.mrb[10].mxu0 }
  0xf9   : > { %v386_v5 = vadd.f32 %v676_v18, %v385_v2  ;;  %v710_v6 = vpop.f32.mrb[11].mxu0  ;;  %v419_v7 = vadd.f32 %v409_v60, %v383_v62 }
  0xfb   : > { %v437_v9 = vsel %vm316_vm1, %v419_v7, 0.0  ;;  %v420_v10 = vadd.f32 %v410_v3, %v386_v5 }
  0xfc   : > { %438 = vadd.xlane.f32.xlu0 %v437_v9 }
  0xfd   : > { %v440_v12 = vsel %vm316_vm1, %v420_v10, 0.0 }
  0xfe   : > { %441 = vadd.xlane.f32.xlu1 %v440_v12 }
 0x100   : > { %450 = vadd.xlane.f32.xlu0 %v449_v13 }
 0x102   : > { %453 = vadd.xlane.f32.xlu1 %v452_v14 }
 0x179   : > { %v427_v15 = vpop.xlane.xlu0 %426 }
 0x17a   : > { %v456_v16 = vmul.f32 0.03125, %v427_v15 }
 0x17c   : > { %v865_v17 = vsub.f32 %v415_v30, %v456_v16  ;;  %v448_v18 = vpop.xlane.xlu1 %447  ;;  %v920_v16 = vld [vmem:[%s990_s4] ss:$0 sm:$0xff] }
 0x17d   : > { %v445_v19 = vpop.xlane.xlu0 %444  ;;  %v463_v22 = vmul.f32 0.03125, %v448_v18 }
 0x17e   : > { %v462_v20 = vmul.f32 0.03125, %v445_v19  ;;  %v476_v21 = vmul.f32 %v865_v17, %v865_v17 }
 0x17f   : > { %v876_v30 = vsub.f32 %v845_v37, %v463_v22  ;;  %v926_v22 = vld [vmem:[%s991_s5] ss:$0 sm:$0xff] }
 0x180   : > { %v870_v23 = vsub.f32 %v842_v34, %v462_v20  ;;  %v486_v24 = vsel %vm316_vm1, %v476_v21, 0.0 }
 0x181   : > { %v430_v25 = vpop.xlane.xlu0 %429  ;;  %v433_v26 = vpop.xlane.xlu1 %432  ;;  %487 = vadd.xlane.f32.xlu0 %v486_v24  ;;  %v483_v41 = vmul.f32 %v876_v30, %v876_v30 }
 0x182   : > { %v457_v27 = vmul.f32 0.03125, %v430_v25  ;;  %v458_v28 = vmul.f32 0.03125, %v433_v26  ;;  %v482_v29 = vmul.f32 %v870_v23, %v870_v23 }
 0x183   : > { %v507_v48 = vsel %vm316_vm1, %v483_v41, 0.0 }
 0x184   : > { %v878_v31 = vsub.f32 %v416_v45, %v457_v27  ;;  %v880_v32 = vsub.f32 %v417_v52, %v458_v28  ;;  %v504_v33 = vsel %vm316_vm1, %v482_v29, 0.0 }
 0x185   : > { %v436_v34 = vpop.xlane.xlu1 %435  ;;  %505 = vadd.xlane.f32.xlu0 %v504_v33 }
 0x186   : > { %v459_v35 = vmul.f32 0.03125, %v436_v34  ;;  %v478_v36 = vmul.f32 %v880_v32, %v880_v32  ;;  %v477_v38 = vmul.f32 %v878_v31, %v878_v31 }
 0x188   : > { %v887_v39 = vsub.f32 %v418_v57, %v459_v35  ;;  %v492_v37 = vsel %vm316_vm1, %v478_v36, 0.0  ;;  %v489_v40 = vsel %vm316_vm1, %v477_v38, 0.0 }
 0x189   : > { %493 = vadd.xlane.f32.xlu0 %v492_v37  ;;  %v439_v42 = vpop.xlane.xlu0 %438  ;;  %490 = vadd.xlane.f32.xlu1 %v489_v40 }
 0x18a   : > { %v460_v43 = vmul.f32 0.03125, %v439_v42  ;;  %v479_v45 = vmul.f32 %v887_v39, %v887_v39 }
 0x18b   : > { %v442_v44 = vpop.xlane.xlu1 %441 }
 0x18c   : > { %v895_v46 = vsub.f32 %v419_v7, %v460_v43  ;;  %v461_v47 = vmul.f32 0.03125, %v442_v44  ;;  %v495_v54 = vsel %vm316_vm1, %v479_v45, 0.0 }
 0x18d   : > { %v451_v49 = vpop.xlane.xlu0 %450  ;;  %508 = vadd.xlane.f32.xlu1 %v507_v48 }
 0x18e   : > { %v898_v50 = vsub.f32 %v420_v10, %v461_v47  ;;  %v464_v51 = vmul.f32 0.03125, %v451_v49  ;;  %v480_v52 = vmul.f32 %v895_v46, %v895_v46 }
 0x18f   : > { %v454_v53 = vpop.xlane.xlu1 %453 }
 0x190   : > { %v903_v55 = vsub.f32 %v423_v8, %v464_v51  ;;  %v465_v56 = vmul.f32 0.03125, %v454_v53  ;;  %v498_v57 = vsel %vm316_vm1, %v480_v52, 0.0  ;;  %v481_v58 = vmul.f32 %v898_v50, %v898_v50 }
 0x191   : > { %499 = vadd.xlane.f32.xlu0 %v498_v57  ;;  %496 = vadd.xlane.f32.xlu1 %v495_v54 }
 0x192   : > { %v908_v59 = vsub.f32 %v424_v11, %v465_v56  ;;  %v484_v60 = vmul.f32 %v903_v55, %v903_v55  ;;  %v501_v62 = vsel %vm316_vm1, %v481_v58, 0.0 }
 0x194   : > { %v510_v61 = vsel %vm316_vm1, %v484_v60, 0.0  ;;  %v485_v63 = vmul.f32 %v908_v59, %v908_v59 }
 0x195   : > { %511 = vadd.xlane.f32.xlu0 %v510_v61  ;;  %502 = vadd.xlane.f32.xlu1 %v501_v62 }
 0x196   : > { %v513_v0 = vsel %vm316_vm1, %v485_v63, 0.0 }
 0x199   : > { %514 = vadd.xlane.f32.xlu1 %v513_v0 }
 0x20e   : > { %v488_v1 = vpop.xlane.xlu0 %487 }
 0x20f   : > { %v516_v2 = vmul.f32 0.03125, %v488_v1 }
 0x211   : > { %v526_v3 = vadd.f32 1e-05, %v516_v2 }
 0x212   : > { %v506_v4 = vpop.xlane.xlu0 %505 }
 0x213   : > { %735 = vrsqrt.f32 %v526_v3  ;;  %v522_v5 = vmul.f32 0.03125, %v506_v4 }
 0x215   : > { %v532_v6 = vadd.f32 1e-05, %v522_v5 }
 0x216   : > { %v494_v7 = vpop.xlane.xlu0 %493  ;;  %v491_v8 = vpop.xlane.xlu1 %490 }
 0x217   : > { %737 = vrsqrt.f32 %v532_v6  ;;  %v518_v9 = vmul.f32 0.03125, %v494_v7  ;;  %v517_v10 = vmul.f32 0.03125, %v491_v8 }
 0x219   : > { %v528_v11 = vadd.f32 1e-05, %v518_v9  ;;  %v527_v12 = vadd.f32 1e-05, %v517_v10 }
 0x21a   : > { %v509_v13 = vpop.xlane.xlu1 %508 }
 0x21b   : > { %739 = vrsqrt.f32 %v528_v11  ;;  %v523_v14 = vmul.f32 0.03125, %v509_v13 }
 0x21c   : > { %741 = vrsqrt.f32 %v527_v12 }
 0x21d   : > { %v736_v15 = vpop.eup %735  ;;  %v533_v18 = vadd.f32 1e-05, %v523_v14 }
 0x21e   : > { %v546_v19 = vmul.f32 %v736_v15, %v865_v17  ;;  %v500_v20 = vpop.xlane.xlu0 %499  ;;  %v497_v21 = vpop.xlane.xlu1 %496 }
 0x21f   : > { %743 = vrsqrt.f32 %v533_v18  ;;  %v520_v24 = vmul.f32 0.03125, %v500_v20  ;;  %v519_v25 = vmul.f32 0.03125, %v497_v21 }
 0x220   : > { %v563_v26 = vmul.f32 %v920_v16, %v546_v19 }
 0x221   : > { %v738_v27 = vpop.eup %737  ;;  %v530_v17 = vadd.f32 1e-05, %v520_v24  ;;  %v529_v28 = vadd.f32 1e-05, %v519_v25 }
 0x222   : > { %v580_v29 = vadd.f32 %v926_v22, %v563_v26  ;;  %v552_v33 = vmul.f32 %v738_v27, %v870_v23  ;;  %v512_v34 = vpop.xlane.xlu0 %511  ;;  %v503_v35 = vpop.xlane.xlu1 %502 }
 0x223   : > { %745 = vrsqrt.f32 %v530_v17  ;;  %v524_v36 = vmul.f32 0.03125, %v512_v34  ;;  %v521_v38 = vmul.f32 0.03125, %v503_v35 }
 0x224   : > { %590 = vst.msk [vmem:[%s933_s19] sm:$0xff] %vm316_vm1, %v580_v29  ;;  %v569_v37 = vmul.f32 %v920_v16, %v552_v33  ;;  %747 = vrsqrt.f32 %v529_v28 }
 0x225   : > { %v740_v40 = vpop.eup %739  ;;  %v534_v41 = vadd.f32 1e-05, %v524_v36  ;;  %v531_v42 = vadd.f32 1e-05, %v521_v38 }
 0x226   : > { %v742_v43 = vpop.eup %741  ;;  %v586_v44 = vadd.f32 %v926_v22, %v569_v37  ;;  %v548_v23 = vmul.f32 %v740_v40, %v880_v32  ;;  %v515_v45 = vpop.xlane.xlu1 %514 }
 0x227   : > { %v547_v47 = vmul.f32 %v742_v43, %v878_v31  ;;  %749 = vrsqrt.f32 %v534_v41  ;;  %v525_v48 = vmul.f32 0.03125, %v515_v45 }
 0x228   : > { %596 = vst.msk [vmem:[%s933_s19 + $0x30] sm:$0xff] %vm316_vm1, %v586_v44  ;;  %v565_v49 = vmul.f32 %v920_v16, %v548_v23  ;;  %751 = vrsqrt.f32 %v531_v42 }
 0x229   : > { %v744_v51 = vpop.eup %743  ;;  %v564_v52 = vmul.f32 %v920_v16, %v547_v47  ;;  %v535_v53 = vadd.f32 1e-05, %v525_v48 }
 0x22a   : > { %v582_v54 = vadd.f32 %v926_v22, %v565_v49  ;;  %v553_v32 = vmul.f32 %v744_v51, %v876_v30 }
 0x22b   : > { %v581_v56 = vadd.f32 %v926_v22, %v564_v52  ;;  %753 = vrsqrt.f32 %v535_v53 }
 0x22c   : > { %592 = vst.msk [vmem:[%s933_s19 + $0x10] sm:$0xff] %vm316_vm1, %v582_v54  ;;  %v570_v31 = vmul.f32 %v920_v16, %v553_v32 }
 0x22d   : > { %v746_v57 = vpop.eup %745  ;;  %591 = vst.msk [vmem:[%s933_s19 + $0x8] sm:$0xff] %vm316_vm1, %v581_v56 }
 0x22e   : > { %v748_v58 = vpop.eup %747  ;;  %v587_v60 = vadd.f32 %v926_v22, %v570_v31  ;;  %v550_v61 = vmul.f32 %v746_v57, %v895_v46 }
 0x22f   : > { %v549_v62 = vmul.f32 %v748_v58, %v887_v39 }
 0x230   : > { %597 = vst.msk [vmem:[%s933_s19 + $0x38] sm:$0xff] %vm316_vm1, %v587_v60  ;;  %v567_v30 = vmul.f32 %v920_v16, %v550_v61 }
 0x231   : > { %v750_v63 = vpop.eup %749  ;;  %v566_v0 = vmul.f32 %v920_v16, %v549_v62 }
 0x232   : > { %v752_v1 = vpop.eup %751  ;;  %v584_v2 = vadd.f32 %v926_v22, %v567_v30  ;;  %v554_v3 = vmul.f32 %v750_v63, %v903_v55 }
 0x233   : > { %v583_v4 = vadd.f32 %v926_v22, %v566_v0  ;;  %v551_v46 = vmul.f32 %v752_v1, %v898_v50 }
 0x234   : > { %594 = vst.msk [vmem:[%s933_s19 + $0x20] sm:$0xff] %vm316_vm1, %v584_v2  ;;  %v571_v39 = vmul.f32 %v920_v16, %v554_v3 }
 0x235   : > { %v754_v5 = vpop.eup %753  ;;  %593 = vst.msk [vmem:[%s933_s19 + $0x18] sm:$0xff] %vm316_vm1, %v583_v4  ;;  %v568_v6 = vmul.f32 %v920_v16, %v551_v46 }
 0x236   : > { %v588_v7 = vadd.f32 %v926_v22, %v571_v39  ;;  %v555_v8 = vmul.f32 %v754_v5, %v908_v59 }
 0x237   : > { %v585_v9 = vadd.f32 %v926_v22, %v568_v6 }
 0x238   : > { %598 = vst.msk [vmem:[%s933_s19 + $0x40] sm:$0xff] %vm316_vm1, %v588_v7  ;;  %v572_v55 = vmul.f32 %v920_v16, %v555_v8 }
 0x239   : > { %595 = vst.msk [vmem:[%s933_s19 + $0x28] sm:$0xff] %vm316_vm1, %v585_v9 }
 0x23a   : > { %v589_v50 = vadd.f32 %v926_v22, %v572_v55 }
 0x23c   : > { %599 = vst.msk [vmem:[%s933_s19 + $0x48] sm:$0xff] %vm316_vm1, %v589_v50 }
 0x23d PF: > { %s16_s21 = sadd.s32 1, %s761_s21  }
 0x23e   : > { %p13_p4 = scmp.ge.s32.totalorder %s16_s21, 4  }
 0x240   :  { %15 = sbr.rel (!%p13_p4) target bundleno = 1 (0x1), region = 77 }

// kernel: run.9
= control target key start
LH: loop header
LB: loop body
LE: loop exit
PB: predicated region body
PF: predicated region fallthrough
CT: control target
= control target key end

     0   :  { %s1603_s13 = smov 0   ;;  %s1983_s0 = inlined_call_operand.vmem [shape: f32[160,32], index: 0, kind: input, shape index: {}]   ;;  %s1984_s1 = inlined_call_operand.vmem [shape: f32[160,32], index: 1, kind: input, shape index: {}]   ;;  %s1985_s2 = inlined_call_operand.vmem [shape: f32[160,1], index: 2, kind: input, shape index: {}]   ;;  %s1986_s3 = inlined_call_operand.vmem [shape: bf16[32,32], index: 3, kind: input, shape index: {}]   ;;  %s1987_s4 = inlined_call_operand.vmem [shape: f32[1,32], index: 4, kind: input, shape index: {}]   ;;  %s1988_s5 = inlined_call_operand.vmem [shape: bf16[32,48], index: 5, kind: input, shape index: {}]   ;;  %s1989_s6 = inlined_call_operand.vmem [shape: f32[1,48], index: 6, kind: input, shape index: {}]   ;;  %s1990_s7 = inlined_call_operand.vmem [shape: f32[16,16], index: 7, kind: input, shape index: {}]   ;;  %s1991_s8 = inlined_call_operand.vmem [shape: bf16[160,32], index: 8, kind: output, shape index: {0}]   ;;  %s1992_s9 = inlined_call_operand.vmem [shape: f32[160,32], index: 9, kind: output, shape index: {1}]   ;;  %s1993_s10 = inlined_call_operand.vmem [shape: f32[160,16], index: 10, kind: output, shape index: {2}]  }
   0x1 LB: > { %s1316_s14 = sadd.s32 4294967295, %s1541_s13   ;;  %p1320_p0 = scmp.ge.s32.totalorder %s1541_s13, 1  ;;  %s1541_s13 = sphi %s1603_s13, %s21_s13  }
   0x2   : > { %p340_p1 = scmp.lt.s32.totalorder %s1541_s13, 3 }
   0x4   : > { %p341_p2 = pnand %p1320_p0, %p340_p1 }
   0x5   : > { %v1491_v0 = vld [vmem:[%s1986_s3] sm:$0xff] (!%p341_p2)   ;;  %v1543_v1 = vmov (!%p341_p2), 0.0   ;;  %v1492_v2 = vld [vmem:[%s1986_s3 + $0x8] sm:$0xff] (!%p341_p2)   ;;  %vm1544_vm0 = vmmov (!%p341_p2), 0   ;;  %s398_s19 = smul.u32 (!%p341_p2), 10, %s1316_s14  ;;  %vm473_vm1 = vcmask (!%p341_p2), 261120  }
   0x6   : > { %344 = sbr.rel (%p341_p2) target bundleno = 1005 (0x3ed), region = 52  ;;  %1472 = vmatprep.subr.bf16.mxu1 (!%p341_p2), %v1543_v1  ;;  %1401 = vmatprep.subr.bf16.mxu0 (!%p341_p2), %v1543_v1  ;;  %v1493_v3 = vld [vmem:[%s1988_s5] sm:$0xff] (!%p341_p2)   ;;  %v1494_v13 = vld [vmem:[%s1988_s5 + $0x8] sm:$0xff] (!%p341_p2)   ;;  %vm829_vm2 = vcmask (!%p341_p2), 392448   ;;  %vm922_vm3 = vcmask (!%p341_p2), 130048   ;;  %s1547_s24 = smov (!%p341_p2), 32  }
   0x7   : > { %1474 = vmatpush3.bf16.msra.mxu1 (!%p341_p2), %v1491_v0  ;;  %1421 = vmatprep.mubr.msk.bf16.mxu1 (!%p341_p2), %vm1544_vm0, %v1543_v1  ;;  %p399_p3 = scmp.lt.s32.totalorder (!%p341_p2), %s398_s19, 19  ;;  %v1345_v45 = vld [vmem:[%s1989_s6] ss:$0 sm:$0xff] (!%p341_p2)  ;;  %vm672_vm4 = vcmask (!%p341_p2), 257024  }
   0x8   : > { %1473 = vmatprep.subr.bf16.mxu1 (!%p341_p2), %v1543_v1  ;;  %1402 = vmatpush3.bf16.msra.mxu0 (!%p341_p2), %v1491_v0 }
   0x9   : > { %1403 = vmatprep.subr.bf16.mxu0 (!%p341_p2), %v1543_v1  ;;  %1405 = vmatprep.mubr.msk.bf16.mxu0 (!%p341_p2), %vm1544_vm0, %v1543_v1 }
   0xb   : > { %1475 = vmatpush3.bf16.msra.mxu1 (!%p341_p2), %v1492_v2 }
   0xc   : > { %1425 = vmatprep.subr.bf16.mxu1 (!%p341_p2), %v1543_v1  ;;  %1404 = vmatpush3.bf16.msra.mxu0 (!%p341_p2), %v1492_v2 }
   0xd   : > { %s1995_s19 = smov (!%p399_p3, %s398_s19), 19 }
   0xe   : > { %s1629_s20 = sshll.u32 %s1995_s19, 3  ;;  %s1324_s30 = sshll.u32 %s1995_s19, 2 }
   0xf   : > { %s1635_s23 = scalar_lea.vmem %s1983_s0, %s1629_s20  ;;  %s1644_s28 = scalar_lea.vmem %s1984_s1, %s1629_s20 }
  0x10   : > { %v443_v4 = vld [vmem:[%s1635_s23 + $0x40] sm:$0xff]  ;;  %v444_v5 = vld [vmem:[%s1635_s23 + $0x48] sm:$0xff]  ;;  %v1666_v15 = vld [vmem:[%s1635_s23 + $0x10] sm:$0xff]  ;;  %s1721_s16 = scalar_lea.vmem %s1992_s9, %s1629_s20  ;;  %s414_s27 = scalar_lea.vmem %s1985_s2, %s1629_s20 }
  0x11   : > { %v1649_v6 = vld [vmem:[%s1635_s23] sm:$0xff]  ;;  %v449_v7 = vpack.c.bf16 %v444_v5, %v443_v4  ;;  %v1652_v8 = vld [vmem:[%s1635_s23 + $0x8] sm:$0xff]  ;;  %v1669_v16 = vld [vmem:[%s1635_s23 + $0x18] sm:$0xff]  ;;  %s1936_s14 = scalar_lea.vmem %s1991_s8, %s1324_s30 }
  0x12   : > { %v683_v9 = vld [vmem:[%s1644_s28] sm:$0xff]  ;;  %v684_v10 = vld [vmem:[%s1644_s28 + $0x8] sm:$0xff]  ;;  %v685_v17 = vld [vmem:[%s1644_s28 + $0x10] sm:$0xff] }
  0x13   : > { %1422 = vmatmul.mubr.msk.bf16.vlgmr.msra.gmra.mrb[0].mxu1 %vm473_vm1, %v449_v7  ;;  %v693_v11 = vadd.f32 %v683_v9, %v1649_v6  ;;  %v694_v12 = vadd.f32 %v684_v10, %v1652_v8  ;;  %v686_v18 = vld [vmem:[%s1644_s28 + $0x18] sm:$0xff]  ;;  %v695_v19 = vadd.f32 %v685_v17, %v1666_v15  ;;  %v1679_v22 = vld [vmem:[%s1635_s23 + $0x20] sm:$0xff]  ;;  %v1682_v23 = vld [vmem:[%s1635_s23 + $0x28] sm:$0xff] }
  0x14   : > { %1426 = vmatpush3.bf16.msra.mxu1 %v1493_v3  ;;  %1429 = vmatprep.mubr.msk.bf16.mxu1 %vm1544_vm0, %v1543_v1  ;;  %v696_v20 = vadd.f32 %v686_v18, %v1669_v16  ;;  %v687_v24 = vld [vmem:[%s1644_s28 + $0x20] sm:$0xff]  ;;  %v688_v25 = vld [vmem:[%s1644_s28 + $0x28] sm:$0xff]  ;;  %v1692_v29 = vld [vmem:[%s1635_s23 + $0x30] sm:$0xff] }
  0x15   : > { %1427 = vmatprep.subr.bf16.mxu1 %v1543_v1  ;;  %v703_v14 = vpack.c.bf16 %v694_v12, %v693_v11  ;;  %v697_v26 = vadd.f32 %v687_v24, %v1679_v22  ;;  %v698_v27 = vadd.f32 %v688_v25, %v1682_v23  ;;  %v1695_v30 = vld [vmem:[%s1635_s23 + $0x38] sm:$0xff]  ;;  %v689_v31 = vld [vmem:[%s1644_s28 + $0x30] sm:$0xff]  ;;  %v691_v36 = vld [vmem:[%s1644_s28 + $0x40] sm:$0xff]  ;;  %s1545_s23 = smov 96  }
  0x16   : > { %v704_v21 = vpack.c.bf16 %v696_v20, %v695_v19  ;;  %v690_v32 = vld [vmem:[%s1644_s28 + $0x38] sm:$0xff]  ;;  %v699_v33 = vadd.f32 %v689_v31, %v1692_v29  ;;  %v692_v37 = vld [vmem:[%s1644_s28 + $0x48] sm:$0xff]  ;;  %v701_v38 = vadd.f32 %v691_v36, %v443_v4  ;;  %v445_v31 = vpack.c.bf16 %v1652_v8, %v1649_v6 }
  0x17   : > { %v705_v28 = vpack.c.bf16 %v698_v27, %v697_v26  ;;  %v700_v34 = vadd.f32 %v690_v32, %v1695_v30  ;;  %v702_v39 = vadd.f32 %v692_v37, %v444_v5  ;;  %v890_v32 = vld [vmem:[%s1990_s7] sm:$0xff]  ;;  %v447_v6 = vpack.c.bf16 %v1682_v23, %v1679_v22 }
  0x18   : > { %1428 = vmatpush3.bf16.msra.mxu1 %v1494_v13  ;;  %1406 = vmatmul.mubr.msk.bf16.vlgmr.msra.gmra.mrb[0].mxu0 %vm473_vm1, %v445_v31  ;;  %v448_v8 = vpack.c.bf16 %v1695_v30, %v1692_v29 }
  0x19   : > { %v706_v35 = vpack.c.bf16 %v700_v34, %v699_v33  ;;  %v707_v40 = vpack.c.bf16 %v702_v39, %v701_v38  ;;  %v891_v33 = vld [vmem:[%s1990_s7 + $0x8] sm:$0xff]  ;;  %1409 = vmatprep.mubr.msk.bf16.mxu0 %vm1544_vm0, %v1543_v1 }
  0x1a   : > { %v1468_v34 = vpack.c.bf16 %v891_v33, %v890_v32 }
  0x1b   : > { %1430 = vmatmul.mubr.msk.bf16.vlgmr.msra.gmra.mrb[4].mxu1 %vm473_vm1, %v703_v14 }
  0x1c   : > { %1433 = vmatprep.mubr.msk.bf16.mxu1 %vm1544_vm0, %v1543_v1  ;;  %1469 = vmatprep.subr.bf16.mxu0 %v1468_v34 }
  0x1d   : > { %1471 = vmatpush3.bf16.msra.mxu0 %v1468_v34 }
  0x23   : > { %1434 = vmatmul.mubr.msk.bf16.gmra.mrb[8].mxu1 %vm473_vm1, %v704_v21 }
  0x24   : > { %1437 = vmatprep.mubr.msk.bf16.mxu1 %vm1544_vm0, %v1543_v1 }
  0x2b   : > { %1438 = vmatmul.mubr.msk.bf16.gmra.mrb[12].mxu1 %vm473_vm1, %v705_v28 }
  0x2c   : > { %1441 = vmatprep.mubr.msk.bf16.mxu1 %vm1544_vm0, %v1543_v1 }
  0x33   : > { %1442 = vmatmul.mubr.msk.bf16.gmra.mrb[16].mxu1 %vm473_vm1, %v706_v35  ;;  %v446_v35 = vpack.c.bf16 %v1669_v16, %v1666_v15 }
  0x34   : > { %1445 = vmatprep.mubr.msk.bf16.mxu1 %vm1544_vm0, %v1543_v1 }
  0x35   : > { %1410 = vmatmul.mubr.msk.bf16.gmra.mrb[4].mxu0 %vm473_vm1, %v446_v35 }
  0x36   : > { %1413 = vmatprep.mubr.msk.bf16.mxu0 %vm1544_vm0, %v1543_v1 }
  0x3b   : > { %1446 = vmatmul.mubr.msk.bf16.gmra.mrb[20].mxu1 %vm473_vm1, %v707_v40 }
  0x3d   : > { %1414 = vmatmul.mubr.msk.bf16.gmra.mrb[8].mxu0 %vm473_vm1, %v447_v6 }
  0x3e   : > { %1417 = vmatprep.mubr.msk.bf16.mxu0 %vm1544_vm0, %v1543_v1 }
  0x45   : > { %1418 = vmatmul.mubr.msk.bf16.gmra.mrb[12].mxu0 %vm473_vm1, %v448_v8 }
  0xe6   : > { %v1710_v41 = vpop.f32.mrb[0].mxu1 }
  0xe7   : > { %v1423_v42 = vpop.f32.mrb[1].mxu1 }
  0xe8   : > { %v1712_v43 = vpop.f32.mrb[2].mxu1 }
  0xe9   : > { %v1424_v44 = vpop.f32.mrb[3].mxu1 }
  0xee   : > { %v780_v46 = vpop.f32.mrb[4].mxu1 }
  0xef   : > { %v1723_v47 = vadd.f32 %v1345_v45, %v780_v46  ;;  %v1431_v48 = vpop.f32.mrb[5].mxu1 }
  0xf0   : > { %v783_v49 = vpop.f32.mrb[6].mxu1 }
  0xf1   : > { %819 = vst.msk [vmem:[%s1721_s16] sm:$0xff] %vm473_vm1, %v1723_v47  ;;  %v1728_v50 = vadd.f32 %v1345_v45, %v783_v49  ;;  %v1432_v51 = vpop.f32.mrb[7].mxu1  ;;  %v830_v52 = vsel %vm829_vm2, %v1723_v47, -inf }
  0xf2   : > { %831 = vmax.xlane.f32.xlu0 %v830_v52 }
  0xf3   : > { %820 = vst.msk [vmem:[%s1721_s16 + $0x8] sm:$0xff] %vm473_vm1, %v1728_v50  ;;  %v833_v53 = vsel %vm829_vm2, %v1728_v50, -inf }
  0xf6   : > { %834 = vmax.xlane.f32.xlu0 %v833_v53  ;;  %v788_v54 = vpop.f32.mrb[8].mxu1 }
  0xf7   : > { %v1737_v55 = vadd.f32 %v1345_v45, %v788_v54  ;;  %v1435_v56 = vpop.f32.mrb[9].mxu1 }
  0xf8   : > { %v791_v57 = vpop.f32.mrb[10].mxu1 }
  0xf9   : > { %821 = vst.msk [vmem:[%s1721_s16 + $0x10] sm:$0xff] %vm473_vm1, %v1737_v55  ;;  %v1742_v58 = vadd.f32 %v1345_v45, %v791_v57  ;;  %v1436_v59 = vpop.f32.mrb[11].mxu1  ;;  %v836_v60 = vsel %vm829_vm2, %v1737_v55, -inf }
  0xfa   : > { %837 = vmax.xlane.f32.xlu1 %v836_v60 }
  0xfb   : > { %822 = vst.msk [vmem:[%s1721_s16 + $0x18] sm:$0xff] %vm473_vm1, %v1742_v58  ;;  %v839_v61 = vsel %vm829_vm2, %v1742_v58, -inf }
  0xfe   : > { %840 = vmax.xlane.f32.xlu1 %v839_v61  ;;  %v796_v62 = vpop.f32.mrb[12].mxu1 }
  0xff   : > { %v1751_v63 = vadd.f32 %v1345_v45, %v796_v62  ;;  %v1439_v0 = vpop.f32.mrb[13].mxu1 }
 0x100   : > { %v799_v2 = vpop.f32.mrb[14].mxu1 }
 0x101   : > { %823 = vst.msk [vmem:[%s1721_s16 + $0x20] sm:$0xff] %vm473_vm1, %v1751_v63  ;;  %v1756_v3 = vadd.f32 %v1345_v45, %v799_v2  ;;  %v1440_v4 = vpop.f32.mrb[15].mxu1  ;;  %v842_v5 = vsel %vm829_vm2, %v1751_v63, -inf }
 0x102   : > { %843 = vmax.xlane.f32.xlu0 %v842_v5 }
 0x103   : > { %824 = vst.msk [vmem:[%s1721_s16 + $0x28] sm:$0xff] %vm473_vm1, %v1756_v3  ;;  %v845_v7 = vsel %vm829_vm2, %v1756_v3, -inf }
 0x104   : > { %846 = vmax.xlane.f32.xlu1 %v845_v7 }
 0x106   : > { %v804_v9 = vpop.f32.mrb[16].mxu1 }
 0x107   : > { %v1765_v10 = vadd.f32 %v1345_v45, %v804_v9  ;;  %v1443_v11 = vpop.f32.mrb[17].mxu1 }
 0x108   : > { %v807_v12 = vpop.f32.mrb[18].mxu1 }
 0x109   : > { %825 = vst.msk [vmem:[%s1721_s16 + $0x30] sm:$0xff] %vm473_vm1, %v1765_v10  ;;  %v1770_v13 = vadd.f32 %v1345_v45, %v807_v12  ;;  %v1444_v14 = vpop.f32.mrb[19].mxu1  ;;  %v848_v17 = vsel %vm829_vm2, %v1765_v10, -inf  ;;  %v1869_v12 = vpop.f32.mrb[0].mxu0 }
 0x10a   : > { %849 = vmax.xlane.f32.xlu0 %v848_v17 }
 0x10b   : > { %826 = vst.msk [vmem:[%s1721_s16 + $0x38] sm:$0xff] %vm473_vm1, %v1770_v13  ;;  %v851_v18 = vsel %vm829_vm2, %v1770_v13, -inf }
 0x10c   : > { %852 = vmax.xlane.f32.xlu1 %v851_v18 }
 0x10e   : > { %v812_v19 = vpop.f32.mrb[20].mxu1 }
 0x10f   : > { %v1779_v20 = vadd.f32 %v1345_v45, %v812_v19  ;;  %v1447_v21 = vpop.f32.mrb[21].mxu1 }
 0x110   : > { %v815_v24 = vpop.f32.mrb[22].mxu1 }
 0x111   : > { %827 = vst.msk [vmem:[%s1721_s16 + $0x40] sm:$0xff] %vm473_vm1, %v1779_v20  ;;  %v1784_v25 = vadd.f32 %v1345_v45, %v815_v24  ;;  %v1448_v26 = vpop.f32.mrb[23].mxu1  ;;  %v854_v27 = vsel %vm829_vm2, %v1779_v20, -inf }
 0x112   : > { %855 = vmax.xlane.f32.xlu0 %v854_v27 }
 0x113   : > { %828 = vst.msk [vmem:[%s1721_s16 + $0x48] sm:$0xff] %vm473_vm1, %v1784_v25  ;;  %v857_v28 = vsel %vm829_vm2, %v1784_v25, -inf  ;;  %s432_s16 = scalar_lea.vmem %s1993_s10, %s1629_s20 }
 0x114   : > { %858 = vmax.xlane.f32.xlu1 %v857_v28 }
 0x17f   : > { %v832_v36 = vpop.xlane.xlu0 %831 }
 0x180   : > { %v860_v15 = vsub.f32 %v1723_v47, %v832_v36 }
 0x182   : > { %v870_v16 = vmul.f32 1.442695, %v860_v15 }
 0x183   : > { %v835_v37 = vpop.xlane.xlu0 %834 }
 0x184   : > { %1495 = vpow2.f32 %v870_v16  ;;  %v861_v38 = vsub.f32 %v1728_v50, %v835_v37 }
 0x186   : > { %v872_v39 = vmul.f32 1.442695, %v861_v38  ;;  %v1546_v38 = vmov 0  }
 0x187   : > { %v838_v22 = vpop.xlane.xlu1 %837  ;;  %1490 = vset.pattern.permute.xlu1 %v1546_v38  ;;  %1489 = vset.pattern.permute.xlu0 %v1546_v38 }
 0x188   : > { %1497 = vpow2.f32 %v872_v39  ;;  %v862_v23 = vsub.f32 %v1737_v55, %v838_v22 }
 0x18a   : > { %v874_v40 = vmul.f32 1.442695, %v862_v23 }
 0x18b   : > { %v841_v1 = vpop.xlane.xlu1 %840 }
 0x18c   : > { %1499 = vpow2.f32 %v874_v40  ;;  %v863_v29 = vsub.f32 %v1742_v58, %v841_v1 }
 0x18e   : > { %v1821_v30 = vpop.eup %1495  ;;  %v876_v42 = vmul.f32 1.442695, %v863_v29 }
 0x18f   : > { %v844_v44 = vpop.xlane.xlu0 %843  ;;  %902 = vrot.lane.b32.xlu0 %v1821_v30, %s1545_s23 }
 0x190   : > { %1501 = vpow2.f32 %v876_v42  ;;  %v864_v45 = vsub.f32 %v1751_v63, %v844_v44 }
 0x191   : > { %v847_v46 = vpop.xlane.xlu1 %846 }
 0x192   : > { %v1826_v47 = vpop.eup %1497  ;;  %v878_v48 = vmul.f32 1.442695, %v864_v45  ;;  %v865_v49 = vsub.f32 %v1756_v3, %v847_v46 }
 0x193   : > { %904 = vrot.lane.b32.xlu1 %v1826_v47, %s1545_s23 }
 0x194   : > { %1503 = vpow2.f32 %v878_v48  ;;  %v880_v50 = vmul.f32 1.442695, %v865_v49 }
 0x196   : > { %v1831_v51 = vpop.eup %1499  ;;  %1505 = vpow2.f32 %v880_v50 }
 0x197   : > { %v850_v52 = vpop.xlane.xlu0 %849  ;;  %906 = vrot.lane.b32.xlu1 %v1831_v51, %s1545_s23 }
 0x198   : > { %v866_v53 = vsub.f32 %v1765_v10, %v850_v52 }
 0x199   : > { %v853_v54 = vpop.xlane.xlu1 %852 }
 0x19a   : > { %v1836_v55 = vpop.eup %1501  ;;  %v882_v56 = vmul.f32 1.442695, %v866_v53  ;;  %v867_v57 = vsub.f32 %v1770_v13, %v853_v54  ;;  %v1407_v13 = vpop.f32.mrb[1].mxu0 }
 0x19b   : > { %908 = vrot.lane.b32.xlu1 %v1836_v55, %s1545_s23  ;;  %v1871_v14 = vpop.f32.mrb[2].mxu0  ;;  %v569_v13 = vld [vmem:[%s414_s27 + $0x38] sm:$0xff] }
 0x19c   : > { %1507 = vpow2.f32 %v882_v56  ;;  %v884_v58 = vmul.f32 1.442695, %v867_v57  ;;  %v1408_v18 = vpop.f32.mrb[3].mxu0 }
 0x19d   : > { %v571_v18 = vld [vmem:[%s414_s27 + $0x48] sm:$0xff] }
 0x19e   : > { %v1841_v59 = vpop.eup %1503  ;;  %1509 = vpow2.f32 %v884_v58 }
 0x19f   : > { %910 = vrot.lane.b32.xlu0 %v1841_v59, %s1545_s23  ;;  %v856_v60 = vpop.xlane.xlu0 %855 }
 0x1a0   : > { %v1845_v61 = vpop.eup %1505  ;;  %v868_v62 = vsub.f32 %v1779_v20, %v856_v60  ;;  %v1875_v20 = vpop.f32.mrb[4].mxu0 }
 0x1a1   : > { %912 = vrot.lane.b32.xlu1 %v1845_v61, %s1545_s23  ;;  %v859_v63 = vpop.xlane.xlu1 %858  ;;  %v1411_v21 = vpop.f32.mrb[5].mxu0 }
 0x1a2   : > { %v886_v0 = vmul.f32 1.442695, %v868_v62  ;;  %v869_v2 = vsub.f32 %v1784_v25, %v859_v63  ;;  %v1877_v24 = vpop.f32.mrb[6].mxu0  ;;  %v563_v62 = vld [vmem:[%s414_s27 + $0x8] sm:$0xff]  ;;  %v562_v63 = vld [vmem:[%s414_s27] sm:$0xff] }
 0x1a3   : > { %v1412_v26 = vpop.f32.mrb[7].mxu0 }
 0x1a4   : > { %1511 = vpow2.f32 %v886_v0  ;;  %v888_v3 = vmul.f32 1.442695, %v869_v2  ;;  %v1881_v28 = vpop.f32.mrb[8].mxu0  ;;  %v564_v0 = vld [vmem:[%s414_s27 + $0x10] sm:$0xff]  ;;  %v565_v2 = vld [vmem:[%s414_s27 + $0x18] sm:$0xff] }
 0x1a5   : > { %v1415_v31 = vpop.f32.mrb[9].mxu0 }
 0x1a6   : > { %v1851_v4 = vpop.eup %1507  ;;  %1513 = vpow2.f32 %v888_v3  ;;  %v1883_v32 = vpop.f32.mrb[10].mxu0  ;;  %v566_v3 = vld [vmem:[%s414_s27 + $0x20] sm:$0xff] }
 0x1a7   : > { %914 = vrot.lane.b32.xlu0 %v1851_v4, %s1545_s23  ;;  %v1416_v34 = vpop.f32.mrb[11].mxu0 }
 0x1a8   : > { %v1855_v5 = vpop.eup %1509  ;;  %v1887_v6 = vpop.f32.mrb[12].mxu0 }
 0x1a9   : > { %916 = vrot.lane.b32.xlu1 %v1855_v5, %s1545_s23  ;;  %v1419_v8 = vpop.f32.mrb[13].mxu0 }
 0x1aa   : > { %v1889_v36 = vpop.f32.mrb[14].mxu0 }
 0x1ab   : > { %v1420_v16 = vpop.f32.mrb[15].mxu0 }
 0x1ae   : > { %v1859_v7 = vpop.eup %1511 }
 0x1af   : > { %918 = vrot.lane.b32.xlu0 %v1859_v7, %s1545_s23 }
 0x1b0   : > { %v1863_v9 = vpop.eup %1513 }
 0x1b1   : > { %920 = vrot.lane.b32.xlu1 %v1863_v9, %s1545_s23 }
 0x201   : > { %v903_v10 = vpop.permute.xlu0 %902 }
 0x202   : > { %1453 = vmatprep.mubr.msk.f32.mxu0 %vm922_vm3, %v903_v10  ;;  %v567_v10 = vld [vmem:[%s414_s27 + $0x28] sm:$0xff] }
 0x205   : > { %v905_v11 = vpop.permute.xlu1 %904 }
 0x206   : > { %1454 = vmatmul.mubr.msk.f32.vlgmr.msra.gmra.mrb[16].mxu0 %vm922_vm3, %v905_v11  ;;  %v568_v11 = vld [vmem:[%s414_s27 + $0x30] sm:$0xff] }
 0x209   : > { %v907_v17 = vpop.permute.xlu1 %906 }
 0x20a   : > { %1456 = vmatprep.mubr.msk.f32.mxu0 %vm922_vm3, %v907_v17  ;;  %v570_v17 = vld [vmem:[%s414_s27 + $0x40] sm:$0xff] }
 0x20d   : > { %v909_v19 = vpop.permute.xlu1 %908 }
 0x20e   : > { %1457 = vmatmul.mubr.msk.f32.gmra.mrb[18].mxu0 %vm922_vm3, %v909_v19 }
 0x211   : > { %v911_v25 = vpop.permute.xlu0 %910 }
 0x212   : > { %1459 = vmatprep.mubr.msk.f32.mxu0 %vm922_vm3, %v911_v25 }
 0x213   : > { %v913_v27 = vpop.permute.xlu1 %912 }
 0x214   : > { %1460 = vmatmul.mubr.msk.f32.gmra.mrb[20].mxu0 %vm922_vm3, %v913_v27 }
 0x219   : > { %v915_v33 = vpop.permute.xlu0 %914 }
 0x21a   : > { %1462 = vmatprep.mubr.msk.f32.mxu0 %vm922_vm3, %v915_v33 }
 0x21b   : > { %v917_v35 = vpop.permute.xlu1 %916 }
 0x21c   : > { %1463 = vmatmul.mubr.msk.f32.gmra.mrb[22].mxu0 %vm922_vm3, %v917_v35 }
 0x221   : > { %v919_v15 = vpop.permute.xlu0 %918 }
 0x222   : > { %1465 = vmatprep.mubr.msk.f32.mxu0 %vm922_vm3, %v919_v15 }
 0x223   : > { %v921_v37 = vpop.permute.xlu1 %920 }
 0x224   : > { %1466 = vmatmul.mubr.msk.f32.gmra.mrb[24].mxu0 %vm922_vm3, %v921_v37 }
 0x2d9   : > { %v1455_v39 = vpop.f32.mrb[16].mxu0 }
 0x2da   : > { %1515 = vrcp.f32 %v1455_v39  ;;  %v1009_v22 = vpop.f32.mrb[17].mxu0 }
 0x2db   : > { %1517 = vrcp.f32 %v1009_v22 }
 0x2e1   : > { %v1458_v23 = vpop.f32.mrb[18].mxu0 }
 0x2e2   : > { %1519 = vrcp.f32 %v1458_v23  ;;  %v1019_v40 = vpop.f32.mrb[19].mxu0 }
 0x2e3   : > { %1521 = vrcp.f32 %v1019_v40 }
 0x2e4   : > { %v1516_v1 = vpop.eup %1515 }
 0x2e5   : > { %v1518_v29 = vpop.eup %1517  ;;  %1080 = vrot.lane.b32.xlu1 %v1516_v1, %s1547_s24 }
 0x2e6   : > { %1078 = vrot.lane.b32.xlu0 %v1518_v29, %s1547_s24 }
 0x2e7   : > { %v1461_v42 = vpop.f32.mrb[20].mxu0 }
 0x2e8   : > { %1523 = vrcp.f32 %v1461_v42  ;;  %v1029_v44 = vpop.f32.mrb[21].mxu0 }
 0x2e9   : > { %1525 = vrcp.f32 %v1029_v44 }
 0x2ec   : > { %v1520_v45 = vpop.eup %1519 }
 0x2ed   : > { %v1522_v46 = vpop.eup %1521  ;;  %1084 = vrot.lane.b32.xlu1 %v1520_v45, %s1547_s24 }
 0x2ee   : > { %1082 = vrot.lane.b32.xlu0 %v1522_v46, %s1547_s24 }
 0x2ef   : > { %v1464_v48 = vpop.f32.mrb[22].mxu0 }
 0x2f0   : > { %1527 = vrcp.f32 %v1464_v48  ;;  %v1039_v49 = vpop.f32.mrb[23].mxu0 }
 0x2f1   : > { %1529 = vrcp.f32 %v1039_v49 }
 0x2f2   : > { %v1524_v50 = vpop.eup %1523 }
 0x2f3   : > { %v1526_v52 = vpop.eup %1525  ;;  %1088 = vrot.lane.b32.xlu1 %v1524_v50, %s1547_s24 }
 0x2f4   : > { %1086 = vrot.lane.b32.xlu0 %v1526_v52, %s1547_s24 }
 0x2f7   : > { %v1467_v53 = vpop.f32.mrb[24].mxu0 }
 0x2f8   : > { %1531 = vrcp.f32 %v1467_v53  ;;  %v1049_v54 = vpop.f32.mrb[25].mxu0 }
 0x2f9   : > { %1533 = vrcp.f32 %v1049_v54 }
 0x2fa   : > { %v1528_v56 = vpop.eup %1527 }
 0x2fb   : > { %v1530_v57 = vpop.eup %1529  ;;  %1092 = vrot.lane.b32.xlu1 %v1528_v56, %s1547_s24 }
 0x2fc   : > { %1090 = vrot.lane.b32.xlu0 %v1530_v57, %s1547_s24 }
 0x302   : > { %v1532_v58 = vpop.eup %1531 }
 0x303   : > { %v1534_v60 = vpop.eup %1533  ;;  %1096 = vrot.lane.b32.xlu1 %v1532_v58, %s1547_s24 }
 0x304   : > { %1094 = vrot.lane.b32.xlu0 %v1534_v60, %s1547_s24 }
 0x307   : > { %579 = vperm.xlu1 %1490, %v563_v62  }
 0x308   : > { %574 = vperm.xlu0 %1489, %v562_v63  }
 0x30b   : > { %584 = vperm.xlu1 %1490, %v564_v0  }
 0x30c   : > { %589 = vperm.xlu0 %1489, %v565_v2  }
 0x30f   : > { %594 = vperm.xlu1 %1490, %v566_v3  }
 0x310   : > { %599 = vperm.xlu0 %1489, %v567_v10  }
 0x313   : > { %604 = vperm.xlu1 %1490, %v568_v11  }
 0x314   : > { %609 = vperm.xlu0 %1489, %v569_v13  }
 0x317   : > { %614 = vperm.xlu1 %1490, %v570_v17  }
 0x318   : > { %619 = vperm.xlu0 %1489, %v571_v18  }
 0x357   : > { %v1081_v19 = vpop.permute.xlu1 %1080 }
 0x358   : > { %v1109_v21 = vmul.f32 %v1826_v47, %v1081_v19  ;;  %v1079_v25 = vpop.permute.xlu0 %1078 }
 0x359   : > { %v1108_v26 = vmul.f32 %v1821_v30, %v1079_v25 }
 0x35a   : > { %1130 = vrot.lane.b32.xlu0 %v1109_v21, %s1545_s23 }
 0x35b   : > { %1128 = vrot.lane.b32.xlu1 %v1108_v26, %s1545_s23 }
 0x35f   : > { %v1085_v27 = vpop.permute.xlu1 %1084 }
 0x360   : > { %v1111_v31 = vmul.f32 %v1836_v55, %v1085_v27  ;;  %v1083_v33 = vpop.permute.xlu0 %1082 }
 0x361   : > { %v1110_v34 = vmul.f32 %v1831_v51, %v1083_v33 }
 0x362   : > { %1134 = vrot.lane.b32.xlu0 %v1111_v31, %s1545_s23 }
 0x363   : > { %1132 = vrot.lane.b32.xlu1 %v1110_v34, %s1545_s23 }
 0x365   : > { %v1089_v35 = vpop.permute.xlu1 %1088 }
 0x366   : > { %v1113_v47 = vmul.f32 %v1845_v61, %v1089_v35  ;;  %v1087_v8 = vpop.permute.xlu0 %1086 }
 0x367   : > { %v1112_v30 = vmul.f32 %v1841_v59, %v1087_v8 }
 0x368   : > { %1138 = vrot.lane.b32.xlu0 %v1113_v47, %s1545_s23 }
 0x369   : > { %1136 = vrot.lane.b32.xlu1 %v1112_v30, %s1545_s23 }
 0x36d   : > { %v1093_v15 = vpop.permute.xlu1 %1092 }
 0x36e   : > { %v1115_v55 = vmul.f32 %v1855_v5, %v1093_v15  ;;  %v1091_v16 = vpop.permute.xlu0 %1090  ;;  %v1327_v5 = vld [vmem:[%s1987_s4] ss:$0 sm:$0xff] }
 0x36f   : > { %v1114_v51 = vmul.f32 %v1851_v4, %v1091_v16  ;;  %v527_v4 = vadd.f32 %v1327_v5, %v1871_v14  ;;  %v524_v39 = vadd.f32 %v1327_v5, %v1869_v12  ;;  %v535_v14 = vadd.f32 %v1327_v5, %v1877_v24 }
 0x370   : > { %1142 = vrot.lane.b32.xlu0 %v1115_v55, %s1545_s23  ;;  %v540_v46 = vadd.f32 %v1327_v5, %v1881_v28  ;;  %v543_v49 = vadd.f32 %v1327_v5, %v1883_v32  ;;  %v548_v54 = vadd.f32 %v1327_v5, %v1887_v6  ;;  %v551_v57 = vadd.f32 %v1327_v5, %v1889_v36 }
 0x371   : > { %1140 = vrot.lane.b32.xlu1 %v1114_v51, %s1545_s23  ;;  %v556_v63 = vadd.f32 %v1327_v5, %v1710_v41  ;;  %v559_v6 = vadd.f32 %v1327_v5, %v1712_v43 }
 0x375   : > { %v1097_v37 = vpop.permute.xlu1 %1096 }
 0x376   : > { %v1117_v61 = vmul.f32 %v1863_v9, %v1097_v37  ;;  %v1095_v38 = vpop.permute.xlu0 %1094  ;;  %v532_v9 = vadd.f32 %v1327_v5, %v1875_v20 }
 0x377   : > { %v1116_v59 = vmul.f32 %v1859_v7, %v1095_v38 }
 0x378   : > { %1146 = vrot.lane.b32.xlu0 %v1117_v61, %s1545_s23 }
 0x379   : > { %1144 = vrot.lane.b32.xlu1 %v1116_v59, %s1545_s23 }
 0x386   : > { %v580_v22 = vpop.permute.xlu1 %579 }
 0x387   : > { %v623_v23 = vmul.f32 %v580_v22, %v527_v4  ;;  %v575_v40 = vpop.permute.xlu0 %574 }
 0x388   : > { %v622_v7 = vmul.f32 %v575_v40, %v524_v39 }
 0x389   : > { %v1366_v1 = vpack.c.bf16 %v623_v23, %v623_v23 }
 0x38a   : > { %v1365_v12 = vpack.c.bf16 %v622_v7, %v622_v7  ;;  %v585_v29 = vpop.permute.xlu1 %584 }
 0x38b   : > { %674 = vst.msk [vmem:[%s1936_s14 + $0x4] sm:$0xf] %vm672_vm4, %v1366_v1  ;;  %v624_v42 = vmul.f32 %v585_v29, %v532_v9  ;;  %v590_v44 = vpop.permute.xlu0 %589 }
 0x38c   : > { %673 = vst.msk [vmem:[%s1936_s14] sm:$0xf] %vm672_vm4, %v1365_v12  ;;  %v625_v45 = vmul.f32 %v590_v44, %v535_v14 }
 0x38d   : > { %v1367_v48 = vpack.c.bf16 %v624_v42, %v624_v42 }
 0x38e   : > { %v1368_v20 = vpack.c.bf16 %v625_v45, %v625_v45  ;;  %v595_v50 = vpop.permute.xlu1 %594 }
 0x38f   : > { %675 = vst.msk [vmem:[%s1936_s14 + $0x8] sm:$0xf] %vm672_vm4, %v1367_v48  ;;  %v626_v24 = vmul.f32 %v595_v50, %v540_v46  ;;  %v600_v52 = vpop.permute.xlu0 %599 }
 0x390   : > { %676 = vst.msk [vmem:[%s1936_s14 + $0xc] sm:$0xf] %vm672_vm4, %v1368_v20  ;;  %v627_v53 = vmul.f32 %v600_v52, %v543_v49 }
 0x391   : > { %v1369_v56 = vpack.c.bf16 %v626_v24, %v626_v24 }
 0x392   : > { %v1370_v28 = vpack.c.bf16 %v627_v53, %v627_v53  ;;  %v605_v58 = vpop.permute.xlu1 %604 }
 0x393   : > { %677 = vst.msk [vmem:[%s1936_s14 + $0x10] sm:$0xf] %vm672_vm4, %v1369_v56  ;;  %v628_v32 = vmul.f32 %v605_v58, %v548_v54  ;;  %v610_v60 = vpop.permute.xlu0 %609 }
 0x394   : > { %678 = vst.msk [vmem:[%s1936_s14 + $0x14] sm:$0xf] %vm672_vm4, %v1370_v28  ;;  %v629_v62 = vmul.f32 %v610_v60, %v551_v57 }
 0x395   : > { %v1371_v0 = vpack.c.bf16 %v628_v32, %v628_v32 }
 0x396   : > { %v1372_v2 = vpack.c.bf16 %v629_v62, %v629_v62  ;;  %v615_v36 = vpop.permute.xlu1 %614 }
 0x397   : > { %679 = vst.msk [vmem:[%s1936_s14 + $0x18] sm:$0xf] %vm672_vm4, %v1371_v0  ;;  %v630_v3 = vmul.f32 %v615_v36, %v556_v63  ;;  %v620_v10 = vpop.permute.xlu0 %619 }
 0x398   : > { %680 = vst.msk [vmem:[%s1936_s14 + $0x1c] sm:$0xf] %vm672_vm4, %v1372_v2  ;;  %v631_v11 = vmul.f32 %v620_v10, %v559_v6 }
 0x399   : > { %v1373_v13 = vpack.c.bf16 %v630_v3, %v630_v3 }
 0x39a   : > { %v1374_v17 = vpack.c.bf16 %v631_v11, %v631_v11 }
 0x39b   : > { %681 = vst.msk [vmem:[%s1936_s14 + $0x20] sm:$0xf] %vm672_vm4, %v1373_v13 }
 0x39c   : > { %682 = vst.msk [vmem:[%s1936_s14 + $0x24] sm:$0xf] %vm672_vm4, %v1374_v17 }
 0x3cc   : > { %v1131_v41 = vpop.permute.xlu0 %1130 }
 0x3cd   : > { %1159 = vst.msk [vmem:[%s432_s16 + $0x8] sm:$0xff] %vm922_vm3, %v1131_v41  ;;  %v1129_v43 = vpop.permute.xlu1 %1128 }
 0x3ce   : > { %1158 = vst.msk [vmem:[%s432_s16] sm:$0xff] %vm922_vm3, %v1129_v43 }
 0x3d4   : > { %v1135_v18 = vpop.permute.xlu0 %1134 }
 0x3d5   : > { %1161 = vst.msk [vmem:[%s432_s16 + $0x18] sm:$0xff] %vm922_vm3, %v1135_v18  ;;  %v1133_v19 = vpop.permute.xlu1 %1132 }
 0x3d6   : > { %1160 = vst.msk [vmem:[%s432_s16 + $0x10] sm:$0xff] %vm922_vm3, %v1133_v19 }
 0x3da   : > { %v1139_v21 = vpop.permute.xlu0 %1138 }
 0x3db   : > { %1163 = vst.msk [vmem:[%s432_s16 + $0x28] sm:$0xff] %vm922_vm3, %v1139_v21  ;;  %v1137_v25 = vpop.permute.xlu1 %1136 }
 0x3dc   : > { %1162 = vst.msk [vmem:[%s432_s16 + $0x20] sm:$0xff] %vm922_vm3, %v1137_v25 }
 0x3e2   : > { %v1143_v26 = vpop.permute.xlu0 %1142 }
 0x3e3   : > { %1165 = vst.msk [vmem:[%s432_s16 + $0x38] sm:$0xff] %vm922_vm3, %v1143_v26  ;;  %v1141_v27 = vpop.permute.xlu1 %1140 }
 0x3e4   : > { %1164 = vst.msk [vmem:[%s432_s16 + $0x30] sm:$0xff] %vm922_vm3, %v1141_v27 }
 0x3ea   : > { %v1147_v31 = vpop.permute.xlu0 %1146 }
 0x3eb   : > { %1167 = vst.msk [vmem:[%s432_s16 + $0x48] sm:$0xff] %vm922_vm3, %v1147_v31  ;;  %v1145_v33 = vpop.permute.xlu1 %1144 }
 0x3ec   : > { %1166 = vst.msk [vmem:[%s432_s16 + $0x40] sm:$0xff] %vm922_vm3, %v1145_v33 }
 0x3ed PF: > { %s21_s13 = sadd.s32 1, %s1541_s13  }
 0x3ee   : > { %p18_p4 = scmp.ge.s32.totalorder %s21_s13, 4  }
 0x3f0   :  { %20 = sbr.rel (!%p18_p4) target bundleno = 1 (0x1), region = 112 }

// kernel: run.8
= control target key start
LH: loop header
LB: loop body
LE: loop exit
PB: predicated region body
PF: predicated region fallthrough
CT: control target
= control target key end

     0   :  { %s977_s24 = smov 0   ;;  %s1223_s0 = inlined_call_operand.vmem [shape: f32[160,32], index: 0, kind: input, shape index: {}]   ;;  %s1224_s1 = inlined_call_operand.vmem [shape: bf16[32,64], index: 1, kind: input, shape index: {}]   ;;  %s1225_s2 = inlined_call_operand.vmem [shape: f32[1,64], index: 2, kind: input, shape index: {}]   ;;  %s1226_s3 = inlined_call_operand.vmem [shape: bf16[64,32], index: 3, kind: input, shape index: {}]   ;;  %s1227_s4 = inlined_call_operand.vmem [shape: f32[1,32], index: 4, kind: input, shape index: {}]   ;;  %s1228_s5 = inlined_call_operand.vmem [shape: f32[1,32], index: 5, kind: input, shape index: {}]   ;;  %s1229_s6 = inlined_call_operand.vmem [shape: f32[1,32], index: 6, kind: input, shape index: {}]   ;;  %s1230_s7 = inlined_call_operand.vmem [shape: f32[160,32], index: 7, kind: output, shape index: {}]  }
   0x1 LB: > { %s794_s25 = sadd.s32 4294967295, %s933_s24   ;;  %p798_p0 = scmp.ge.s32.totalorder %s933_s24, 1  ;;  %s933_s24 = sphi %s977_s24, %s17_s24  }
   0x2   : > { %p238_p1 = scmp.lt.s32.totalorder %s933_s24, 3 }
   0x4   : > { %p239_p2 = pnand %p798_p0, %p238_p1 }
   0x5   : > { %v901_v0 = vld [vmem:[%s1224_s1] sm:$0xff] (!%p239_p2)   ;;  %v935_v1 = vmov (!%p239_p2), 0.0   ;;  %v902_v2 = vld [vmem:[%s1224_s1 + $0x8] sm:$0xff] (!%p239_p2)   ;;  %vm936_vm0 = vmmov (!%p239_p2), 0   ;;  %s270_s30 = smul.u32 (!%p239_p2), 10, %s794_s25  ;;  %vm321_vm1 = vcmask (!%p239_p2), 261120  }
   0x6   : > { %242 = sbr.rel (%p239_p2) target bundleno = 803 (0x323), region = 48  ;;  %839 = vmatprep.subr.bf16.mxu0 (!%p239_p2), %v935_v1  ;;  %863 = vmatprep.subr.bf16.mxu1 (!%p239_p2), %v935_v1  ;;  %v903_v3 = vld [vmem:[%s1226_s3] sm:$0xff] (!%p239_p2)   ;;  %v904_v4 = vld [vmem:[%s1226_s3 + $0x8] sm:$0xff] (!%p239_p2)   ;;  %v905_v20 = vld [vmem:[%s1226_s3 + $0x10] sm:$0xff] (!%p239_p2)   ;;  %vm464_vm2 = vcmask (!%p239_p2), 523264  }
   0x7   : > { %840 = vmatpush3.bf16.msra.mxu0 (!%p239_p2), %v901_v0  ;;  %843 = vmatprep.mubr.msk.bf16.mxu0 (!%p239_p2), %vm936_vm0, %v935_v1  ;;  %p271_p3 = scmp.lt.s32.totalorder (!%p239_p2), %s270_s30, 19  ;;  %v906_v21 = vld [vmem:[%s1226_s3 + $0x18] sm:$0xff] (!%p239_p2)   ;;  %v801_v22 = vld [vmem:[%s1225_s2] ss:$0 sm:$0xff] (!%p239_p2) }
   0x8   : > { %841 = vmatprep.subr.bf16.mxu0 (!%p239_p2), %v935_v1  ;;  %871 = vmatprep.mubr.msk.bf16.mxu1 (!%p239_p2), %vm936_vm0, %v935_v1 }
   0x9   : > { %864 = vmatpush3.bf16.msra.mxu1 (!%p239_p2), %v903_v3 }
   0xa   : > { %865 = vmatprep.subr.bf16.mxu1 (!%p239_p2), %v935_v1 }
   0xb   : > { %842 = vmatpush3.bf16.msra.mxu0 (!%p239_p2), %v902_v2 }
   0xd   : > { %s1232_s30 = smov (!%p271_p3, %s270_s30), 19  ;;  %866 = vmatpush3.bf16.msra.mxu1 %v904_v4 }
   0xe   : > { %s799_s12 = sshll.u32 %s1232_s30, 3  ;;  %867 = vmatprep.subr.bf16.mxu1 %v935_v1 }
   0xf   : > { %s274_s15 = scalar_lea.vmem %s1223_s0, %s799_s12  ;;  %s1170_s9 = scalar_lea.vmem %s1230_s7, %s799_s12 }
  0x10   : > { %v1013_v5 = vld [vmem:[%s274_s15] sm:$0xff]  ;;  %v1015_v6 = vld [vmem:[%s274_s15 + $0x8] sm:$0xff]  ;;  %v1023_v8 = vld [vmem:[%s274_s15 + $0x10] sm:$0xff] }
  0x11   : > { %v293_v7 = vpack.c.bf16 %v1015_v6, %v1013_v5  ;;  %v1025_v9 = vld [vmem:[%s274_s15 + $0x18] sm:$0xff]  ;;  %v1032_v11 = vld [vmem:[%s274_s15 + $0x20] sm:$0xff]  ;;  %v1034_v12 = vld [vmem:[%s274_s15 + $0x28] sm:$0xff]  ;;  %868 = vmatpush3.bf16.msra.mxu1 %v905_v20 }
  0x12   : > { %v294_v10 = vpack.c.bf16 %v1025_v9, %v1023_v8  ;;  %v295_v13 = vpack.c.bf16 %v1034_v12, %v1032_v11  ;;  %v1041_v14 = vld [vmem:[%s274_s15 + $0x30] sm:$0xff]  ;;  %v1043_v15 = vld [vmem:[%s274_s15 + $0x38] sm:$0xff]  ;;  %v1050_v17 = vld [vmem:[%s274_s15 + $0x40] sm:$0xff]  ;;  %869 = vmatprep.subr.bf16.mxu1 %v935_v1 }
  0x13   : > { %844 = vmatmul.mubr.msk.bf16.vlgmr.msra.gmra.mrb[0].mxu0 %vm321_vm1, %v293_v7  ;;  %v296_v16 = vpack.c.bf16 %v1043_v15, %v1041_v14  ;;  %v1052_v18 = vld [vmem:[%s274_s15 + $0x48] sm:$0xff]  ;;  %v809_v7 = vld [vmem:[%s1227_s4] ss:$0 sm:$0xff] }
  0x14   : > { %847 = vmatprep.mubr.msk.bf16.mxu0 %vm936_vm0, %v935_v1  ;;  %v297_v19 = vpack.c.bf16 %v1052_v18, %v1050_v17 }
  0x15   : > { %870 = vmatpush3.bf16.msra.mxu1 %v906_v21 }
  0x1b   : > { %848 = vmatmul.mubr.msk.bf16.gmra.mrb[4].mxu0 %vm321_vm1, %v294_v10 }
  0x1c   : > { %851 = vmatprep.mubr.msk.bf16.mxu0 %vm936_vm0, %v935_v1 }
  0x23   : > { %852 = vmatmul.mubr.msk.bf16.gmra.mrb[8].mxu0 %vm321_vm1, %v295_v13 }
  0x24   : > { %855 = vmatprep.mubr.msk.bf16.mxu0 %vm936_vm0, %v935_v1 }
  0x2b   : > { %856 = vmatmul.mubr.msk.bf16.gmra.mrb[12].mxu0 %vm321_vm1, %v296_v16 }
  0x2c   : > { %859 = vmatprep.mubr.msk.bf16.mxu0 %vm936_vm0, %v935_v1 }
  0x33   : > { %860 = vmatmul.mubr.msk.bf16.gmra.mrb[16].mxu0 %vm321_vm1, %v297_v19 }
  0xe6   : > { %v371_v23 = vpop.f32.mrb[0].mxu0 }
  0xe7   : > { %v372_v24 = vadd.f32 %v801_v22, %v371_v23  ;;  %v845_v25 = vpop.f32.mrb[1].mxu0 }
  0xe8   : > { %v374_v26 = vpop.f32.mrb[2].mxu0 }
  0xe9   : > { %v375_v27 = vadd.f32 %v801_v22, %v374_v26  ;;  %v846_v28 = vpop.f32.mrb[3].mxu0  ;;  %v410_v29 = vmax.f32 %v372_v24, 0.0 }
  0xeb   : > { %v411_v30 = vmax.f32 %v375_v27, 0.0 }
  0xed   : > { %v420_v31 = vpack.c.bf16 %v411_v30, %v410_v29 }
  0xee   : > { %v379_v32 = vpop.f32.mrb[4].mxu0 }
  0xef   : > { %v380_v33 = vadd.f32 %v801_v22, %v379_v32  ;;  %v849_v34 = vpop.f32.mrb[5].mxu0  ;;  %872 = vmatmul.mubr.msk.bf16.vlgmr.msra.gmra.mrb[0].mxu1 %vm464_vm2, %v420_v31 }
  0xf0   : > { %v382_v35 = vpop.f32.mrb[6].mxu0  ;;  %875 = vmatprep.mubr.msk.bf16.mxu1 %vm936_vm0, %v935_v1 }
  0xf1   : > { %v383_v36 = vadd.f32 %v801_v22, %v382_v35  ;;  %v850_v37 = vpop.f32.mrb[7].mxu0  ;;  %v412_v38 = vmax.f32 %v380_v33, 0.0 }
  0xf3   : > { %v413_v39 = vmax.f32 %v383_v36, 0.0 }
  0xf5   : > { %v421_v40 = vpack.c.bf16 %v413_v39, %v412_v38 }
  0xf6   : > { %v387_v41 = vpop.f32.mrb[8].mxu0 }
  0xf7   : > { %v388_v42 = vadd.f32 %v801_v22, %v387_v41  ;;  %v853_v43 = vpop.f32.mrb[9].mxu0  ;;  %876 = vmatmul.mubr.msk.bf16.gmra.mrb[4].mxu1 %vm464_vm2, %v421_v40 }
  0xf8   : > { %v390_v44 = vpop.f32.mrb[10].mxu0  ;;  %879 = vmatprep.mubr.msk.bf16.mxu1 %vm936_vm0, %v935_v1 }
  0xf9   : > { %v391_v45 = vadd.f32 %v801_v22, %v390_v44  ;;  %v854_v46 = vpop.f32.mrb[11].mxu0  ;;  %v414_v47 = vmax.f32 %v388_v42, 0.0 }
  0xfb   : > { %v415_v48 = vmax.f32 %v391_v45, 0.0 }
  0xfd   : > { %v422_v49 = vpack.c.bf16 %v415_v48, %v414_v47 }
  0xfe   : > { %v395_v50 = vpop.f32.mrb[12].mxu0 }
  0xff   : > { %v396_v51 = vadd.f32 %v801_v22, %v395_v50  ;;  %v857_v52 = vpop.f32.mrb[13].mxu0  ;;  %880 = vmatmul.mubr.msk.bf16.gmra.mrb[8].mxu1 %vm464_vm2, %v422_v49 }
 0x100   : > { %v398_v53 = vpop.f32.mrb[14].mxu0  ;;  %883 = vmatprep.mubr.msk.bf16.mxu1 %vm936_vm0, %v935_v1 }
 0x101   : > { %v399_v54 = vadd.f32 %v801_v22, %v398_v53  ;;  %v858_v55 = vpop.f32.mrb[15].mxu0  ;;  %v416_v56 = vmax.f32 %v396_v51, 0.0 }
 0x103   : > { %v417_v57 = vmax.f32 %v399_v54, 0.0 }
 0x105   : > { %v423_v58 = vpack.c.bf16 %v417_v57, %v416_v56 }
 0x106   : > { %v403_v59 = vpop.f32.mrb[16].mxu0 }
 0x107   : > { %v404_v60 = vadd.f32 %v801_v22, %v403_v59  ;;  %v861_v61 = vpop.f32.mrb[17].mxu0  ;;  %884 = vmatmul.mubr.msk.bf16.gmra.mrb[12].mxu1 %vm464_vm2, %v423_v58 }
 0x108   : > { %v406_v62 = vpop.f32.mrb[18].mxu0  ;;  %887 = vmatprep.mubr.msk.bf16.mxu1 %vm936_vm0, %v935_v1 }
 0x109   : > { %v407_v63 = vadd.f32 %v801_v22, %v406_v62  ;;  %v862_v0 = vpop.f32.mrb[19].mxu0  ;;  %v418_v2 = vmax.f32 %v404_v60, 0.0 }
 0x10b   : > { %v419_v3 = vmax.f32 %v407_v63, 0.0 }
 0x10d   : > { %v424_v4 = vpack.c.bf16 %v419_v3, %v418_v2 }
 0x10f   : > { %888 = vmatmul.mubr.msk.bf16.gmra.mrb[16].mxu1 %vm464_vm2, %v424_v4 }
 0x1c2   : > { %v514_v10 = vpop.f32.mrb[0].mxu1 }
 0x1c3   : > { %v515_v13 = vadd.f32 %v809_v7, %v514_v10  ;;  %v873_v16 = vpop.f32.mrb[1].mxu1 }
 0x1c4   : > { %v517_v19 = vpop.f32.mrb[2].mxu1 }
 0x1c5   : > { %v518_v20 = vadd.f32 %v809_v7, %v517_v19  ;;  %v874_v21 = vpop.f32.mrb[3].mxu1  ;;  %v553_v23 = vadd.f32 %v515_v13, %v1013_v5 }
 0x1c7   : > { %v563_v1 = vsel %vm321_vm1, %v553_v23, 0.0  ;;  %v554_v22 = vadd.f32 %v518_v20, %v1015_v6 }
 0x1c8   : > { %564 = vadd.xlane.f32.xlu0 %v563_v1 }
 0x1c9   : > { %v566_v27 = vsel %vm321_vm1, %v554_v22, 0.0 }
 0x1ca   : > { %v522_v24 = vpop.f32.mrb[4].mxu1 }
 0x1cb   : > { %v523_v25 = vadd.f32 %v809_v7, %v522_v24  ;;  %v877_v26 = vpop.f32.mrb[5].mxu1 }
 0x1cc   : > { %567 = vadd.xlane.f32.xlu0 %v566_v27  ;;  %v525_v28 = vpop.f32.mrb[6].mxu1 }
 0x1cd   : > { %v526_v29 = vadd.f32 %v809_v7, %v525_v28  ;;  %v878_v30 = vpop.f32.mrb[7].mxu1  ;;  %v555_v31 = vadd.f32 %v523_v25, %v1023_v8 }
 0x1cf   : > { %v569_v32 = vsel %vm321_vm1, %v555_v31, 0.0  ;;  %v556_v5 = vadd.f32 %v526_v29, %v1025_v9 }
 0x1d0   : > { %570 = vadd.xlane.f32.xlu1 %v569_v32 }
 0x1d1   : > { %v572_v35 = vsel %vm321_vm1, %v556_v5, 0.0 }
 0x1d2   : > { %v530_v33 = vpop.f32.mrb[8].mxu1 }
 0x1d3   : > { %v531_v34 = vadd.f32 %v809_v7, %v530_v33  ;;  %v881_v6 = vpop.f32.mrb[9].mxu1 }
 0x1d4   : > { %573 = vadd.xlane.f32.xlu1 %v572_v35  ;;  %v533_v36 = vpop.f32.mrb[10].mxu1 }
 0x1d5   : > { %v534_v37 = vadd.f32 %v809_v7, %v533_v36  ;;  %v882_v38 = vpop.f32.mrb[11].mxu1  ;;  %v557_v39 = vadd.f32 %v531_v34, %v1032_v11 }
 0x1d7   : > { %v575_v40 = vsel %vm321_vm1, %v557_v39, 0.0  ;;  %v558_v8 = vadd.f32 %v534_v37, %v1034_v12 }
 0x1d8   : > { %576 = vadd.xlane.f32.xlu0 %v575_v40 }
 0x1d9   : > { %v578_v41 = vsel %vm321_vm1, %v558_v8, 0.0 }
 0x1da   : > { %579 = vadd.xlane.f32.xlu1 %v578_v41  ;;  %v538_v9 = vpop.f32.mrb[12].mxu1 }
 0x1db   : > { %v539_v42 = vadd.f32 %v809_v7, %v538_v9  ;;  %v885_v43 = vpop.f32.mrb[13].mxu1 }
 0x1dc   : > { %v541_v44 = vpop.f32.mrb[14].mxu1 }
 0x1dd   : > { %v542_v45 = vadd.f32 %v809_v7, %v541_v44  ;;  %v886_v46 = vpop.f32.mrb[15].mxu1  ;;  %v559_v47 = vadd.f32 %v539_v42, %v1041_v14 }
 0x1df   : > { %v581_v48 = vsel %vm321_vm1, %v559_v47, 0.0  ;;  %v560_v11 = vadd.f32 %v542_v45, %v1043_v15 }
 0x1e0   : > { %582 = vadd.xlane.f32.xlu0 %v581_v48 }
 0x1e1   : > { %v584_v49 = vsel %vm321_vm1, %v560_v11, 0.0 }
 0x1e2   : > { %585 = vadd.xlane.f32.xlu1 %v584_v49  ;;  %v546_v12 = vpop.f32.mrb[16].mxu1 }
 0x1e3   : > { %v547_v50 = vadd.f32 %v809_v7, %v546_v12  ;;  %v889_v51 = vpop.f32.mrb[17].mxu1 }
 0x1e4   : > { %v549_v52 = vpop.f32.mrb[18].mxu1 }
 0x1e5   : > { %v550_v53 = vadd.f32 %v809_v7, %v549_v52  ;;  %v890_v54 = vpop.f32.mrb[19].mxu1  ;;  %v561_v55 = vadd.f32 %v547_v50, %v1050_v17 }
 0x1e7   : > { %v587_v56 = vsel %vm321_vm1, %v561_v55, 0.0  ;;  %v562_v14 = vadd.f32 %v550_v53, %v1052_v18 }
 0x1e8   : > { %588 = vadd.xlane.f32.xlu0 %v587_v56 }
 0x1e9   : > { %v590_v57 = vsel %vm321_vm1, %v562_v14, 0.0 }
 0x1ea   : > { %591 = vadd.xlane.f32.xlu1 %v590_v57 }
 0x255   : > { %v565_v15 = vpop.xlane.xlu0 %564 }
 0x256   : > { %v594_v58 = vmul.f32 0.03125, %v565_v15 }
 0x258   : > { %v1103_v59 = vsub.f32 %v553_v23, %v594_v58 }
 0x259   : > { %v568_v60 = vpop.xlane.xlu0 %567 }
 0x25a   : > { %v595_v61 = vmul.f32 0.03125, %v568_v60  ;;  %v614_v62 = vmul.f32 %v1103_v59, %v1103_v59  ;;  %v1162_v60 = vld [vmem:[%s1229_s6] ss:$0 sm:$0xff] }
 0x25c   : > { %v1107_v63 = vsub.f32 %v554_v22, %v595_v61  ;;  %v624_v17 = vsel %vm321_vm1, %v614_v62, 0.0 }
 0x25d   : > { %v571_v0 = vpop.xlane.xlu1 %570  ;;  %625 = vadd.xlane.f32.xlu0 %v624_v17 }
 0x25e   : > { %v596_v18 = vmul.f32 0.03125, %v571_v0  ;;  %v615_v2 = vmul.f32 %v1107_v63, %v1107_v63 }
 0x260   : > { %v1112_v3 = vsub.f32 %v555_v31, %v596_v18  ;;  %v627_v4 = vsel %vm321_vm1, %v615_v2, 0.0 }
 0x261   : > { %v574_v7 = vpop.xlane.xlu1 %573  ;;  %628 = vadd.xlane.f32.xlu1 %v627_v4 }
 0x262   : > { %v597_v10 = vmul.f32 0.03125, %v574_v7  ;;  %v616_v13 = vmul.f32 %v1112_v3, %v1112_v3 }
 0x264   : > { %v1117_v16 = vsub.f32 %v556_v5, %v597_v10  ;;  %v630_v19 = vsel %vm321_vm1, %v616_v13, 0.0 }
 0x265   : > { %v577_v20 = vpop.xlane.xlu0 %576  ;;  %631 = vadd.xlane.f32.xlu0 %v630_v19 }
 0x266   : > { %v598_v21 = vmul.f32 0.03125, %v577_v20  ;;  %v617_v23 = vmul.f32 %v1117_v16, %v1117_v16 }
 0x267   : > { %v580_v1 = vpop.xlane.xlu1 %579 }
 0x268   : > { %v1122_v22 = vsub.f32 %v557_v39, %v598_v21  ;;  %v599_v24 = vmul.f32 0.03125, %v580_v1  ;;  %v633_v25 = vsel %vm321_vm1, %v617_v23, 0.0 }
 0x269   : > { %634 = vadd.xlane.f32.xlu1 %v633_v25 }
 0x26a   : > { %v1125_v26 = vsub.f32 %v558_v8, %v599_v24  ;;  %v618_v27 = vmul.f32 %v1122_v22, %v1122_v22 }
 0x26c   : > { %v636_v28 = vsel %vm321_vm1, %v618_v27, 0.0  ;;  %v619_v29 = vmul.f32 %v1125_v26, %v1125_v26 }
 0x26d   : > { %v583_v30 = vpop.xlane.xlu0 %582  ;;  %637 = vadd.xlane.f32.xlu0 %v636_v28 }
 0x26e   : > { %v600_v31 = vmul.f32 0.03125, %v583_v30  ;;  %v639_v32 = vsel %vm321_vm1, %v619_v29, 0.0 }
 0x26f   : > { %v586_v5 = vpop.xlane.xlu1 %585  ;;  %640 = vadd.xlane.f32.xlu1 %v639_v32 }
 0x270   : > { %v1133_v33 = vsub.f32 %v559_v47, %v600_v31  ;;  %v601_v34 = vmul.f32 0.03125, %v586_v5 }
 0x272   : > { %v1135_v6 = vsub.f32 %v560_v11, %v601_v34  ;;  %v620_v35 = vmul.f32 %v1133_v33, %v1133_v33 }
 0x274   : > { %v642_v36 = vsel %vm321_vm1, %v620_v35, 0.0  ;;  %v621_v37 = vmul.f32 %v1135_v6, %v1135_v6 }
 0x275   : > { %643 = vadd.xlane.f32.xlu0 %v642_v36  ;;  %v589_v38 = vpop.xlane.xlu0 %588 }
 0x276   : > { %v602_v39 = vmul.f32 0.03125, %v589_v38  ;;  %v645_v40 = vsel %vm321_vm1, %v621_v37, 0.0 }
 0x277   : > { %646 = vadd.xlane.f32.xlu1 %v645_v40  ;;  %v592_v8 = vpop.xlane.xlu1 %591 }
 0x278   : > { %v1143_v41 = vsub.f32 %v561_v55, %v602_v39  ;;  %v603_v9 = vmul.f32 0.03125, %v592_v8 }
 0x27a   : > { %v1145_v42 = vsub.f32 %v562_v14, %v603_v9  ;;  %v622_v43 = vmul.f32 %v1143_v41, %v1143_v41  ;;  %v1156_v14 = vld [vmem:[%s1228_s5] ss:$0 sm:$0xff] }
 0x27c   : > { %v648_v44 = vsel %vm321_vm1, %v622_v43, 0.0  ;;  %v623_v45 = vmul.f32 %v1145_v42, %v1145_v42 }
 0x27d   : > { %649 = vadd.xlane.f32.xlu0 %v648_v44 }
 0x27e   : > { %v651_v46 = vsel %vm321_vm1, %v623_v45, 0.0 }
 0x27f   : > { %652 = vadd.xlane.f32.xlu1 %v651_v46 }
 0x2ea   : > { %v626_v47 = vpop.xlane.xlu0 %625 }
 0x2eb   : > { %v654_v48 = vmul.f32 0.03125, %v626_v47 }
 0x2ed   : > { %v664_v11 = vadd.f32 1e-05, %v654_v48 }
 0x2ee   : > { %v629_v49 = vpop.xlane.xlu1 %628 }
 0x2ef   : > { %907 = vrsqrt.f32 %v664_v11  ;;  %v655_v12 = vmul.f32 0.03125, %v629_v49 }
 0x2f1   : > { %v665_v50 = vadd.f32 1e-05, %v655_v12 }
 0x2f2   : > { %v632_v51 = vpop.xlane.xlu0 %631 }
 0x2f3   : > { %909 = vrsqrt.f32 %v665_v50  ;;  %v656_v52 = vmul.f32 0.03125, %v632_v51 }
 0x2f5   : > { %v666_v53 = vadd.f32 1e-05, %v656_v52 }
 0x2f6   : > { %v635_v54 = vpop.xlane.xlu1 %634 }
 0x2f7   : > { %911 = vrsqrt.f32 %v666_v53  ;;  %v657_v55 = vmul.f32 0.03125, %v635_v54 }
 0x2f9   : > { %v908_v56 = vpop.eup %907  ;;  %v667_v57 = vadd.f32 1e-05, %v657_v55 }
 0x2fa   : > { %v684_v15 = vmul.f32 %v908_v56, %v1103_v59  ;;  %v638_v58 = vpop.xlane.xlu0 %637 }
 0x2fb   : > { %913 = vrsqrt.f32 %v667_v57  ;;  %v658_v61 = vmul.f32 0.03125, %v638_v58 }
 0x2fc   : > { %v701_v62 = vmul.f32 %v1156_v14, %v684_v15  ;;  %v641_v17 = vpop.xlane.xlu1 %640 }
 0x2fd   : > { %v910_v0 = vpop.eup %909  ;;  %v668_v59 = vadd.f32 1e-05, %v658_v61  ;;  %v659_v18 = vmul.f32 0.03125, %v641_v17 }
 0x2fe   : > { %v718_v2 = vadd.f32 %v1162_v60, %v701_v62  ;;  %v685_v4 = vmul.f32 %v910_v0, %v1107_v63 }
 0x2ff   : > { %915 = vrsqrt.f32 %v668_v59  ;;  %v669_v7 = vadd.f32 1e-05, %v659_v18 }
 0x300   : > { %728 = vst.msk [vmem:[%s1170_s9] sm:$0xff] %vm321_vm1, %v718_v2  ;;  %v702_v10 = vmul.f32 %v1156_v14, %v685_v4 }
 0x301   : > { %v912_v13 = vpop.eup %911  ;;  %917 = vrsqrt.f32 %v669_v7 }
 0x302   : > { %v719_v19 = vadd.f32 %v1162_v60, %v702_v10  ;;  %v686_v20 = vmul.f32 %v912_v13, %v1112_v3  ;;  %v644_v21 = vpop.xlane.xlu0 %643 }
 0x303   : > { %v660_v23 = vmul.f32 0.03125, %v644_v21 }
 0x304   : > { %729 = vst.msk [vmem:[%s1170_s9 + $0x8] sm:$0xff] %vm321_vm1, %v719_v19  ;;  %v703_v1 = vmul.f32 %v1156_v14, %v686_v20  ;;  %v647_v63 = vpop.xlane.xlu1 %646 }
 0x305   : > { %v914_v24 = vpop.eup %913  ;;  %v670_v25 = vadd.f32 1e-05, %v660_v23  ;;  %v661_v27 = vmul.f32 0.03125, %v647_v63 }
 0x306   : > { %v720_v28 = vadd.f32 %v1162_v60, %v703_v1  ;;  %v687_v29 = vmul.f32 %v914_v24, %v1117_v16 }
 0x307   : > { %919 = vrsqrt.f32 %v670_v25  ;;  %v671_v30 = vadd.f32 1e-05, %v661_v27 }
 0x308   : > { %730 = vst.msk [vmem:[%s1170_s9 + $0x10] sm:$0xff] %vm321_vm1, %v720_v28  ;;  %v704_v3 = vmul.f32 %v1156_v14, %v687_v29 }
 0x309   : > { %v916_v31 = vpop.eup %915  ;;  %921 = vrsqrt.f32 %v671_v30 }
 0x30a   : > { %v721_v32 = vadd.f32 %v1162_v60, %v704_v3  ;;  %v688_v5 = vmul.f32 %v916_v31, %v1122_v22  ;;  %v650_v34 = vpop.xlane.xlu0 %649 }
 0x30b   : > { %v918_v35 = vpop.eup %917  ;;  %v662_v36 = vmul.f32 0.03125, %v650_v34 }
 0x30c   : > { %731 = vst.msk [vmem:[%s1170_s9 + $0x18] sm:$0xff] %vm321_vm1, %v721_v32  ;;  %v705_v16 = vmul.f32 %v1156_v14, %v688_v5  ;;  %v689_v37 = vmul.f32 %v918_v35, %v1125_v26  ;;  %v653_v38 = vpop.xlane.xlu1 %652 }
 0x30d   : > { %v672_v39 = vadd.f32 1e-05, %v662_v36  ;;  %v663_v40 = vmul.f32 0.03125, %v653_v38 }
 0x30e   : > { %v722_v8 = vadd.f32 %v1162_v60, %v705_v16  ;;  %v706_v9 = vmul.f32 %v1156_v14, %v689_v37 }
 0x30f   : > { %923 = vrsqrt.f32 %v672_v39  ;;  %v673_v22 = vadd.f32 1e-05, %v663_v40 }
 0x310   : > { %732 = vst.msk [vmem:[%s1170_s9 + $0x20] sm:$0xff] %vm321_vm1, %v722_v8  ;;  %v723_v43 = vadd.f32 %v1162_v60, %v706_v9 }
 0x311   : > { %v920_v44 = vpop.eup %919  ;;  %925 = vrsqrt.f32 %v673_v22 }
 0x312   : > { %733 = vst.msk [vmem:[%s1170_s9 + $0x28] sm:$0xff] %vm321_vm1, %v723_v43  ;;  %v690_v26 = vmul.f32 %v920_v44, %v1133_v33 }
 0x313   : > { %v922_v45 = vpop.eup %921 }
 0x314   : > { %v707_v46 = vmul.f32 %v1156_v14, %v690_v26  ;;  %v691_v47 = vmul.f32 %v922_v45, %v1135_v6 }
 0x316   : > { %v724_v48 = vadd.f32 %v1162_v60, %v707_v46  ;;  %v708_v11 = vmul.f32 %v1156_v14, %v691_v47 }
 0x318   : > { %734 = vst.msk [vmem:[%s1170_s9 + $0x30] sm:$0xff] %vm321_vm1, %v724_v48  ;;  %v725_v49 = vadd.f32 %v1162_v60, %v708_v11 }
 0x319   : > { %v924_v12 = vpop.eup %923 }
 0x31a   : > { %735 = vst.msk [vmem:[%s1170_s9 + $0x38] sm:$0xff] %vm321_vm1, %v725_v49  ;;  %v692_v33 = vmul.f32 %v924_v12, %v1143_v41 }
 0x31b   : > { %v926_v50 = vpop.eup %925 }
 0x31c   : > { %v709_v51 = vmul.f32 %v1156_v14, %v692_v33  ;;  %v693_v52 = vmul.f32 %v926_v50, %v1145_v42 }
 0x31e   : > { %v726_v6 = vadd.f32 %v1162_v60, %v709_v51  ;;  %v710_v53 = vmul.f32 %v1156_v14, %v693_v52 }
 0x320   : > { %736 = vst.msk [vmem:[%s1170_s9 + $0x40] sm:$0xff] %vm321_vm1, %v726_v6  ;;  %v727_v54 = vadd.f32 %v1162_v60, %v710_v53 }
 0x322   : > { %737 = vst.msk [vmem:[%s1170_s9 + $0x48] sm:$0xff] %vm321_vm1, %v727_v54 }
 0x323 PF: > { %s17_s24 = sadd.s32 1, %s933_s24  }
 0x324   : > { %p14_p4 = scmp.ge.s32.totalorder %s17_s24, 4  }
 0x326   :  { %16 = sbr.rel (!%p14_p4) target bundleno = 1 (0x1), region = 78 }

</bundles_post_ra>
